<compile_context>
chip_gen: v7x
topology: tpu7x:2x2x1
jax: 0.10.0
libtpu: 0.0.40
codegen_flags: <defaults>
</compile_context>

<pallas_src>
import jax
import jax.numpy as jnp
from jax import lax
from jax.experimental import pallas as pl
from jax.experimental.pallas import tpu as pltpu

EPS = 1e-5
LANE = 128


def _round_up(v, m):
    return (v + m - 1) // m * m


# ---------------------------------------------------------------------------
# Kernel 1: 3x3 conv (tap-accumulated on the MXU) + bias, per image tile.
#           Also emits per-channel (sum, sum_sq) partials for BatchNorm.
# ---------------------------------------------------------------------------
def _conv3x3_stats_kernel(x_ref, w_ref, b_ref, y_ref, s_ref):
    # x_ref: (1, H+2, W+2, Ci) bf16   spatially zero-padded activations
    # w_ref: (9, Ci, Co)       bf16   tap-major weights (t = dy*3 + dx)
    # b_ref: (1, Co)           f32
    # y_ref: (1, H, W, Co)     f32    raw conv output
    # s_ref: (1, 2, Co)        f32    [sum; sum_sq] over this tile's rows
    H = x_ref.shape[1] - 2
    W = x_ref.shape[2] - 2
    Ci = x_ref.shape[3]
    Co = w_ref.shape[2]

    x = x_ref[0]                                          # (H+2, W+2, Ci) bf16
    acc = jnp.zeros((H * W, Co), jnp.float32)
    for t in range(9):                                    # static unroll: 9 MXU matmuls
        dy, dx = divmod(t, 3)
        tap = x[dy:dy + H, dx:dx + W, :].reshape(H * W, Ci)
        acc = acc + jnp.dot(tap, w_ref[t], preferred_element_type=jnp.float32)
    acc = acc + b_ref[...]

    y_ref[...] = acc.reshape(1, H, W, Co)
    stats = jnp.concatenate(
        [jnp.sum(acc, axis=0, keepdims=True),
         jnp.sum(acc * acc, axis=0, keepdims=True)], axis=0)
    s_ref[...] = stats[None]


def conv3x3_stats(x_pad, w, b):
    N, Hp, Wp, Ci = x_pad.shape
    H, W = Hp - 2, Wp - 2
    Co = w.shape[2]
    return pl.pallas_call(
        _conv3x3_stats_kernel,
        grid=(N,),
        out_shape=(jax.ShapeDtypeStruct((N, H, W, Co), jnp.float32),
                   jax.ShapeDtypeStruct((N, 2, Co), jnp.float32)),
        in_specs=[pl.BlockSpec((1, Hp, Wp, Ci), lambda n: (n, 0, 0, 0)),
                  pl.BlockSpec((9, Ci, Co), lambda n: (0, 0, 0)),
                  pl.BlockSpec((1, Co), lambda n: (0, 0))],
        out_specs=(pl.BlockSpec((1, H, W, Co), lambda n: (n, 0, 0, 0)),
                   pl.BlockSpec((1, 2, Co), lambda n: (n, 0, 0))),
        compiler_params=pltpu.CompilerParams(
            dimension_semantics=("parallel",)),
    )(x_pad, w, b)


# ---------------------------------------------------------------------------
# Kernel 2: BN1 (fused scale/shift, global stats) + ReLU + 3x3 conv2 + bias.
#           y1 = relu(bn1(conv1)) lives only in a VMEM scratch tile.
# ---------------------------------------------------------------------------
def _bn_relu_conv3x3_stats_kernel(a_ref, sc_ref, sh_ref, w_ref, b_ref,
                                  y_ref, s_ref, pad_ref):
    # a_ref : (1, H, W, Ci) f32   raw conv1 output
    # sc/sh : (1, Ci) f32         fused BN1 scale / shift
    # w_ref : (9, Ci, Co) bf16 ; b_ref: (1, Co) f32
    # y_ref : (1, H, W, Co) f32   raw conv2 output
    # s_ref : (1, 2, Co) f32      [sum; sum_sq] partials for BN2
    # pad_ref: VMEM scratch (H+2, W+2, Ci) bf16  zero-padded y1 tile
    H = a_ref.shape[1]
    W = a_ref.shape[2]
    Ci = a_ref.shape[3]
    Co = w_ref.shape[2]

    y1 = jnp.maximum(a_ref[0] * sc_ref[...] + sh_ref[...], 0.0)   # f32 epilogue
    pad_ref[...] = jnp.zeros_like(pad_ref)                        # zero halo
    pad_ref[1:H + 1, 1:W + 1, :] = y1.astype(jnp.bfloat16)        # bf16 for MXU
    yp = pad_ref[...]

    acc = jnp.zeros((H * W, Co), jnp.float32)
    for t in range(9):
        dy, dx = divmod(t, 3)
        tap = yp[dy:dy + H, dx:dx + W, :].reshape(H * W, Ci)
        acc = acc + jnp.dot(tap, w_ref[t], preferred_element_type=jnp.float32)
    acc = acc + b_ref[...]

    y_ref[...] = acc.reshape(1, H, W, Co)
    stats = jnp.concatenate(
        [jnp.sum(acc, axis=0, keepdims=True),
         jnp.sum(acc * acc, axis=0, keepdims=True)], axis=0)
    s_ref[...] = stats[None]


def bn_relu_conv3x3_stats(conv1_out, scale1, shift1, w, b):
    N, H, W, Ci = conv1_out.shape
    Co = w.shape[2]
    return pl.pallas_call(
        _bn_relu_conv3x3_stats_kernel,
        grid=(N,),
        out_shape=(jax.ShapeDtypeStruct((N, H, W, Co), jnp.float32),
                   jax.ShapeDtypeStruct((N, 2, Co), jnp.float32)),
        in_specs=[pl.BlockSpec((1, H, W, Ci), lambda n: (n, 0, 0, 0)),
                  pl.BlockSpec((1, Ci), lambda n: (0, 0)),
                  pl.BlockSpec((1, Ci), lambda n: (0, 0)),
                  pl.BlockSpec((9, Ci, Co), lambda n: (0, 0, 0)),
                  pl.BlockSpec((1, Co), lambda n: (0, 0))],
        out_specs=(pl.BlockSpec((1, H, W, Co), lambda n: (n, 0, 0, 0)),
                   pl.BlockSpec((1, 2, Co), lambda n: (n, 0, 0))),
        scratch_shapes=[pltpu.VMEM((H + 2, W + 2, Ci), jnp.bfloat16)],
        compiler_params=pltpu.CompilerParams(
            dimension_semantics=("parallel",)),
    )(conv1_out, scale1, shift1, w, b)


# ---------------------------------------------------------------------------
# Kernel 3: BN2 (fused scale/shift) + identity residual + ReLU (elementwise).
# ---------------------------------------------------------------------------
def _bn_add_relu_kernel(a_ref, sc_ref, sh_ref, r_ref, o_ref):
    o_ref[...] = jnp.maximum(
        a_ref[...] * sc_ref[...] + sh_ref[...] + r_ref[...], 0.0)


def bn_add_relu(conv2_out, scale2, shift2, residual):
    N, H, W, C = conv2_out.shape
    return pl.pallas_call(
        _bn_add_relu_kernel,
        grid=(N,),
        out_shape=jax.ShapeDtypeStruct((N, H, W, C), jnp.float32),
        in_specs=[pl.BlockSpec((1, H, W, C), lambda n: (n, 0, 0, 0)),
                  pl.BlockSpec((1, C), lambda n: (0, 0)),
                  pl.BlockSpec((1, C), lambda n: (0, 0)),
                  pl.BlockSpec((1, H, W, C), lambda n: (n, 0, 0, 0))],
        out_specs=pl.BlockSpec((1, H, W, C), lambda n: (n, 0, 0, 0)),
        compiler_params=pltpu.CompilerParams(
            dimension_semantics=("parallel",)),
    )(conv2_out, scale2, shift2, residual)


# ---------------------------------------------------------------------------
# Host-side wrapper (layout plumbing + tiny per-channel BN folding).
# ---------------------------------------------------------------------------
def _pack_weight(w_oihw, ci_pad, co_pad):
    """PyTorch (Cout, Cin, 3, 3) -> (9, Ci_pad, Co_pad) bf16, tap-major (dy, dx)."""
    co, ci, _, _ = w_oihw.shape
    w = jnp.transpose(w_oihw, (2, 3, 1, 0)).reshape(9, ci, co)
    w = jnp.pad(w, ((0, 0), (0, ci_pad - ci), (0, co_pad - co)))
    return w.astype(jnp.bfloat16)


def _pad_channels(v, c_pad):
    return jnp.pad(v.astype(jnp.float32), (0, c_pad - v.shape[0]))


def _bn_scale_shift(stats, gamma_p, beta_p, count):
    """Fold training-mode BatchNorm (global biased batch stats) into scale/shift."""
    s = jnp.sum(stats, axis=0)                    # reduce per-tile partials: (2, Cp)
    mean = s[0] / count
    var = jnp.maximum(s[1] / count - mean * mean, 0.0)
    scale = gamma_p * lax.rsqrt(var + EPS)
    shift = beta_p - mean * scale
    return scale[None, :], shift[None, :]         # (1, Cp) each


def residual_block_forward(x_nchw, params):
    """ResidualBlock.forward with stride=1 and in_channels == out_channels."""
    N, Cin, H, W = x_nchw.shape
    Cout = params["w1"].shape[0]
    # TODO(synk): the stride!=1 / channel-mismatch branch of the reference calls
    # F.interpolate into shape-mismatched tensors (it cannot run in PyTorch
    # either), so only the stride=1, Cin==Cout identity-residual path is kernelized.
    assert Cin == Cout, "only the identity-residual path is implemented"
    Cp = _round_up(max(Cin, Cout), LANE)          # lane-dense channel padding
    count = N * H * W                             # BN batch-statistics count

    x_nhwc = jnp.transpose(x_nchw, (0, 2, 3, 1)).astype(jnp.float32)
    x_res = jnp.pad(x_nhwc, ((0, 0), (0, 0), (0, 0), (0, Cp - Cin)))      # f32 residual
    x_pad = jnp.pad(x_res, ((0, 0), (1, 1), (1, 1), (0, 0))).astype(jnp.bfloat16)

    w1 = _pack_weight(params["w1"], Cp, Cp)
    w2 = _pack_weight(params["w2"], Cp, Cp)
    b1 = _pad_channels(params["b1"], Cp)[None, :]
    b2 = _pad_channels(params["b2"], Cp)[None, :]
    g1 = _pad_channels(params["g1"], Cp)
    g2 = _pad_channels(params["g2"], Cp)
    beta1 = _pad_channels(params["beta1"], Cp)
    beta2 = _pad_channels(params["beta2"], Cp)

    # conv1 (+bias) and BN1 batch statistics.
    conv1_out, stats1 = conv3x3_stats(x_pad, w1, b1)
    scale1, shift1 = _bn_scale_shift(stats1, g1, beta1, count)

    # BN1 + ReLU fused with conv2 (+bias) and BN2 batch statistics.
    conv2_out, stats2 = bn_relu_conv3x3_stats(conv1_out, scale1, shift1, w2, b2)
    scale2, shift2 = _bn_scale_shift(stats2, g2, beta2, count)

    # BN2 + identity residual + ReLU.
    out = bn_add_relu(conv2_out, scale2, shift2, x_res)
    return jnp.transpose(out[..., :Cout], (0, 3, 1, 2))   # back to NCHW


# ---------------------------------------------------------------------------
# Pure-JAX f32 reference (same semantics) for validation.
# ---------------------------------------------------------------------------
def _ref_forward(x_nchw, params):
    def conv(x, w, b):
        y = lax.conv_general_dilated(x, w, (1, 1), ((1, 1), (1, 1)),
                                     dimension_numbers=("NCHW", "OIHW", "NCHW"),
                                     precision=lax.Precision.HIGHEST)
        return y + b[None, :, None, None]

    def bn(x, g, beta):
        mean = jnp.mean(x, axis=(0, 2, 3), keepdims=True)
        var = jnp.mean(jnp.square(x - mean), axis=(0, 2, 3), keepdims=True)
        return ((x - mean) * lax.rsqrt(var + EPS) * g[None, :, None, None]
                + beta[None, :, None, None])

    out = jnp.maximum(bn(conv(x_nchw, params["w1"], params["b1"]),
                         params["g1"], params["beta1"]), 0.0)
    out = bn(conv(out, params["w2"], params["b2"]), params["g2"], params["beta2"])
    return jnp.maximum(out + x_nchw, 0.0)


if __name__ == "__main__":
    # Small shapes consistent with the module: stride=1, in_channels == out_channels.
    N, C, H, W = 2, 8, 16, 16
    key = jax.random.PRNGKey(0)
    ks = jax.random.split(key, 9)
    params = {
        "w1": 0.1 * jax.random.normal(ks[0], (C, C, 3, 3), jnp.float32),
        "b1": 0.1 * jax.random.normal(ks[1], (C,), jnp.float32),
        "g1": 1.0 + 0.1 * jax.random.normal(ks[2], (C,), jnp.float32),
        "beta1": 0.1 * jax.random.normal(ks[3], (C,), jnp.float32),
        "w2": 0.1 * jax.random.normal(ks[4], (C, C, 3, 3), jnp.float32),
        "b2": 0.1 * jax.random.normal(ks[5], (C,), jnp.float32),
        "g2": 1.0 + 0.1 * jax.random.normal(ks[6], (C,), jnp.float32),
        "beta2": 0.1 * jax.random.normal(ks[7], (C,), jnp.float32),
    }
    x = jax.random.normal(ks[8], (N, C, H, W), jnp.float32)

    out = jax.jit(residual_block_forward)(x, params)
    out = jax.block_until_ready(out)

    ref = _ref_forward(x, params)
    assert out.shape == ref.shape == (N, C, H, W)
    max_err = float(jnp.max(jnp.abs(out - ref)))
    # Tolerance scaled for bf16 MXU inputs (f32 accumulation) vs. the f32 reference.
    assert jnp.allclose(out, ref, atol=5e-2, rtol=5e-2), f"max abs err {max_err}"
    print("KERNEL_OK")
</pallas_src>

<mosaic_0001>
module attributes {stable_mosaic.version = 11 : i64} {
  func.func @_conv3x3_stats_kernel(%arg0: i32, %arg1: memref<1x18x18x128xbf16, #tpu.memory_space<vmem>>, %arg2: memref<9x128x128xbf16, #tpu.memory_space<vmem>>, %arg3: memref<1x128xf32, #tpu.memory_space<vmem>>, %arg4: memref<1x16x16x128xf32, #tpu.memory_space<vmem>>, %arg5: memref<1x2x128xf32, #tpu.memory_space<vmem>>) attributes {dimension_semantics = [#tpu.dimension_semantics<parallel>], iteration_bounds = array<i64: 2>, scalar_prefetch = 0 : i64, scratch_operands = 0 : i64, tpu.core_type = #tpu.core_type<tc>, window_params = [{transform_indices = @transform_0, window_bounds = array<i64: 1, 18, 18, 128>}, {pipeline_mode = #tpu.pipeline_mode<synchronous>, transform_indices = @transform_1, window_bounds = array<i64: 9, 128, 128>}, {pipeline_mode = #tpu.pipeline_mode<synchronous>, transform_indices = @transform_2, window_bounds = array<i64: 1, 128>}, {transform_indices = @transform_3, window_bounds = array<i64: 1, 16, 16, 128>}, {transform_indices = @transform_4, window_bounds = array<i64: 1, 2, 128>}]} {
    %c0 = arith.constant 0 : index
    %c0_0 = arith.constant 0 : index
    %c0_1 = arith.constant 0 : index
    %c0_2 = arith.constant 0 : index
    %0 = vector.load %arg1[%c0, %c0_0, %c0_1, %c0_2] : memref<1x18x18x128xbf16, #tpu.memory_space<vmem>>, vector<1x18x18x128xbf16>
    %1 = vector.shape_cast %0 : vector<1x18x18x128xbf16> to vector<18x18x128xbf16>
    %cst = arith.constant 0.000000e+00 : f32
    %2 = vector.broadcast %cst : f32 to vector<256x128xf32>
    %3 = vector.extract_strided_slice %1 {offsets = [0, 0, 0], sizes = [16, 16, 128], strides = [1, 1, 1]} : vector<18x18x128xbf16> to vector<16x16x128xbf16>
    %4 = vector.shape_cast %3 : vector<16x16x128xbf16> to vector<256x128xbf16>
    %c0_3 = arith.constant 0 : index
    %c0_4 = arith.constant 0 : index
    %c0_5 = arith.constant 0 : index
    %5 = vector.load %arg2[%c0_3, %c0_4, %c0_5] : memref<9x128x128xbf16, #tpu.memory_space<vmem>>, vector<1x128x128xbf16>
    %6 = vector.shape_cast %5 : vector<1x128x128xbf16> to vector<128x128xbf16>
    %cst_6 = arith.constant dense<0.000000e+00> : vector<256x128xf32>
    %7 = tpu.matmul %4, %6, %cst_6 {dimension_numbers = #tpu.dot_dimension_numbers<[1], [0], [0], [1], [0, 0, 1, 1], [], []>} : vector<256x128xbf16>, vector<128x128xbf16>, vector<256x128xf32> -> vector<256x128xf32>
    %8 = arith.addf %2, %7 : vector<256x128xf32>
    %9 = vector.extract_strided_slice %1 {offsets = [0, 1, 0], sizes = [16, 16, 128], strides = [1, 1, 1]} : vector<18x18x128xbf16> to vector<16x16x128xbf16>
    %10 = vector.shape_cast %9 : vector<16x16x128xbf16> to vector<256x128xbf16>
    %c1 = arith.constant 1 : index
    %c0_7 = arith.constant 0 : index
    %c0_8 = arith.constant 0 : index
    %11 = vector.load %arg2[%c1, %c0_7, %c0_8] : memref<9x128x128xbf16, #tpu.memory_space<vmem>>, vector<1x128x128xbf16>
    %12 = vector.shape_cast %11 : vector<1x128x128xbf16> to vector<128x128xbf16>
    %cst_9 = arith.constant dense<0.000000e+00> : vector<256x128xf32>
    %13 = tpu.matmul %10, %12, %cst_9 {dimension_numbers = #tpu.dot_dimension_numbers<[1], [0], [0], [1], [0, 0, 1, 1], [], []>} : vector<256x128xbf16>, vector<128x128xbf16>, vector<256x128xf32> -> vector<256x128xf32>
    %14 = arith.addf %8, %13 : vector<256x128xf32>
    %15 = vector.extract_strided_slice %1 {offsets = [0, 2, 0], sizes = [16, 16, 128], strides = [1, 1, 1]} : vector<18x18x128xbf16> to vector<16x16x128xbf16>
    %16 = vector.shape_cast %15 : vector<16x16x128xbf16> to vector<256x128xbf16>
    %c2 = arith.constant 2 : index
    %c0_10 = arith.constant 0 : index
    %c0_11 = arith.constant 0 : index
    %17 = vector.load %arg2[%c2, %c0_10, %c0_11] : memref<9x128x128xbf16, #tpu.memory_space<vmem>>, vector<1x128x128xbf16>
    %18 = vector.shape_cast %17 : vector<1x128x128xbf16> to vector<128x128xbf16>
    %cst_12 = arith.constant dense<0.000000e+00> : vector<256x128xf32>
    %19 = tpu.matmul %16, %18, %cst_12 {dimension_numbers = #tpu.dot_dimension_numbers<[1], [0], [0], [1], [0, 0, 1, 1], [], []>} : vector<256x128xbf16>, vector<128x128xbf16>, vector<256x128xf32> -> vector<256x128xf32>
    %20 = arith.addf %14, %19 : vector<256x128xf32>
    %21 = vector.extract_strided_slice %1 {offsets = [1, 0, 0], sizes = [16, 16, 128], strides = [1, 1, 1]} : vector<18x18x128xbf16> to vector<16x16x128xbf16>
    %22 = vector.shape_cast %21 : vector<16x16x128xbf16> to vector<256x128xbf16>
    %c3 = arith.constant 3 : index
    %c0_13 = arith.constant 0 : index
    %c0_14 = arith.constant 0 : index
    %23 = vector.load %arg2[%c3, %c0_13, %c0_14] : memref<9x128x128xbf16, #tpu.memory_space<vmem>>, vector<1x128x128xbf16>
    %24 = vector.shape_cast %23 : vector<1x128x128xbf16> to vector<128x128xbf16>
    %cst_15 = arith.constant dense<0.000000e+00> : vector<256x128xf32>
    %25 = tpu.matmul %22, %24, %cst_15 {dimension_numbers = #tpu.dot_dimension_numbers<[1], [0], [0], [1], [0, 0, 1, 1], [], []>} : vector<256x128xbf16>, vector<128x128xbf16>, vector<256x128xf32> -> vector<256x128xf32>
    %26 = arith.addf %20, %25 : vector<256x128xf32>
    %27 = vector.extract_strided_slice %1 {offsets = [1, 1, 0], sizes = [16, 16, 128], strides = [1, 1, 1]} : vector<18x18x128xbf16> to vector<16x16x128xbf16>
    %28 = vector.shape_cast %27 : vector<16x16x128xbf16> to vector<256x128xbf16>
    %c4 = arith.constant 4 : index
    %c0_16 = arith.constant 0 : index
    %c0_17 = arith.constant 0 : index
    %29 = vector.load %arg2[%c4, %c0_16, %c0_17] : memref<9x128x128xbf16, #tpu.memory_space<vmem>>, vector<1x128x128xbf16>
    %30 = vector.shape_cast %29 : vector<1x128x128xbf16> to vector<128x128xbf16>
    %cst_18 = arith.constant dense<0.000000e+00> : vector<256x128xf32>
    %31 = tpu.matmul %28, %30, %cst_18 {dimension_numbers = #tpu.dot_dimension_numbers<[1], [0], [0], [1], [0, 0, 1, 1], [], []>} : vector<256x128xbf16>, vector<128x128xbf16>, vector<256x128xf32> -> vector<256x128xf32>
    %32 = arith.addf %26, %31 : vector<256x128xf32>
    %33 = vector.extract_strided_slice %1 {offsets = [1, 2, 0], sizes = [16, 16, 128], strides = [1, 1, 1]} : vector<18x18x128xbf16> to vector<16x16x128xbf16>
    %34 = vector.shape_cast %33 : vector<16x16x128xbf16> to vector<256x128xbf16>
    %c5 = arith.constant 5 : index
    %c0_19 = arith.constant 0 : index
    %c0_20 = arith.constant 0 : index
    %35 = vector.load %arg2[%c5, %c0_19, %c0_20] : memref<9x128x128xbf16, #tpu.memory_space<vmem>>, vector<1x128x128xbf16>
    %36 = vector.shape_cast %35 : vector<1x128x128xbf16> to vector<128x128xbf16>
    %cst_21 = arith.constant dense<0.000000e+00> : vector<256x128xf32>
    %37 = tpu.matmul %34, %36, %cst_21 {dimension_numbers = #tpu.dot_dimension_numbers<[1], [0], [0], [1], [0, 0, 1, 1], [], []>} : vector<256x128xbf16>, vector<128x128xbf16>, vector<256x128xf32> -> vector<256x128xf32>
    %38 = arith.addf %32, %37 : vector<256x128xf32>
    %39 = vector.extract_strided_slice %1 {offsets = [2, 0, 0], sizes = [16, 16, 128], strides = [1, 1, 1]} : vector<18x18x128xbf16> to vector<16x16x128xbf16>
    %40 = vector.shape_cast %39 : vector<16x16x128xbf16> to vector<256x128xbf16>
    %c6 = arith.constant 6 : index
    %c0_22 = arith.constant 0 : index
    %c0_23 = arith.constant 0 : index
    %41 = vector.load %arg2[%c6, %c0_22, %c0_23] : memref<9x128x128xbf16, #tpu.memory_space<vmem>>, vector<1x128x128xbf16>
    %42 = vector.shape_cast %41 : vector<1x128x128xbf16> to vector<128x128xbf16>
    %cst_24 = arith.constant dense<0.000000e+00> : vector<256x128xf32>
    %43 = tpu.matmul %40, %42, %cst_24 {dimension_numbers = #tpu.dot_dimension_numbers<[1], [0], [0], [1], [0, 0, 1, 1], [], []>} : vector<256x128xbf16>, vector<128x128xbf16>, vector<256x128xf32> -> vector<256x128xf32>
    %44 = arith.addf %38, %43 : vector<256x128xf32>
    %45 = vector.extract_strided_slice %1 {offsets = [2, 1, 0], sizes = [16, 16, 128], strides = [1, 1, 1]} : vector<18x18x128xbf16> to vector<16x16x128xbf16>
    %46 = vector.shape_cast %45 : vector<16x16x128xbf16> to vector<256x128xbf16>
    %c7 = arith.constant 7 : index
    %c0_25 = arith.constant 0 : index
    %c0_26 = arith.constant 0 : index
    %47 = vector.load %arg2[%c7, %c0_25, %c0_26] : memref<9x128x128xbf16, #tpu.memory_space<vmem>>, vector<1x128x128xbf16>
    %48 = vector.shape_cast %47 : vector<1x128x128xbf16> to vector<128x128xbf16>
    %cst_27 = arith.constant dense<0.000000e+00> : vector<256x128xf32>
    %49 = tpu.matmul %46, %48, %cst_27 {dimension_numbers = #tpu.dot_dimension_numbers<[1], [0], [0], [1], [0, 0, 1, 1], [], []>} : vector<256x128xbf16>, vector<128x128xbf16>, vector<256x128xf32> -> vector<256x128xf32>
    %50 = arith.addf %44, %49 : vector<256x128xf32>
    %51 = vector.extract_strided_slice %1 {offsets = [2, 2, 0], sizes = [16, 16, 128], strides = [1, 1, 1]} : vector<18x18x128xbf16> to vector<16x16x128xbf16>
    %52 = vector.shape_cast %51 : vector<16x16x128xbf16> to vector<256x128xbf16>
    %c8 = arith.constant 8 : index
    %c0_28 = arith.constant 0 : index
    %c0_29 = arith.constant 0 : index
    %53 = vector.load %arg2[%c8, %c0_28, %c0_29] : memref<9x128x128xbf16, #tpu.memory_space<vmem>>, vector<1x128x128xbf16>
    %54 = vector.shape_cast %53 : vector<1x128x128xbf16> to vector<128x128xbf16>
    %cst_30 = arith.constant dense<0.000000e+00> : vector<256x128xf32>
    %55 = tpu.matmul %52, %54, %cst_30 {dimension_numbers = #tpu.dot_dimension_numbers<[1], [0], [0], [1], [0, 0, 1, 1], [], []>} : vector<256x128xbf16>, vector<128x128xbf16>, vector<256x128xf32> -> vector<256x128xf32>
    %56 = arith.addf %50, %55 : vector<256x128xf32>
    %c0_31 = arith.constant 0 : index
    %c0_32 = arith.constant 0 : index
    %57 = vector.load %arg3[%c0_31, %c0_32] : memref<1x128xf32, #tpu.memory_space<vmem>>, vector<1x128xf32>
    %58 = vector.broadcast %57 : vector<1x128xf32> to vector<256x128xf32>
    %59 = arith.addf %56, %58 : vector<256x128xf32>
    %60 = vector.shape_cast %59 : vector<256x128xf32> to vector<1x16x16x128xf32>
    %c0_33 = arith.constant 0 : index
    %c0_34 = arith.constant 0 : index
    %c0_35 = arith.constant 0 : index
    %c0_36 = arith.constant 0 : index
    %61 = vector.load %arg4[%c0_33, %c0_34, %c0_35, %c0_36] : memref<1x16x16x128xf32, #tpu.memory_space<vmem>>, vector<1x16x16x128xf32>
    tpu.vector_store %arg4[%c0_33, %c0_34, %c0_35, %c0_36], %60 {strides = array<i32>} : memref<1x16x16x128xf32, #tpu.memory_space<vmem>>, vector<1x16x16x128xf32>,
    %cst_37 = arith.constant dense<0.000000e+00> : vector<128xf32>
    %62 = vector.multi_reduction <add>, %59, %cst_37 [0] : vector<256x128xf32> to vector<128xf32>
    %63 = vector.shape_cast %62 : vector<128xf32> to vector<1x128xf32>
    %64 = arith.mulf %59, %59 : vector<256x128xf32>
    %cst_38 = arith.constant dense<0.000000e+00> : vector<128xf32>
    %65 = vector.multi_reduction <add>, %64, %cst_38 [0] : vector<256x128xf32> to vector<128xf32>
    %66 = vector.shape_cast %65 : vector<128xf32> to vector<1x128xf32>
    %67 = tpu.concatenate %63, %66 in 0 : vector<1x128xf32>, vector<1x128xf32> -> vector<2x128xf32>
    %68 = vector.shape_cast %67 : vector<2x128xf32> to vector<1x2x128xf32>
    %c0_39 = arith.constant 0 : index
    %c0_40 = arith.constant 0 : index
    %c0_41 = arith.constant 0 : index
    %69 = vector.load %arg5[%c0_39, %c0_40, %c0_41] : memref<1x2x128xf32, #tpu.memory_space<vmem>>, vector<1x2x128xf32>
    tpu.vector_store %arg5[%c0_39, %c0_40, %c0_41], %68 {strides = array<i32>} : memref<1x2x128xf32, #tpu.memory_space<vmem>>, vector<1x2x128xf32>,
    return
  }
  func.func @transform_0(%arg0: i32) -> (i32, i32, i32, i32) {
    %c0_i32 = arith.constant 0 : i32
    %c0_i32_0 = arith.constant 0 : i32
    %c0_i32_1 = arith.constant 0 : i32
    %c0_i32_2 = arith.constant 0 : i32
    return %arg0, %c0_i32, %c0_i32_0, %c0_i32_1 : i32, i32, i32, i32
  }
  func.func @transform_1(%arg0: i32) -> (i32, i32, i32) {
    %c0_i32 = arith.constant 0 : i32
    %c0_i32_0 = arith.constant 0 : i32
    %c0_i32_1 = arith.constant 0 : i32
    %c0_i32_2 = arith.constant 0 : i32
    return %c0_i32, %c0_i32_0, %c0_i32_1 : i32, i32, i32
  }
  func.func @transform_2(%arg0: i32) -> (i32, i32) {
    %c0_i32 = arith.constant 0 : i32
    %c0_i32_0 = arith.constant 0 : i32
    %c0_i32_1 = arith.constant 0 : i32
    return %c0_i32, %c0_i32_0 : i32, i32
  }
  func.func @transform_3(%arg0: i32) -> (i32, i32, i32, i32) {
    %c0_i32 = arith.constant 0 : i32
    %c0_i32_0 = arith.constant 0 : i32
    %c0_i32_1 = arith.constant 0 : i32
    %c0_i32_2 = arith.constant 0 : i32
    return %arg0, %c0_i32, %c0_i32_0, %c0_i32_1 : i32, i32, i32, i32
  }
  func.func @transform_4(%arg0: i32) -> (i32, i32, i32) {
    %c0_i32 = arith.constant 0 : i32
    %c0_i32_0 = arith.constant 0 : i32
    %c0_i32_1 = arith.constant 0 : i32
    return %arg0, %c0_i32, %c0_i32_0 : i32, i32, i32
  }
}

module attributes {stable_mosaic.version = 11 : i64} {
  func.func @_bn_relu_conv3x3_stats_kernel(%arg0: i32, %arg1: memref<1x16x16x128xf32, #tpu.memory_space<vmem>>, %arg2: memref<1x128xf32, #tpu.memory_space<vmem>>, %arg3: memref<1x128xf32, #tpu.memory_space<vmem>>, %arg4: memref<9x128x128xbf16, #tpu.memory_space<vmem>>, %arg5: memref<1x128xf32, #tpu.memory_space<vmem>>, %arg6: memref<1x16x16x128xf32, #tpu.memory_space<vmem>>, %arg7: memref<1x2x128xf32, #tpu.memory_space<vmem>>, %arg8: memref<18x18x128xbf16, #tpu.memory_space<vmem>>) attributes {dimension_semantics = [#tpu.dimension_semantics<parallel>], iteration_bounds = array<i64: 2>, scalar_prefetch = 0 : i64, scratch_operands = 1 : i64, tpu.core_type = #tpu.core_type<tc>, window_params = [{transform_indices = @transform_0, window_bounds = array<i64: 1, 16, 16, 128>}, {pipeline_mode = #tpu.pipeline_mode<synchronous>, transform_indices = @transform_1, window_bounds = array<i64: 1, 128>}, {pipeline_mode = #tpu.pipeline_mode<synchronous>, transform_indices = @transform_2, window_bounds = array<i64: 1, 128>}, {pipeline_mode = #tpu.pipeline_mode<synchronous>, transform_indices = @transform_3, window_bounds = array<i64: 9, 128, 128>}, {pipeline_mode = #tpu.pipeline_mode<synchronous>, transform_indices = @transform_4, window_bounds = array<i64: 1, 128>}, {transform_indices = @transform_5, window_bounds = array<i64: 1, 16, 16, 128>}, {transform_indices = @transform_6, window_bounds = array<i64: 1, 2, 128>}]} {
    %c0 = arith.constant 0 : index
    %c0_0 = arith.constant 0 : index
    %c0_1 = arith.constant 0 : index
    %c0_2 = arith.constant 0 : index
    %0 = vector.load %arg1[%c0, %c0_0, %c0_1, %c0_2] : memref<1x16x16x128xf32, #tpu.memory_space<vmem>>, vector<1x16x16x128xf32>
    %1 = vector.shape_cast %0 : vector<1x16x16x128xf32> to vector<16x16x128xf32>
    %c0_3 = arith.constant 0 : index
    %c0_4 = arith.constant 0 : index
    %2 = vector.load %arg2[%c0_3, %c0_4] : memref<1x128xf32, #tpu.memory_space<vmem>>, vector<1x128xf32>
    %3 = vector.shape_cast %2 : vector<1x128xf32> to vector<1x1x128xf32>
    %4 = vector.broadcast %3 : vector<1x1x128xf32> to vector<16x16x128xf32>
    %5 = arith.mulf %1, %4 : vector<16x16x128xf32>
    %c0_5 = arith.constant 0 : index
    %c0_6 = arith.constant 0 : index
    %6 = vector.load %arg3[%c0_5, %c0_6] : memref<1x128xf32, #tpu.memory_space<vmem>>, vector<1x128xf32>
    %7 = vector.shape_cast %6 : vector<1x128xf32> to vector<1x1x128xf32>
    %8 = vector.broadcast %7 : vector<1x1x128xf32> to vector<16x16x128xf32>
    %9 = arith.addf %5, %8 : vector<16x16x128xf32>
    %cst = arith.constant 0.000000e+00 : f32
    %10 = vector.broadcast %cst : f32 to vector<16x16x128xf32>
    %11 = arith.maximumf %9, %10 : vector<16x16x128xf32>
    %cst_7 = arith.constant 0.000000e+00 : bf16
    %12 = vector.broadcast %cst_7 : bf16 to vector<18x18x128xbf16>
    %c0_8 = arith.constant 0 : index
    %c0_9 = arith.constant 0 : index
    %c0_10 = arith.constant 0 : index
    %13 = vector.load %arg8[%c0_8, %c0_9, %c0_10] : memref<18x18x128xbf16, #tpu.memory_space<vmem>>, vector<18x18x128xbf16>
    tpu.vector_store %arg8[%c0_8, %c0_9, %c0_10], %12 {strides = array<i32>} : memref<18x18x128xbf16, #tpu.memory_space<vmem>>, vector<18x18x128xbf16>,
    %14 = arith.truncf %11 : vector<16x16x128xf32> to vector<16x16x128xbf16>
    %c1 = arith.constant 1 : index
    %c1_11 = arith.constant 1 : index
    %c0_12 = arith.constant 0 : index
    %15 = vector.load %arg8[%c1, %c1_11, %c0_12] : memref<18x18x128xbf16, #tpu.memory_space<vmem>>, vector<16x16x128xbf16>
    tpu.vector_store %arg8[%c1, %c1_11, %c0_12], %14 {strides = array<i32>} : memref<18x18x128xbf16, #tpu.memory_space<vmem>>, vector<16x16x128xbf16>,
    %c0_13 = arith.constant 0 : index
    %c0_14 = arith.constant 0 : index
    %c0_15 = arith.constant 0 : index
    %16 = vector.load %arg8[%c0_13, %c0_14, %c0_15] : memref<18x18x128xbf16, #tpu.memory_space<vmem>>, vector<18x18x128xbf16>
    %cst_16 = arith.constant 0.000000e+00 : f32
    %17 = vector.broadcast %cst_16 : f32 to vector<256x128xf32>
    %18 = vector.extract_strided_slice %16 {offsets = [0, 0, 0], sizes = [16, 16, 128], strides = [1, 1, 1]} : vector<18x18x128xbf16> to vector<16x16x128xbf16>
    %19 = vector.shape_cast %18 : vector<16x16x128xbf16> to vector<256x128xbf16>
    %c0_17 = arith.constant 0 : index
    %c0_18 = arith.constant 0 : index
    %c0_19 = arith.constant 0 : index
    %20 = vector.load %arg4[%c0_17, %c0_18, %c0_19] : memref<9x128x128xbf16, #tpu.memory_space<vmem>>, vector<1x128x128xbf16>
    %21 = vector.shape_cast %20 : vector<1x128x128xbf16> to vector<128x128xbf16>
    %cst_20 = arith.constant dense<0.000000e+00> : vector<256x128xf32>
    %22 = tpu.matmul %19, %21, %cst_20 {dimension_numbers = #tpu.dot_dimension_numbers<[1], [0], [0], [1], [0, 0, 1, 1], [], []>} : vector<256x128xbf16>, vector<128x128xbf16>, vector<256x128xf32> -> vector<256x128xf32>
    %23 = arith.addf %17, %22 : vector<256x128xf32>
    %24 = vector.extract_strided_slice %16 {offsets = [0, 1, 0], sizes = [16, 16, 128], strides = [1, 1, 1]} : vector<18x18x128xbf16> to vector<16x16x128xbf16>
    %25 = vector.shape_cast %24 : vector<16x16x128xbf16> to vector<256x128xbf16>
    %c1_21 = arith.constant 1 : index
    %c0_22 = arith.constant 0 : index
    %c0_23 = arith.constant 0 : index
    %26 = vector.load %arg4[%c1_21, %c0_22, %c0_23] : memref<9x128x128xbf16, #tpu.memory_space<vmem>>, vector<1x128x128xbf16>
    %27 = vector.shape_cast %26 : vector<1x128x128xbf16> to vector<128x128xbf16>
    %cst_24 = arith.constant dense<0.000000e+00> : vector<256x128xf32>
    %28 = tpu.matmul %25, %27, %cst_24 {dimension_numbers = #tpu.dot_dimension_numbers<[1], [0], [0], [1], [0, 0, 1, 1], [], []>} : vector<256x128xbf16>, vector<128x128xbf16>, vector<256x128xf32> -> vector<256x128xf32>
    %29 = arith.addf %23, %28 : vector<256x128xf32>
    %30 = vector.extract_strided_slice %16 {offsets = [0, 2, 0], sizes = [16, 16, 128], strides = [1, 1, 1]} : vector<18x18x128xbf16> to vector<16x16x128xbf16>
    %31 = vector.shape_cast %30 : vector<16x16x128xbf16> to vector<256x128xbf16>
    %c2 = arith.constant 2 : index
    %c0_25 = arith.constant 0 : index
    %c0_26 = arith.constant 0 : index
    %32 = vector.load %arg4[%c2, %c0_25, %c0_26] : memref<9x128x128xbf16, #tpu.memory_space<vmem>>, vector<1x128x128xbf16>
    %33 = vector.shape_cast %32 : vector<1x128x128xbf16> to vector<128x128xbf16>
    %cst_27 = arith.constant dense<0.000000e+00> : vector<256x128xf32>
    %34 = tpu.matmul %31, %33, %cst_27 {dimension_numbers = #tpu.dot_dimension_numbers<[1], [0], [0], [1], [0, 0, 1, 1], [], []>} : vector<256x128xbf16>, vector<128x128xbf16>, vector<256x128xf32> -> vector<256x128xf32>
    %35 = arith.addf %29, %34 : vector<256x128xf32>
    %36 = vector.extract_strided_slice %16 {offsets = [1, 0, 0], sizes = [16, 16, 128], strides = [1, 1, 1]} : vector<18x18x128xbf16> to vector<16x16x128xbf16>
    %37 = vector.shape_cast %36 : vector<16x16x128xbf16> to vector<256x128xbf16>
    %c3 = arith.constant 3 : index
    %c0_28 = arith.constant 0 : index
    %c0_29 = arith.constant 0 : index
    %38 = vector.load %arg4[%c3, %c0_28, %c0_29] : memref<9x128x128xbf16, #tpu.memory_space<vmem>>, vector<1x128x128xbf16>
    %39 = vector.shape_cast %38 : vector<1x128x128xbf16> to vector<128x128xbf16>
    %cst_30 = arith.constant dense<0.000000e+00> : vector<256x128xf32>
    %40 = tpu.matmul %37, %39, %cst_30 {dimension_numbers = #tpu.dot_dimension_numbers<[1], [0], [0], [1], [0, 0, 1, 1], [], []>} : vector<256x128xbf16>, vector<128x128xbf16>, vector<256x128xf32> -> vector<256x128xf32>
    %41 = arith.addf %35, %40 : vector<256x128xf32>
    %42 = vector.extract_strided_slice %16 {offsets = [1, 1, 0], sizes = [16, 16, 128], strides = [1, 1, 1]} : vector<18x18x128xbf16> to vector<16x16x128xbf16>
    %43 = vector.shape_cast %42 : vector<16x16x128xbf16> to vector<256x128xbf16>
    %c4 = arith.constant 4 : index
    %c0_31 = arith.constant 0 : index
    %c0_32 = arith.constant 0 : index
    %44 = vector.load %arg4[%c4, %c0_31, %c0_32] : memref<9x128x128xbf16, #tpu.memory_space<vmem>>, vector<1x128x128xbf16>
    %45 = vector.shape_cast %44 : vector<1x128x128xbf16> to vector<128x128xbf16>
    %cst_33 = arith.constant dense<0.000000e+00> : vector<256x128xf32>
    %46 = tpu.matmul %43, %45, %cst_33 {dimension_numbers = #tpu.dot_dimension_numbers<[1], [0], [0], [1], [0, 0, 1, 1], [], []>} : vector<256x128xbf16>, vector<128x128xbf16>, vector<256x128xf32> -> vector<256x128xf32>
    %47 = arith.addf %41, %46 : vector<256x128xf32>
    %48 = vector.extract_strided_slice %16 {offsets = [1, 2, 0], sizes = [16, 16, 128], strides = [1, 1, 1]} : vector<18x18x128xbf16> to vector<16x16x128xbf16>
    %49 = vector.shape_cast %48 : vector<16x16x128xbf16> to vector<256x128xbf16>
    %c5 = arith.constant 5 : index
    %c0_34 = arith.constant 0 : index
    %c0_35 = arith.constant 0 : index
    %50 = vector.load %arg4[%c5, %c0_34, %c0_35] : memref<9x128x128xbf16, #tpu.memory_space<vmem>>, vector<1x128x128xbf16>
    %51 = vector.shape_cast %50 : vector<1x128x128xbf16> to vector<128x128xbf16>
    %cst_36 = arith.constant dense<0.000000e+00> : vector<256x128xf32>
    %52 = tpu.matmul %49, %51, %cst_36 {dimension_numbers = #tpu.dot_dimension_numbers<[1], [0], [0], [1], [0, 0, 1, 1], [], []>} : vector<256x128xbf16>, vector<128x128xbf16>, vector<256x128xf32> -> vector<256x128xf32>
    %53 = arith.addf %47, %52 : vector<256x128xf32>
    %54 = vector.extract_strided_slice %16 {offsets = [2, 0, 0], sizes = [16, 16, 128], strides = [1, 1, 1]} : vector<18x18x128xbf16> to vector<16x16x128xbf16>
    %55 = vector.shape_cast %54 : vector<16x16x128xbf16> to vector<256x128xbf16>
    %c6 = arith.constant 6 : index
    %c0_37 = arith.constant 0 : index
    %c0_38 = arith.constant 0 : index
    %56 = vector.load %arg4[%c6, %c0_37, %c0_38] : memref<9x128x128xbf16, #tpu.memory_space<vmem>>, vector<1x128x128xbf16>
    %57 = vector.shape_cast %56 : vector<1x128x128xbf16> to vector<128x128xbf16>
    %cst_39 = arith.constant dense<0.000000e+00> : vector<256x128xf32>
    %58 = tpu.matmul %55, %57, %cst_39 {dimension_numbers = #tpu.dot_dimension_numbers<[1], [0], [0], [1], [0, 0, 1, 1], [], []>} : vector<256x128xbf16>, vector<128x128xbf16>, vector<256x128xf32> -> vector<256x128xf32>
    %59 = arith.addf %53, %58 : vector<256x128xf32>
    %60 = vector.extract_strided_slice %16 {offsets = [2, 1, 0], sizes = [16, 16, 128], strides = [1, 1, 1]} : vector<18x18x128xbf16> to vector<16x16x128xbf16>
    %61 = vector.shape_cast %60 : vector<16x16x128xbf16> to vector<256x128xbf16>
    %c7 = arith.constant 7 : index
    %c0_40 = arith.constant 0 : index
    %c0_41 = arith.constant 0 : index
    %62 = vector.load %arg4[%c7, %c0_40, %c0_41] : memref<9x128x128xbf16, #tpu.memory_space<vmem>>, vector<1x128x128xbf16>
    %63 = vector.shape_cast %62 : vector<1x128x128xbf16> to vector<128x128xbf16>
    %cst_42 = arith.constant dense<0.000000e+00> : vector<256x128xf32>
    %64 = tpu.matmul %61, %63, %cst_42 {dimension_numbers = #tpu.dot_dimension_numbers<[1], [0], [0], [1], [0, 0, 1, 1], [], []>} : vector<256x128xbf16>, vector<128x128xbf16>, vector<256x128xf32> -> vector<256x128xf32>
    %65 = arith.addf %59, %64 : vector<256x128xf32>
    %66 = vector.extract_strided_slice %16 {offsets = [2, 2, 0], sizes = [16, 16, 128], strides = [1, 1, 1]} : vector<18x18x128xbf16> to vector<16x16x128xbf16>
    %67 = vector.shape_cast %66 : vector<16x16x128xbf16> to vector<256x128xbf16>
    %c8 = arith.constant 8 : index
    %c0_43 = arith.constant 0 : index
    %c0_44 = arith.constant 0 : index
    %68 = vector.load %arg4[%c8, %c0_43, %c0_44] : memref<9x128x128xbf16, #tpu.memory_space<vmem>>, vector<1x128x128xbf16>
    %69 = vector.shape_cast %68 : vector<1x128x128xbf16> to vector<128x128xbf16>
    %cst_45 = arith.constant dense<0.000000e+00> : vector<256x128xf32>
    %70 = tpu.matmul %67, %69, %cst_45 {dimension_numbers = #tpu.dot_dimension_numbers<[1], [0], [0], [1], [0, 0, 1, 1], [], []>} : vector<256x128xbf16>, vector<128x128xbf16>, vector<256x128xf32> -> vector<256x128xf32>
    %71 = arith.addf %65, %70 : vector<256x128xf32>
    %c0_46 = arith.constant 0 : index
    %c0_47 = arith.constant 0 : index
    %72 = vector.load %arg5[%c0_46, %c0_47] : memref<1x128xf32, #tpu.memory_space<vmem>>, vector<1x128xf32>
    %73 = vector.broadcast %72 : vector<1x128xf32> to vector<256x128xf32>
    %74 = arith.addf %71, %73 : vector<256x128xf32>
    %75 = vector.shape_cast %74 : vector<256x128xf32> to vector<1x16x16x128xf32>
    %c0_48 = arith.constant 0 : index
    %c0_49 = arith.constant 0 : index
    %c0_50 = arith.constant 0 : index
    %c0_51 = arith.constant 0 : index
    %76 = vector.load %arg6[%c0_48, %c0_49, %c0_50, %c0_51] : memref<1x16x16x128xf32, #tpu.memory_space<vmem>>, vector<1x16x16x128xf32>
    tpu.vector_store %arg6[%c0_48, %c0_49, %c0_50, %c0_51], %75 {strides = array<i32>} : memref<1x16x16x128xf32, #tpu.memory_space<vmem>>, vector<1x16x16x128xf32>,
    %cst_52 = arith.constant dense<0.000000e+00> : vector<128xf32>
    %77 = vector.multi_reduction <add>, %74, %cst_52 [0] : vector<256x128xf32> to vector<128xf32>
    %78 = vector.shape_cast %77 : vector<128xf32> to vector<1x128xf32>
    %79 = arith.mulf %74, %74 : vector<256x128xf32>
    %cst_53 = arith.constant dense<0.000000e+00> : vector<128xf32>
    %80 = vector.multi_reduction <add>, %79, %cst_53 [0] : vector<256x128xf32> to vector<128xf32>
    %81 = vector.shape_cast %80 : vector<128xf32> to vector<1x128xf32>
    %82 = tpu.concatenate %78, %81 in 0 : vector<1x128xf32>, vector<1x128xf32> -> vector<2x128xf32>
    %83 = vector.shape_cast %82 : vector<2x128xf32> to vector<1x2x128xf32>
    %c0_54 = arith.constant 0 : index
    %c0_55 = arith.constant 0 : index
    %c0_56 = arith.constant 0 : index
    %84 = vector.load %arg7[%c0_54, %c0_55, %c0_56] : memref<1x2x128xf32, #tpu.memory_space<vmem>>, vector<1x2x128xf32>
    tpu.vector_store %arg7[%c0_54, %c0_55, %c0_56], %83 {strides = array<i32>} : memref<1x2x128xf32, #tpu.memory_space<vmem>>, vector<1x2x128xf32>,
    return
  }
  func.func @transform_0(%arg0: i32) -> (i32, i32, i32, i32) {
    %c0_i32 = arith.constant 0 : i32
    %c0_i32_0 = arith.constant 0 : i32
    %c0_i32_1 = arith.constant 0 : i32
    %c0_i32_2 = arith.constant 0 : i32
    return %arg0, %c0_i32, %c0_i32_0, %c0_i32_1 : i32, i32, i32, i32
  }
  func.func @transform_1(%arg0: i32) -> (i32, i32) {
    %c0_i32 = arith.constant 0 : i32
    %c0_i32_0 = arith.constant 0 : i32
    %c0_i32_1 = arith.constant 0 : i32
    return %c0_i32, %c0_i32_0 : i32, i32
  }
  func.func @transform_2(%arg0: i32) -> (i32, i32) {
    %c0_i32 = arith.constant 0 : i32
    %c0_i32_0 = arith.constant 0 : i32
    %c0_i32_1 = arith.constant 0 : i32
    return %c0_i32, %c0_i32_0 : i32, i32
  }
  func.func @transform_3(%arg0: i32) -> (i32, i32, i32) {
    %c0_i32 = arith.constant 0 : i32
    %c0_i32_0 = arith.constant 0 : i32
    %c0_i32_1 = arith.constant 0 : i32
    %c0_i32_2 = arith.constant 0 : i32
    return %c0_i32, %c0_i32_0, %c0_i32_1 : i32, i32, i32
  }
  func.func @transform_4(%arg0: i32) -> (i32, i32) {
    %c0_i32 = arith.constant 0 : i32
    %c0_i32_0 = arith.constant 0 : i32
    %c0_i32_1 = arith.constant 0 : i32
    return %c0_i32, %c0_i32_0 : i32, i32
  }
  func.func @transform_5(%arg0: i32) -> (i32, i32, i32, i32) {
    %c0_i32 = arith.constant 0 : i32
    %c0_i32_0 = arith.constant 0 : i32
    %c0_i32_1 = arith.constant 0 : i32
    %c0_i32_2 = arith.constant 0 : i32
    return %arg0, %c0_i32, %c0_i32_0, %c0_i32_1 : i32, i32, i32, i32
  }
  func.func @transform_6(%arg0: i32) -> (i32, i32, i32) {
    %c0_i32 = arith.constant 0 : i32
    %c0_i32_0 = arith.constant 0 : i32
    %c0_i32_1 = arith.constant 0 : i32
    return %arg0, %c0_i32, %c0_i32_0 : i32, i32, i32
  }
}

module attributes {stable_mosaic.version = 11 : i64} {
  func.func @_bn_add_relu_kernel(%arg0: i32, %arg1: memref<1x16x16x128xf32, #tpu.memory_space<vmem>>, %arg2: memref<1x128xf32, #tpu.memory_space<vmem>>, %arg3: memref<1x128xf32, #tpu.memory_space<vmem>>, %arg4: memref<1x16x16x128xf32, #tpu.memory_space<vmem>>, %arg5: memref<1x16x16x128xf32, #tpu.memory_space<vmem>>) attributes {dimension_semantics = [#tpu.dimension_semantics<parallel>], iteration_bounds = array<i64: 2>, scalar_prefetch = 0 : i64, scratch_operands = 0 : i64, tpu.core_type = #tpu.core_type<tc>, window_params = [{transform_indices = @transform_0, window_bounds = array<i64: 1, 16, 16, 128>}, {pipeline_mode = #tpu.pipeline_mode<synchronous>, transform_indices = @transform_1, window_bounds = array<i64: 1, 128>}, {pipeline_mode = #tpu.pipeline_mode<synchronous>, transform_indices = @transform_2, window_bounds = array<i64: 1, 128>}, {transform_indices = @transform_3, window_bounds = array<i64: 1, 16, 16, 128>}, {transform_indices = @transform_4, window_bounds = array<i64: 1, 16, 16, 128>}]} {
    %c0 = arith.constant 0 : index
    %c0_0 = arith.constant 0 : index
    %c0_1 = arith.constant 0 : index
    %c0_2 = arith.constant 0 : index
    %0 = vector.load %arg1[%c0, %c0_0, %c0_1, %c0_2] : memref<1x16x16x128xf32, #tpu.memory_space<vmem>>, vector<1x16x16x128xf32>
    %c0_3 = arith.constant 0 : index
    %c0_4 = arith.constant 0 : index
    %1 = vector.load %arg2[%c0_3, %c0_4] : memref<1x128xf32, #tpu.memory_space<vmem>>, vector<1x128xf32>
    %2 = vector.shape_cast %1 : vector<1x128xf32> to vector<1x1x1x128xf32>
    %3 = vector.broadcast %2 : vector<1x1x1x128xf32> to vector<1x16x16x128xf32>
    %4 = arith.mulf %0, %3 : vector<1x16x16x128xf32>
    %c0_5 = arith.constant 0 : index
    %c0_6 = arith.constant 0 : index
    %5 = vector.load %arg3[%c0_5, %c0_6] : memref<1x128xf32, #tpu.memory_space<vmem>>, vector<1x128xf32>
    %6 = vector.shape_cast %5 : vector<1x128xf32> to vector<1x1x1x128xf32>
    %7 = vector.broadcast %6 : vector<1x1x1x128xf32> to vector<1x16x16x128xf32>
    %8 = arith.addf %4, %7 : vector<1x16x16x128xf32>
    %c0_7 = arith.constant 0 : index
    %c0_8 = arith.constant 0 : index
    %c0_9 = arith.constant 0 : index
    %c0_10 = arith.constant 0 : index
    %9 = vector.load %arg4[%c0_7, %c0_8, %c0_9, %c0_10] : memref<1x16x16x128xf32, #tpu.memory_space<vmem>>, vector<1x16x16x128xf32>
    %10 = arith.addf %8, %9 : vector<1x16x16x128xf32>
    %cst = arith.constant 0.000000e+00 : f32
    %11 = vector.broadcast %cst : f32 to vector<1x16x16x128xf32>
    %12 = arith.maximumf %10, %11 : vector<1x16x16x128xf32>
    %c0_11 = arith.constant 0 : index
    %c0_12 = arith.constant 0 : index
    %c0_13 = arith.constant 0 : index
    %c0_14 = arith.constant 0 : index
    %13 = vector.load %arg5[%c0_11, %c0_12, %c0_13, %c0_14] : memref<1x16x16x128xf32, #tpu.memory_space<vmem>>, vector<1x16x16x128xf32>
    tpu.vector_store %arg5[%c0_11, %c0_12, %c0_13, %c0_14], %12 {strides = array<i32>} : memref<1x16x16x128xf32, #tpu.memory_space<vmem>>, vector<1x16x16x128xf32>,
    return
  }
  func.func @transform_0(%arg0: i32) -> (i32, i32, i32, i32) {
    %c0_i32 = arith.constant 0 : i32
    %c0_i32_0 = arith.constant 0 : i32
    %c0_i32_1 = arith.constant 0 : i32
    %c0_i32_2 = arith.constant 0 : i32
    return %arg0, %c0_i32, %c0_i32_0, %c0_i32_1 : i32, i32, i32, i32
  }
  func.func @transform_1(%arg0: i32) -> (i32, i32) {
    %c0_i32 = arith.constant 0 : i32
    %c0_i32_0 = arith.constant 0 : i32
    %c0_i32_1 = arith.constant 0 : i32
    return %c0_i32, %c0_i32_0 : i32, i32
  }
  func.func @transform_2(%arg0: i32) -> (i32, i32) {
    %c0_i32 = arith.constant 0 : i32
    %c0_i32_0 = arith.constant 0 : i32
    %c0_i32_1 = arith.constant 0 : i32
    return %c0_i32, %c0_i32_0 : i32, i32
  }
  func.func @transform_3(%arg0: i32) -> (i32, i32, i32, i32) {
    %c0_i32 = arith.constant 0 : i32
    %c0_i32_0 = arith.constant 0 : i32
    %c0_i32_1 = arith.constant 0 : i32
    %c0_i32_2 = arith.constant 0 : i32
    return %arg0, %c0_i32, %c0_i32_0, %c0_i32_1 : i32, i32, i32, i32
  }
  func.func @transform_4(%arg0: i32) -> (i32, i32, i32, i32) {
    %c0_i32 = arith.constant 0 : i32
    %c0_i32_0 = arith.constant 0 : i32
    %c0_i32_1 = arith.constant 0 : i32
    %c0_i32_2 = arith.constant 0 : i32
    return %arg0, %c0_i32, %c0_i32_0, %c0_i32_1 : i32, i32, i32, i32
  }
}

</mosaic_0001>

<bundles_post_ra>
// kernel: residual_block_forward.5
= control target key start
LH: loop header
LB: loop body
LE: loop exit
PB: predicated region body
PF: predicated region fallthrough
CT: control target
= control target key end

     0   :  { %s582_s15 = smov 0   ;;  %s783_s0 = inlined_call_operand.vmem [shape: f32[2,16,16,128], index: 0, kind: input, shape index: {}]   ;;  %s784_s1 = inlined_call_operand.vmem [shape: f32[1,128], index: 1, kind: input, shape index: {}]   ;;  %s785_s2 = inlined_call_operand.vmem [shape: f32[1,128], index: 2, kind: input, shape index: {}]   ;;  %s786_s3 = inlined_call_operand.vmem [shape: f32[2,16,16,128], index: 3, kind: input, shape index: {}]   ;;  %s787_s4 = inlined_call_operand.vmem [shape: f32[2,16,16,128], index: 4, kind: output, shape index: {}]  }
   0x1 LB: > { %s523_s16 = sadd.s32 4294967295, %s555_s15   ;;  %p527_p0 = scmp.ge.s32.totalorder %s555_s15, 1  ;;  %s555_s15 = sphi %s582_s15, %s14_s15  }
   0x2   : > { %p172_p1 = scmp.lt.s32.totalorder %s555_s15, 3 }
   0x4   : > { %p173_p2 = pnand %p527_p0, %p172_p1 }
   0x5   : > { %p203_p3 = scmp.lt.s32.totalorder (!%p173_p2), %s523_s16, 1  ;;  %v595_v0 = vld [vmem:[%s784_s1] ss:$0 sm:$0xff] (!%p173_p2) }
   0x6   : > { %176 = sbr.rel (%p173_p2) target bundleno = 55 (0x37), region = 36  ;;  %v613_v2 = vld [vmem:[%s785_s2] ss:$0 sm:$0xff] (!%p173_p2) }
   0xd   : > { %s789_s16 = smov (!%p203_p3, %s523_s16), 1 }
   0xe   : > { %s590_s17 = sshll.u32 %s789_s16, 8 }
   0xf   : > { %s601_s22 = scalar_lea.vmem %s783_s0, %s590_s17  ;;  %s607_s25 = scalar_lea.vmem %s786_s3, %s590_s17 }
  0x10   : > { %v218_v1 = vld [vmem:[%s601_s22] sm:$0xff]  ;;  %v219_v3 = vld [vmem:[%s601_s22 + $0x8] sm:$0xff]  ;;  %v220_v7 = vld [vmem:[%s601_s22 + $0x10] sm:$0xff]  ;;  %s643_s30 = scalar_lea.vmem %s787_s4, %s590_s17 }
  0x11   : > { %v257_v4 = vmul.f32 %v595_v0, %v218_v1  ;;  %v328_v5 = vld [vmem:[%s607_s25] sm:$0xff]  ;;  %v258_v6 = vmul.f32 %v595_v0, %v219_v3  ;;  %v329_v8 = vld [vmem:[%s607_s25 + $0x8] sm:$0xff]  ;;  %v259_v9 = vmul.f32 %v595_v0, %v220_v7  ;;  %v221_v10 = vld [vmem:[%s601_s22 + $0x18] sm:$0xff] }
  0x12   : > { %v222_v11 = vld [vmem:[%s601_s22 + $0x20] sm:$0xff]  ;;  %v330_v14 = vld [vmem:[%s607_s25 + $0x10] sm:$0xff]  ;;  %v260_v15 = vmul.f32 %v595_v0, %v221_v10  ;;  %v331_v16 = vld [vmem:[%s607_s25 + $0x18] sm:$0xff] }
  0x13   : > { %v296_v12 = vadd.f32 %v613_v2, %v257_v4  ;;  %v297_v13 = vadd.f32 %v613_v2, %v258_v6  ;;  %v261_v17 = vmul.f32 %v595_v0, %v222_v11  ;;  %v223_v18 = vld [vmem:[%s601_s22 + $0x28] sm:$0xff]  ;;  %v298_v19 = vadd.f32 %v613_v2, %v259_v9  ;;  %v332_v20 = vld [vmem:[%s607_s25 + $0x20] sm:$0xff]  ;;  %v224_v22 = vld [vmem:[%s601_s22 + $0x30] sm:$0xff] }
  0x14   : > { %v262_v21 = vmul.f32 %v595_v0, %v223_v18  ;;  %v225_v23 = vld [vmem:[%s601_s22 + $0x38] sm:$0xff]  ;;  %v299_v26 = vadd.f32 %v613_v2, %v260_v15  ;;  %v333_v28 = vld [vmem:[%s607_s25 + $0x28] sm:$0xff]  ;;  %v263_v31 = vmul.f32 %v595_v0, %v224_v22  ;;  %v226_v33 = vld [vmem:[%s601_s22 + $0x40] sm:$0xff] }
  0x15   : > { %v360_v24 = vadd.f32 %v328_v5, %v296_v12  ;;  %v361_v25 = vadd.f32 %v329_v8, %v297_v13  ;;  %v300_v27 = vadd.f32 %v613_v2, %v261_v17  ;;  %v362_v29 = vadd.f32 %v330_v14, %v298_v19  ;;  %v227_v34 = vld [vmem:[%s601_s22 + $0x48] sm:$0xff]  ;;  %v334_v39 = vld [vmem:[%s607_s25 + $0x30] sm:$0xff]  ;;  %v335_v40 = vld [vmem:[%s607_s25 + $0x38] sm:$0xff] }
  0x16   : > { %v301_v30 = vadd.f32 %v613_v2, %v262_v21  ;;  %v264_v32 = vmul.f32 %v595_v0, %v225_v23  ;;  %v363_v37 = vadd.f32 %v331_v16, %v299_v26  ;;  %v228_v41 = vld [vmem:[%s601_s22 + $0x50] sm:$0xff]  ;;  %v302_v44 = vadd.f32 %v613_v2, %v263_v31  ;;  %v229_v46 = vld [vmem:[%s601_s22 + $0x58] sm:$0xff]  ;;  %v230_v47 = vld [vmem:[%s601_s22 + $0x60] sm:$0xff] }
  0x17   : > { %v392_v35 = vmax.f32 %v360_v24, 0.0  ;;  %v393_v36 = vmax.f32 %v361_v25, 0.0  ;;  %v364_v38 = vadd.f32 %v332_v20, %v300_v27  ;;  %v394_v42 = vmax.f32 %v362_v29, 0.0  ;;  %v231_v52 = vld [vmem:[%s601_s22 + $0x68] sm:$0xff]  ;;  %v336_v56 = vld [vmem:[%s607_s25 + $0x40] sm:$0xff]  ;;  %v338_v61 = vld [vmem:[%s607_s25 + $0x50] sm:$0xff] }
  0x18   : > { %v365_v43 = vadd.f32 %v333_v28, %v301_v30  ;;  %v303_v45 = vadd.f32 %v613_v2, %v264_v32  ;;  %v395_v48 = vmax.f32 %v363_v37, 0.0  ;;  %v265_v50 = vmul.f32 %v595_v0, %v226_v33  ;;  %v337_v57 = vld [vmem:[%s607_s25 + $0x48] sm:$0xff]  ;;  %v232_v1 = vld [vmem:[%s601_s22 + $0x70] sm:$0xff]  ;;  %v233_v3 = vld [vmem:[%s601_s22 + $0x78] sm:$0xff] }
  0x19   : > { %424 = vst [vmem:[%s643_s30] sm:$0xff] %v392_v35  ;;  %425 = vst [vmem:[%s643_s30 + $0x8] sm:$0xff] %v393_v36  ;;  %v396_v49 = vmax.f32 %v364_v38, 0.0  ;;  %v266_v51 = vmul.f32 %v595_v0, %v227_v34  ;;  %v366_v54 = vadd.f32 %v334_v39, %v302_v44  ;;  %v267_v58 = vmul.f32 %v595_v0, %v228_v41  ;;  %v339_v7 = vld [vmem:[%s607_s25 + $0x58] sm:$0xff]  ;;  %v340_v8 = vld [vmem:[%s607_s25 + $0x60] sm:$0xff] }
  0x1a   : > { %426 = vst [vmem:[%s643_s30 + $0x10] sm:$0xff] %v394_v42  ;;  %v397_v53 = vmax.f32 %v365_v43, 0.0  ;;  %v367_v55 = vadd.f32 %v335_v40, %v303_v45  ;;  %427 = vst [vmem:[%s643_s30 + $0x18] sm:$0xff] %v395_v48  ;;  %v304_v59 = vadd.f32 %v613_v2, %v265_v50  ;;  %v268_v62 = vmul.f32 %v595_v0, %v229_v46  ;;  %v341_v14 = vld [vmem:[%s607_s25 + $0x68] sm:$0xff]  ;;  %v234_v19 = vld [vmem:[%s601_s22 + $0x80] sm:$0xff] }
  0x1b   : > { %428 = vst [vmem:[%s643_s30 + $0x20] sm:$0xff] %v396_v49  ;;  %v305_v60 = vadd.f32 %v613_v2, %v266_v51  ;;  %v269_v63 = vmul.f32 %v595_v0, %v230_v47  ;;  %v398_v4 = vmax.f32 %v366_v54, 0.0  ;;  %v306_v6 = vadd.f32 %v613_v2, %v267_v58  ;;  %v235_v20 = vld [vmem:[%s601_s22 + $0x88] sm:$0xff]  ;;  %v342_v25 = vld [vmem:[%s607_s25 + $0x70] sm:$0xff]  ;;  %v343_v26 = vld [vmem:[%s607_s25 + $0x78] sm:$0xff] }
  0x1c   : > { %429 = vst [vmem:[%s643_s30 + $0x28] sm:$0xff] %v397_v53  ;;  %v399_v5 = vmax.f32 %v367_v55, 0.0  ;;  %v270_v9 = vmul.f32 %v595_v0, %v231_v52  ;;  %v368_v10 = vadd.f32 %v336_v56, %v304_v59  ;;  %v307_v12 = vadd.f32 %v613_v2, %v268_v62  ;;  %v236_v27 = vld [vmem:[%s601_s22 + $0x90] sm:$0xff]  ;;  %v237_v32 = vld [vmem:[%s601_s22 + $0x98] sm:$0xff]  ;;  %v238_v33 = vld [vmem:[%s601_s22 + $0xa0] sm:$0xff] }
  0x1d   : > { %v369_v11 = vadd.f32 %v337_v57, %v305_v60  ;;  %v308_v13 = vadd.f32 %v613_v2, %v269_v63  ;;  %430 = vst [vmem:[%s643_s30 + $0x30] sm:$0xff] %v398_v4  ;;  %v370_v15 = vadd.f32 %v338_v61, %v306_v6  ;;  %v271_v17 = vmul.f32 %v595_v0, %v232_v1  ;;  %v239_v38 = vld [vmem:[%s601_s22 + $0xa8] sm:$0xff]  ;;  %v344_v42 = vld [vmem:[%s607_s25 + $0x80] sm:$0xff]  ;;  %v346_v47 = vld [vmem:[%s607_s25 + $0x90] sm:$0xff] }
  0x1e   : > { %431 = vst [vmem:[%s643_s30 + $0x38] sm:$0xff] %v399_v5  ;;  %v309_v16 = vadd.f32 %v613_v2, %v270_v9  ;;  %v272_v18 = vmul.f32 %v595_v0, %v233_v3  ;;  %v400_v21 = vmax.f32 %v368_v10, 0.0  ;;  %v371_v23 = vadd.f32 %v339_v7, %v307_v12  ;;  %v345_v43 = vld [vmem:[%s607_s25 + $0x88] sm:$0xff]  ;;  %v240_v50 = vld [vmem:[%s601_s22 + $0xb0] sm:$0xff]  ;;  %v241_v51 = vld [vmem:[%s601_s22 + $0xb8] sm:$0xff] }
  0x1f   : > { %v401_v22 = vmax.f32 %v369_v11, 0.0  ;;  %v372_v24 = vadd.f32 %v340_v8, %v308_v13  ;;  %v402_v28 = vmax.f32 %v370_v15, 0.0  ;;  %v310_v30 = vadd.f32 %v613_v2, %v271_v17  ;;  %v347_v55 = vld [vmem:[%s607_s25 + $0x98] sm:$0xff]  ;;  %v348_v56 = vld [vmem:[%s607_s25 + $0xa0] sm:$0xff]  ;;  %v349_v62 = vld [vmem:[%s607_s25 + $0xa8] sm:$0xff] }
  0x20   : > { %v373_v29 = vadd.f32 %v341_v14, %v309_v16  ;;  %v311_v31 = vadd.f32 %v613_v2, %v272_v18  ;;  %432 = vst [vmem:[%s643_s30 + $0x40] sm:$0xff] %v400_v21  ;;  %v403_v34 = vmax.f32 %v371_v23, 0.0  ;;  %v273_v36 = vmul.f32 %v595_v0, %v234_v19  ;;  %v242_v5 = vld [vmem:[%s601_s22 + $0xc0] sm:$0xff]  ;;  %v243_v6 = vld [vmem:[%s601_s22 + $0xc8] sm:$0xff]  ;;  %v350_v11 = vld [vmem:[%s607_s25 + $0xb0] sm:$0xff] }
  0x21   : > { %433 = vst [vmem:[%s643_s30 + $0x48] sm:$0xff] %v401_v22  ;;  %v404_v35 = vmax.f32 %v372_v24, 0.0  ;;  %v274_v37 = vmul.f32 %v595_v0, %v235_v20  ;;  %434 = vst [vmem:[%s643_s30 + $0x50] sm:$0xff] %v402_v28  ;;  %v374_v40 = vadd.f32 %v342_v25, %v310_v30  ;;  %v275_v44 = vmul.f32 %v595_v0, %v236_v27  ;;  %v351_v12 = vld [vmem:[%s607_s25 + $0xb8] sm:$0xff]  ;;  %v244_v13 = vld [vmem:[%s601_s22 + $0xd0] sm:$0xff] }
  0x22   : > { %v405_v39 = vmax.f32 %v373_v29, 0.0  ;;  %v375_v41 = vadd.f32 %v343_v26, %v311_v31  ;;  %435 = vst [vmem:[%s643_s30 + $0x58] sm:$0xff] %v403_v34  ;;  %v312_v45 = vadd.f32 %v613_v2, %v273_v36  ;;  %v276_v48 = vmul.f32 %v595_v0, %v237_v32  ;;  %v245_v18 = vld [vmem:[%s601_s22 + $0xd8] sm:$0xff]  ;;  %v246_v19 = vld [vmem:[%s601_s22 + $0xe0] sm:$0xff]  ;;  %v247_v24 = vld [vmem:[%s601_s22 + $0xe8] sm:$0xff] }
  0x23   : > { %436 = vst [vmem:[%s643_s30 + $0x60] sm:$0xff] %v404_v35  ;;  %v313_v46 = vadd.f32 %v613_v2, %v274_v37  ;;  %v277_v49 = vmul.f32 %v595_v0, %v238_v33  ;;  %v406_v52 = vmax.f32 %v374_v40, 0.0  ;;  %v314_v54 = vadd.f32 %v613_v2, %v275_v44  ;;  %v352_v28 = vld [vmem:[%s607_s25 + $0xc0] sm:$0xff]  ;;  %v353_v29 = vld [vmem:[%s607_s25 + $0xc8] sm:$0xff]  ;;  %v354_v33 = vld [vmem:[%s607_s25 + $0xd0] sm:$0xff] }
  0x24   : > { %437 = vst [vmem:[%s643_s30 + $0x68] sm:$0xff] %v405_v39  ;;  %v407_v53 = vmax.f32 %v375_v41, 0.0  ;;  %v278_v57 = vmul.f32 %v595_v0, %v239_v38  ;;  %v376_v58 = vadd.f32 %v344_v42, %v312_v45  ;;  %v315_v60 = vadd.f32 %v613_v2, %v276_v48  ;;  %v248_v36 = vld [vmem:[%s601_s22 + $0xf0] sm:$0xff]  ;;  %v249_v37 = vld [vmem:[%s601_s22 + $0xf8] sm:$0xff]  ;;  %v356_v42 = vld [vmem:[%s607_s25 + $0xe0] sm:$0xff] }
  0x25   : > { %v377_v59 = vadd.f32 %v345_v43, %v313_v46  ;;  %v316_v61 = vadd.f32 %v613_v2, %v277_v49  ;;  %438 = vst [vmem:[%s643_s30 + $0x70] sm:$0xff] %v406_v52  ;;  %v378_v63 = vadd.f32 %v346_v47, %v314_v54  ;;  %v279_v3 = vmul.f32 %v595_v0, %v240_v50  ;;  %v355_v41 = vld [vmem:[%s607_s25 + $0xd8] sm:$0xff]  ;;  %v357_v48 = vld [vmem:[%s607_s25 + $0xe8] sm:$0xff] }
  0x26   : > { %439 = vst [vmem:[%s643_s30 + $0x78] sm:$0xff] %v407_v53  ;;  %v317_v1 = vadd.f32 %v613_v2, %v278_v57  ;;  %v280_v4 = vmul.f32 %v595_v0, %v241_v51  ;;  %v408_v7 = vmax.f32 %v376_v58, 0.0  ;;  %v379_v9 = vadd.f32 %v347_v55, %v315_v60  ;;  %v358_v57 = vld [vmem:[%s607_s25 + $0xf0] sm:$0xff]  ;;  %v359_v58 = vld [vmem:[%s607_s25 + $0xf8] sm:$0xff] }
  0x27   : > { %v409_v8 = vmax.f32 %v377_v59, 0.0  ;;  %v380_v10 = vadd.f32 %v348_v56, %v316_v61  ;;  %v410_v14 = vmax.f32 %v378_v63, 0.0  ;;  %v318_v16 = vadd.f32 %v613_v2, %v279_v3 }
  0x28   : > { %v381_v15 = vadd.f32 %v349_v62, %v317_v1  ;;  %v319_v17 = vadd.f32 %v613_v2, %v280_v4  ;;  %440 = vst [vmem:[%s643_s30 + $0x80] sm:$0xff] %v408_v7  ;;  %v411_v20 = vmax.f32 %v379_v9, 0.0  ;;  %v281_v22 = vmul.f32 %v595_v0, %v242_v5 }
  0x29   : > { %441 = vst [vmem:[%s643_s30 + $0x88] sm:$0xff] %v409_v8  ;;  %v412_v21 = vmax.f32 %v380_v10, 0.0  ;;  %v282_v23 = vmul.f32 %v595_v0, %v243_v6  ;;  %442 = vst [vmem:[%s643_s30 + $0x90] sm:$0xff] %v410_v14  ;;  %v382_v26 = vadd.f32 %v350_v11, %v318_v16  ;;  %v283_v30 = vmul.f32 %v595_v0, %v244_v13 }
  0x2a   : > { %v413_v25 = vmax.f32 %v381_v15, 0.0  ;;  %v383_v27 = vadd.f32 %v351_v12, %v319_v17  ;;  %443 = vst [vmem:[%s643_s30 + $0x98] sm:$0xff] %v411_v20  ;;  %v320_v31 = vadd.f32 %v613_v2, %v281_v22  ;;  %v284_v34 = vmul.f32 %v595_v0, %v245_v18 }
  0x2b   : > { %444 = vst [vmem:[%s643_s30 + $0xa0] sm:$0xff] %v412_v21  ;;  %v321_v32 = vadd.f32 %v613_v2, %v282_v23  ;;  %v285_v35 = vmul.f32 %v595_v0, %v246_v19  ;;  %v414_v38 = vmax.f32 %v382_v26, 0.0  ;;  %v322_v40 = vadd.f32 %v613_v2, %v283_v30 }
  0x2c   : > { %445 = vst [vmem:[%s643_s30 + $0xa8] sm:$0xff] %v413_v25  ;;  %v415_v39 = vmax.f32 %v383_v27, 0.0  ;;  %v286_v43 = vmul.f32 %v595_v0, %v247_v24  ;;  %v384_v44 = vadd.f32 %v352_v28, %v320_v31  ;;  %v323_v46 = vadd.f32 %v613_v2, %v284_v34 }
  0x2d   : > { %v385_v45 = vadd.f32 %v353_v29, %v321_v32  ;;  %v324_v47 = vadd.f32 %v613_v2, %v285_v35  ;;  %446 = vst [vmem:[%s643_s30 + $0xb0] sm:$0xff] %v414_v38  ;;  %v386_v49 = vadd.f32 %v354_v33, %v322_v40  ;;  %v287_v51 = vmul.f32 %v595_v0, %v248_v36 }
  0x2e   : > { %447 = vst [vmem:[%s643_s30 + $0xb8] sm:$0xff] %v415_v39  ;;  %v325_v50 = vadd.f32 %v613_v2, %v286_v43  ;;  %v288_v52 = vmul.f32 %v595_v0, %v249_v37  ;;  %v416_v53 = vmax.f32 %v384_v44, 0.0  ;;  %v387_v55 = vadd.f32 %v355_v41, %v323_v46 }
  0x2f   : > { %v417_v54 = vmax.f32 %v385_v45, 0.0  ;;  %v388_v56 = vadd.f32 %v356_v42, %v324_v47  ;;  %v418_v59 = vmax.f32 %v386_v49, 0.0  ;;  %v326_v61 = vadd.f32 %v613_v2, %v287_v51 }
  0x30   : > { %v389_v60 = vadd.f32 %v357_v48, %v325_v50  ;;  %v327_v62 = vadd.f32 %v613_v2, %v288_v52  ;;  %448 = vst [vmem:[%s643_s30 + $0xc0] sm:$0xff] %v416_v53  ;;  %v419_v0 = vmax.f32 %v387_v55, 0.0 }
  0x31   : > { %449 = vst [vmem:[%s643_s30 + $0xc8] sm:$0xff] %v417_v54  ;;  %v420_v63 = vmax.f32 %v388_v56, 0.0  ;;  %450 = vst [vmem:[%s643_s30 + $0xd0] sm:$0xff] %v418_v59  ;;  %v390_v3 = vadd.f32 %v358_v57, %v326_v61 }
  0x32   : > { %v421_v1 = vmax.f32 %v389_v60, 0.0  ;;  %v391_v4 = vadd.f32 %v359_v58, %v327_v62  ;;  %451 = vst [vmem:[%s643_s30 + $0xd8] sm:$0xff] %v419_v0 }
  0x33   : > { %452 = vst [vmem:[%s643_s30 + $0xe0] sm:$0xff] %v420_v63  ;;  %v422_v5 = vmax.f32 %v390_v3, 0.0 }
  0x34   : > { %453 = vst [vmem:[%s643_s30 + $0xe8] sm:$0xff] %v421_v1  ;;  %v423_v6 = vmax.f32 %v391_v4, 0.0 }
  0x35   : > { %454 = vst [vmem:[%s643_s30 + $0xf0] sm:$0xff] %v422_v5 }
  0x36   : > { %455 = vst [vmem:[%s643_s30 + $0xf8] sm:$0xff] %v423_v6 }
  0x37 PF: > { %s14_s15 = sadd.s32 1, %s555_s15  }
  0x38   : > { %p11_p4 = scmp.ge.s32.totalorder %s14_s15, 4  }
  0x3a   :  { %13 = sbr.rel (!%p11_p4) target bundleno = 1 (0x1), region = 69 }

// kernel: residual_block_forward.3
= control target key start
LH: loop header
LB: loop body
LE: loop exit
PB: predicated region body
PF: predicated region fallthrough
CT: control target
= control target key end

     0   :  { %s4975_s15 = smov 0   ;;  %s6068_s0 = inlined_call_operand.vmem [shape: bf16[2,18,18,128], index: 0, kind: input, shape index: {}]   ;;  %s6069_s1 = inlined_call_operand.vmem [shape: bf16[9,128,128], index: 1, kind: input, shape index: {}]   ;;  %s6070_s2 = inlined_call_operand.vmem [shape: f32[1,128], index: 2, kind: input, shape index: {}]   ;;  %s6071_s3 = inlined_call_operand.vmem [shape: f32[2,16,16,128], index: 3, kind: output, shape index: {0}]   ;;  %s6072_s4 = inlined_call_operand.vmem [shape: f32[2,2,128], index: 4, kind: output, shape index: {1}]  }
   0x1 LB: > { %s3621_s16 = sadd.s32 4294967295, %s4948_s15   ;;  %p3625_p0 = scmp.ge.s32.totalorder %s4948_s15, 1  ;;  %s4948_s15 = sphi %s4975_s15, %s15_s15  }
   0x2   : > { %p165_p1 = scmp.lt.s32.totalorder %s4948_s15, 3 }
   0x4   : > { %p166_p2 = pnand %p3625_p0, %p165_p1 }
   0x6   : > { %169 = sbr.rel (%p166_p2) target bundleno = 578 (0x242), region = 32 }
   0xd   : > { %v4835_v0 = vld [vmem:[%s6069_s1 + $0x40] sm:$0xff]   ;;  %p195_p3 = scmp.lt.s32.totalorder %s3621_s16, 1  ;;  %v4837_v2 = vld [vmem:[%s6069_s1 + $0x48] sm:$0xff]   ;;  %v4839_v4 = vld [vmem:[%s6069_s1 + $0x50] sm:$0xff]   ;;  %vm280_vm0 = vsmask.f32 3328 }
   0xe   : > { %v4836_v1 = vld [vmem:[%s6069_s1 + $0x100] sm:$0xff]   ;;  %4122 = vmatprep.subr.bf16.mxu1 %v4835_v0  ;;  %v4838_v3 = vld [vmem:[%s6069_s1 + $0x108] sm:$0xff]   ;;  %v4840_v5 = vld [vmem:[%s6069_s1 + $0x110] sm:$0xff]   ;;  %vm281_vm1 = vsmask.f32 7440  ;;  %vm1278_vm3 = vcmask 1042432  }
   0xf   : > { %4314 = vmatprep.subr.bf16.mxu0 %v4836_v1  ;;  %4123 = vmatpush3.bf16.msra.mxu1 %v4835_v0  ;;  %s6117_s16 = smov (!%p195_p3, %s3621_s16), 1  ;;  %v4841_v6 = vld [vmem:[%s6069_s1 + $0x58] sm:$0xff]   ;;  %v4843_v8 = vld [vmem:[%s6069_s1 + $0x60] sm:$0xff]   ;;  %v4845_v10 = vld [vmem:[%s6069_s1 + $0x68] sm:$0xff]   ;;  %vm1279_vm4 = vcmask 1046532   ;;  %vm3532_vm6 = vcmask 1040384  }
  0x10   : > { %4315 = vmatpush3.bf16.msra.mxu0 %v4836_v1  ;;  %4124 = vmatprep.subr.bf16.mxu1 %v4837_v2  ;;  %v4842_v7 = vld [vmem:[%s6069_s1 + $0x118] sm:$0xff]   ;;  %s4826_s7 = smul.u32 216, %s6117_s16  ;;  %v4844_v9 = vld [vmem:[%s6069_s1 + $0x120] sm:$0xff]   ;;  %v4846_v11 = vld [vmem:[%s6069_s1 + $0x128] sm:$0xff]   ;;  %s3905_s18 = sshll.u32 %s6117_s16, 8 }
  0x11   : > { %4316 = vmatprep.subr.bf16.mxu0 %v4838_v3  ;;  %v4847_v17 = vld [vmem:[%s6069_s1 + $0x70] sm:$0xff]   ;;  %v4849_v36 = vld [vmem:[%s6069_s1 + $0x78] sm:$0xff]   ;;  %vm5064_vm2 = vmor %vm280_vm0, %vm281_vm1  ;;  %s5988_s23 = scalar_lea.vmem %s6071_s3, %s3905_s18  ;;  %s3629_s24 = sshll.u32 %s6117_s16, 1 }
  0x12   : > { %s5019_s14 = scalar_lea.vmem %s6068_s0, %s4826_s7  ;;  %v4848_v31 = vld [vmem:[%s6069_s1 + $0x130] sm:$0xff]   ;;  %v4850_v53 = vld [vmem:[%s6069_s1 + $0x138] sm:$0xff]   ;;  %v4851_v1 = vld [vmem:[%s6069_s1] sm:$0xff]   ;;  %s208_s27 = scalar_lea.vmem %s6072_s4, %s3629_s24 }
  0x13   : > { %4125 = vmatpush3.bf16.msra.mxu1 %v4837_v2  ;;  %v5028_v12 = vld [vmem:[%s5019_s14] sm:$0xf]  ;;  %v5031_v13 = vld [vmem:[%s5019_s14 + $0x4] sm:$0xf]  ;;  %v212_v14 = vld [vmem:[%s5019_s14 + $0x8] sm:$0x1] }
  0x14   : > { %4317 = vmatpush3.bf16.msra.mxu0 %v4838_v3  ;;  %4126 = vmatprep.subr.bf16.mxu1 %v4839_v4  ;;  %v284_v15 = vshrl.u32 %v5028_v12, 16  ;;  %v287_v16 = vshll.u32 %v5028_v12, 16  ;;  %v293_v18 = vshll.u32 %v5031_v13, 16  ;;  %v297_v19 = vshrl.u32 %v5031_v13, 16  ;;  %v5042_v21 = vld [vmem:[%s5019_s14 + $0xc] sm:$0xf]  ;;  %vm5271_vm5 = vmor %vm1278_vm3, %vm1279_vm4 }
  0x15   : > { %4318 = vmatprep.subr.bf16.mxu0 %v4840_v5  ;;  %v303_v20 = vshll.u32 %v212_v14, 16  ;;  %v5045_v24 = vld [vmem:[%s5019_s14 + $0x10] sm:$0xf]  ;;  %v5048_v25 = vld [vmem:[%s5019_s14 + $0x14] sm:$0x1]  ;;  %v308_v30 = vshrl.u32 %v5042_v21, 16 }
  0x16   : > { %v286_v22 = vrot.slane %v284_v15, 4  ;;  %v289_v23 = vrot.slane %v287_v16, 5  ;;  %v295_v27 = vrot.slane %v293_v18, 5  ;;  %v299_v28 = vrot.slane %v297_v19, 4  ;;  %v5070_v41 = vld [vmem:[%s5019_s14 + $0x18] sm:$0xf] }
  0x17   : > { %4127 = vmatpush3.bf16.msra.mxu1 %v4839_v4  ;;  %v305_v29 = vrot.slane %v303_v20, 5  ;;  %v311_v33 = vshll.u32 %v5042_v21, 16  ;;  %v317_v34 = vshll.u32 %v5045_v24, 16  ;;  %v321_v35 = vshrl.u32 %v5045_v24, 16  ;;  %v5073_v42 = vld [vmem:[%s5019_s14 + $0x1c] sm:$0xf] }
  0x18   : > { %4319 = vmatpush3.bf16.msra.mxu0 %v4840_v5  ;;  %4128 = vmatprep.subr.bf16.mxu1 %v4841_v6  ;;  %v290_v32 = vor.u32 %v289_v23, %v286_v22  ;;  %v300_v38 = vor.u32 %v299_v28, %v295_v27  ;;  %v310_v39 = vrot.slane %v308_v30, 4  ;;  %v327_v40 = vshll.u32 %v5048_v25, 16  ;;  %v5080_v48 = vld [vmem:[%s5019_s14 + $0x20] sm:$0x1]  ;;  %v5097_v3 = vld [vmem:[%s5019_s14 + $0x24] sm:$0xf] }
  0x19   : > { %4320 = vmatprep.subr.bf16.mxu0 %v4842_v7  ;;  %v5077_v43 = vcombine.low %v5042_v21, %v5045_v24  ;;  %v313_v45 = vrot.slane %v311_v33, 5  ;;  %v319_v46 = vrot.slane %v317_v34, 5  ;;  %v323_v47 = vrot.slane %v321_v35, 4  ;;  %v5112_v14 = vld [vmem:[%s5019_s14 + $0x2c] sm:$0x1]  ;;  %v4941_v37 = vld [vmem:[%s6069_s1 + $0x138] sm:$0xff]  }
  0x1a   : > { %v291_v44 = vrot.slane %v290_v32, 4  ;;  %v301_v49 = vrot.slane %v300_v38, 4  ;;  %v329_v50 = vrot.slane %v327_v40, 5  ;;  %v332_v51 = vshrl.u32 %v5070_v41, 16  ;;  %v5117_v22 = vld [vmem:[%s5019_s14 + $0x30] sm:$0xf] }
  0x1b   : > { %4129 = vmatpush3.bf16.msra.mxu1 %v4841_v6  ;;  %v335_v52 = vshll.u32 %v5070_v41, 16  ;;  %v314_v55 = vor.u32 %v313_v45, %v310_v39  ;;  %v324_v56 = vor.u32 %v323_v47, %v319_v46  ;;  %v341_v57 = vshll.u32 %v5073_v42, 16  ;;  %v5122_v30 = vld [vmem:[%s5019_s14 + $0x34] sm:$0xf]  ;;  %v4854_v34 = vld [vmem:[%s6069_s1 + $0x8] sm:$0xff]  }
  0x1c   : > { %4321 = vmatpush3.bf16.msra.mxu0 %v4842_v7  ;;  %4130 = vmatprep.subr.bf16.mxu1 %v4843_v8  ;;  %v296_v54 = vsel %vm5064_vm2, %v291_v44, %v295_v27  ;;  %v306_v58 = vsel %vm5064_vm2, %v301_v49, %v305_v29  ;;  %v334_v59 = vrot.slane %v332_v51, 4  ;;  %v345_v61 = vshrl.u32 %v5073_v42, 16  ;;  %v5131_v35 = vld [vmem:[%s5019_s14 + $0x38] sm:$0x1] }
  0x1d   : > { %4322 = vmatprep.subr.bf16.mxu0 %v4844_v9  ;;  %v337_v60 = vrot.slane %v335_v52, 5  ;;  %v3646_v62 = vcombine.low %v296_v54, %v306_v58  ;;  %v315_v63 = vrot.slane %v314_v55, 4  ;;  %v325_v0 = vrot.slane %v324_v56, 4  ;;  %v5146_v58 = vld [vmem:[%s5019_s14 + $0x3c] sm:$0xf] }
  0x1e   : > { %v343_v2 = vrot.slane %v341_v57, 5  ;;  %v347_v5 = vrot.slane %v345_v61, 4  ;;  %v351_v6 = vshll.u32 %v5080_v48, 16  ;;  %v1300_v7 = vrot.slane %v5080_v48, 5 }
  0x1f   : > { %4131 = vmatpush3.bf16.msra.mxu1 %v4843_v8  ;;  %v338_v4 = vor.u32 %v337_v60, %v334_v59  ;;  %v4852_v8 = vld [vmem:[%s6069_s1 + $0x140] sm:$0xff]   ;;  %4138 = vmatprep.mubr.bf16.mxu1 %v3646_v62  ;;  %v356_v15 = vshrl.u32 %v5097_v3, 16  ;;  %v359_v16 = vshll.u32 %v5097_v3, 16  ;;  %v375_v33 = vshll.u32 %v5112_v14, 16  ;;  %v4857_v59 = vld [vmem:[%s6069_s1 + $0x10] sm:$0xff]  }
  0x20   : > { %4323 = vmatpush3.bf16.msra.mxu0 %v4844_v9  ;;  %4132 = vmatprep.subr.bf16.mxu1 %v4845_v10  ;;  %v5105_v9 = vld [vmem:[%s5019_s14 + $0x28] sm:$0xf]  ;;  %v348_v19 = vor.u32 %v347_v5, %v343_v2  ;;  %v353_v20 = vrot.slane %v351_v6, 5  ;;  %v383_v44 = vshll.u32 %v5117_v22, 16  ;;  %v393_v56 = vshrl.u32 %v5122_v30, 16 }
  0x21   : > { %4324 = vmatprep.subr.bf16.mxu0 %v4846_v11  ;;  %v339_v18 = vrot.slane %v338_v4, 4  ;;  %v358_v23 = vrot.slane %v356_v15, 4  ;;  %v361_v27 = vrot.slane %v359_v16, 5  ;;  %v365_v28 = vshll.u32 %v5105_v9, 16  ;;  %v4855_v16 = vld [vmem:[%s6069_s1 + $0x150] sm:$0xff]  }
  0x22   : > { %v369_v29 = vshrl.u32 %v5105_v9, 16  ;;  %v349_v32 = vrot.slane %v348_v19, 4  ;;  %v377_v47 = vrot.slane %v375_v33, 5  ;;  %v385_v54 = vrot.slane %v383_v44, 5  ;;  %v5186_v33 = vld [vmem:[%s5019_s14 + $0x50] sm:$0x1] }
  0x23   : > { %4133 = vmatpush3.bf16.msra.mxu1 %v4845_v10  ;;  %v320_v10 = vsel %vm5064_vm2, %v315_v63, %v319_v46  ;;  %v362_v38 = vor.u32 %v361_v27, %v358_v23  ;;  %v367_v39 = vrot.slane %v365_v28, 5  ;;  %v4853_v46 = vld [vmem:[%s6069_s1 + $0x148] sm:$0xff]   ;;  %v399_v57 = vshll.u32 %v5131_v35, 16 }
  0x24   : > { %4325 = vmatpush3.bf16.msra.mxu0 %v4846_v11  ;;  %4134 = vmatprep.subr.bf16.mxu1 %v4847_v17  ;;  %v330_v11 = vsel %vm5064_vm2, %v325_v0, %v329_v50  ;;  %v371_v40 = vrot.slane %v369_v29, 4  ;;  %v354_v45 = vsel %vm5064_vm2, %v349_v32, %v353_v20  ;;  %v389_v50 = vshll.u32 %v5122_v30, 16  ;;  %v5160_v0 = vld [vmem:[%s5019_s14 + $0x40] sm:$0xf]  ;;  %v5177_v27 = vld [vmem:[%s5019_s14 + $0x48] sm:$0xf] }
  0x25   : > { %4326 = vmatprep.subr.bf16.mxu0 %v4848_v31  ;;  %v363_v52 = vrot.slane %v362_v38, 4  ;;  %v5153_v60 = vcombine.low %v5070_v41, %v5073_v42  ;;  %v395_v4 = vrot.slane %v393_v56, 4  ;;  %v401_v5 = vrot.slane %v399_v57, 5  ;;  %v5180_v28 = vld [vmem:[%s5019_s14 + $0x4c] sm:$0xf] }
  0x26   : > { %v391_v55 = vrot.slane %v389_v50, 5  ;;  %v407_v6 = vshll.u32 %v5146_v58, 16  ;;  %v437_v44 = vshll.u32 %v5180_v28, 16  ;;  %v441_v50 = vshrl.u32 %v5180_v28, 16 }
  0x27   : > { %4135 = vmatpush3.bf16.msra.mxu1 %v4847_v17  ;;  %v3647_v17 = vcombine.low %v320_v10, %v330_v11  ;;  %v368_v61 = vsel %vm5064_vm2, %v363_v52, %v367_v39  ;;  %v413_v10 = vshll.u32 %v5160_v0, 16 }
  0x28   : > { %4327 = vmatpush3.bf16.msra.mxu0 %v4848_v31  ;;  %4136 = vmatprep.subr.bf16.mxu1 %v4849_v36  ;;  %v344_v31 = vsel %vm5064_vm2, %v339_v18, %v343_v2  ;;  %v404_v2 = vshrl.u32 %v5146_v58, 16  ;;  %v396_v19 = vor.u32 %v395_v4, %v391_v55  ;;  %v409_v20 = vrot.slane %v407_v6, 5  ;;  %v5217_v6 = vld [vmem:[%s5019_s14 + $0x58] sm:$0xf] }
  0x29   : > { %4328 = vmatprep.subr.bf16.mxu0 %v4850_v53  ;;  %4330 = vmatprep.mubr.bf16.mxu0 %v3647_v17  ;;  %v5141_v51 = vcombine.low %v344_v31, %v354_v45  ;;  %v415_v23 = vrot.slane %v413_v10, 5  ;;  %v4856_v45 = vld [vmem:[%s6069_s1 + $0x158] sm:$0xff]  }
  0x2a   : > { %v397_v38 = vrot.slane %v396_v19, 4  ;;  %v5220_v10 = vld [vmem:[%s5019_s14 + $0x5c] sm:$0x1] }
  0x2b   : > { %4137 = vmatpush3.bf16.msra.mxu1 %v4849_v36  ;;  %v380_v36 = vshrl.u32 %v5117_v22, 16 }
  0x2c   : > { %4329 = vmatpush3.bf16.msra.mxu0 %v4850_v53  ;;  %4170 = vmatprep.subr.bf16.mxu1 %v4851_v1  ;;  %v372_v53 = vor.u32 %v371_v40, %v367_v39  ;;  %v431_v40 = vshll.u32 %v5177_v27, 16  ;;  %v402_v52 = vsel %vm5064_vm2, %v397_v38, %v401_v5  ;;  %v5214_v5 = vld [vmem:[%s5019_s14 + $0x54] sm:$0xf] }
  0x2d   : > { %4362 = vmatprep.subr.bf16.mxu0 %v4852_v8  ;;  %v382_v49 = vrot.slane %v380_v36, 4  ;;  %v4860_v36 = vld [vmem:[%s6069_s1 + $0x18] sm:$0xff]   ;;  %v452_v19 = vshrl.u32 %v5214_v5, 16 }
  0x2e   : > { %4139 = vmatmul.mubr.bf16.vlgmr.msra.gmra.mrb[0].mxu1 %v3647_v17  ;;  %v373_v62 = vrot.slane %v372_v53, 4  ;;  %v417_v17 = vshrl.u32 %v5160_v0, 16 }
  0x2f   : > { %4171 = vmatpush3.bf16.msra.mxu1 %v4851_v1  ;;  %4331 = vmatmul.mubr.bf16.vlgmr.msra.gmra.mrb[0].mxu0 %v5141_v51  ;;  %v386_v63 = vor.u32 %v385_v54, %v382_v49  ;;  %v5163_v1 = vld [vmem:[%s5019_s14 + $0x44] sm:$0x1]  ;;  %v433_v54 = vrot.slane %v431_v40, 5  ;;  %v465_v40 = vshrl.u32 %v5217_v6, 16 }
  0x30   : > { %4172 = vmatprep.subr.bf16.mxu1 %v4854_v34  ;;  %4142 = vmatprep.mubr.bf16.mxu1 %v5141_v51  ;;  %v378_v11 = vsel %vm5064_vm2, %v373_v62, %v377_v47  ;;  %v419_v31 = vrot.slane %v417_v17, 4  ;;  %v423_v32 = vshll.u32 %v5163_v1, 16  ;;  %v447_v62 = vshll.u32 %v5186_v33, 16 }
  0x31   : > { %4363 = vmatpush3.bf16.msra.mxu0 %v4852_v8  ;;  %v387_v15 = vrot.slane %v386_v63, 4  ;;  %v406_v8 = vrot.slane %v404_v2, 4  ;;  %v5174_v18 = vcombine.low %v368_v61, %v378_v11  ;;  %v443_v61 = vrot.slane %v441_v50, 4  ;;  %v4858_v63 = vld [vmem:[%s6069_s1 + $0x160] sm:$0xff]   ;;  %v5254_v50 = vld [vmem:[%s5019_s14 + $0x68] sm:$0x1] }
  0x32   : > { %4364 = vmatprep.subr.bf16.mxu0 %v4853_v46  ;;  %v420_v47 = vor.u32 %v419_v31, %v415_v23  ;;  %v425_v49 = vrot.slane %v423_v32, 5  ;;  %v4863_v2 = vld [vmem:[%s6069_s1 + $0x20] sm:$0xff]   ;;  %v5224_v11 = vcombine.low %v5097_v3, %v5105_v9  ;;  %v449_v17 = vrot.slane %v447_v62, 5 }
  0x33   : > { %4173 = vmatpush3.bf16.msra.mxu1 %v4854_v34  ;;  %6091 = vst [vmem:[#allocation2_spill] sm:$0xff] %v5174_v18  ;;  %v392_v29 = vsel %vm5064_vm2, %v387_v15, %v391_v55  ;;  %v428_v34 = vshrl.u32 %v5177_v27, 16  ;;  %4334 = vmatprep.mubr.bf16.mxu0 %v5174_v18  ;;  %v410_v39 = vor.u32 %v409_v20, %v406_v8  ;;  %v439_v55 = vrot.slane %v437_v44, 5  ;;  %v5240_v32 = vld [vmem:[%s5019_s14 + $0x60] sm:$0xf] }
  0x34   : > { %4174 = vmatprep.subr.bf16.mxu1 %v4857_v59  ;;  %v5202_v56 = vcombine.low %v392_v29, %v402_v52  ;;  %v421_v57 = vrot.slane %v420_v47, 4  ;;  %v5228_v15 = vcombine.low %v5117_v22, %v5122_v30  ;;  %v455_v29 = vshll.u32 %v5214_v5, 16  ;;  %v5248_v47 = vld [vmem:[%s5019_s14 + $0x64] sm:$0xf] }
  0x35   : > { %4365 = vmatpush3.bf16.msra.mxu0 %v4853_v46  ;;  %v430_v46 = vrot.slane %v428_v34, 4  ;;  %v411_v53 = vrot.slane %v410_v39, 4  ;;  %v444_v8 = vor.u32 %v443_v61, %v439_v55  ;;  %v461_v31 = vshll.u32 %v5217_v6, 16  ;;  %v4865_v34 = vld [vmem:[%s6069_s1 + $0x28] sm:$0xff]  }
  0x36   : > { %4143 = vmatmul.mubr.bf16.gmra.mrb[4].mxu1 %v5174_v18  ;;  %4366 = vmatprep.subr.bf16.mxu0 %v4855_v16  ;;  %6092 = vst [vmem:[#allocation3_spill] sm:$0xff] %v5202_v56  ;;  %v454_v39 = vrot.slane %v452_v19, 4  ;;  %v471_v44 = vshll.u32 %v5220_v10, 16  ;;  %v476_v52 = vshrl.u32 %v5240_v32, 16  ;;  %v495_v19 = vshll.u32 %v5254_v50, 16 }
  0x37   : > { %4175 = vmatpush3.bf16.msra.mxu1 %v4857_v59  ;;  %v416_v4 = vsel %vm5064_vm2, %v411_v53, %v415_v23  ;;  %v434_v59 = vor.u32 %v433_v54, %v430_v46  ;;  %4335 = vmatmul.mubr.bf16.gmra.mrb[4].mxu0 %v5202_v56  ;;  %v445_v38 = vrot.slane %v444_v8, 4  ;;  %v463_v46 = vrot.slane %v461_v31, 5 }
  0x38   : > { %4176 = vmatprep.subr.bf16.mxu1 %v4860_v36  ;;  %4146 = vmatprep.mubr.bf16.mxu1 %v5202_v56  ;;  %v467_v54 = vrot.slane %v465_v40, 4  ;;  %v5282_v40 = vld [vmem:[%s5019_s14 + $0x6c] sm:$0xf] }
  0x39   : > { %4367 = vmatpush3.bf16.msra.mxu0 %v4855_v16  ;;  %v426_v16 = vsel %vm5064_vm2, %v421_v57, %v425_v49  ;;  %v435_v23 = vrot.slane %v434_v59, 4  ;;  %v450_v53 = vsel %vm5064_vm2, %v445_v38, %v449_v17  ;;  %v473_v57 = vrot.slane %v471_v44, 5 }
  0x3a   : > { %4368 = vmatprep.subr.bf16.mxu0 %v4856_v45  ;;  %v5235_v20 = vcombine.low %v416_v4, %v426_v16  ;;  %v478_v4 = vrot.slane %v476_v52, 4  ;;  %v485_v59 = vshll.u32 %v5248_v47, 16  ;;  %v468_v16 = vor.u32 %v467_v54, %v463_v46 }
  0x3b   : > { %4177 = vmatpush3.bf16.msra.mxu1 %v4860_v36  ;;  %v440_v49 = vsel %vm5064_vm2, %v435_v23, %v439_v55  ;;  %v457_v36 = vrot.slane %v455_v29, 5  ;;  %v479_v55 = vshll.u32 %v5240_v32, 16  ;;  %v489_v17 = vshrl.u32 %v5248_v47, 16  ;;  %v4867_v29 = vld [vmem:[%s6069_s1 + $0x30] sm:$0xff]  }
  0x3c   : > { %6093 = vst [vmem:[#allocation4_spill] sm:$0xff] %v5235_v20  ;;  %4178 = vmatprep.subr.bf16.mxu1 %v4863_v2  ;;  %4338 = vmatprep.mubr.bf16.mxu0 %v5235_v20  ;;  %v5264_v61 = vcombine.low %v440_v49, %v450_v53  ;;  %v487_v31 = vrot.slane %v485_v59, 5  ;;  %v3695_v38 = vrot.slane %v5042_v21, 9  ;;  %v469_v44 = vrot.slane %v468_v16, 4  ;;  %v5289_v53 = vld [vmem:[%s5019_s14 + $0x70] sm:$0xf] }
  0x3d   : > { %4369 = vmatpush3.bf16.msra.mxu0 %v4856_v45  ;;  %v4859_v45 = vld [vmem:[%s6069_s1 + $0x168] sm:$0xff]   ;;  %v458_v62 = vor.u32 %v457_v36, %v454_v39  ;;  %v481_v8 = vrot.slane %v479_v55, 5  ;;  %v1290_v39 = vrot.slane %v5045_v24, 5  ;;  %v491_v36 = vrot.slane %v489_v17, 4 }
  0x3e   : > { %4147 = vmatmul.mubr.bf16.gmra.mrb[8].mxu1 %v5235_v20  ;;  %4370 = vmatprep.subr.bf16.mxu0 %v4858_v63  ;;  %6094 = vst [vmem:[#allocation5_spill] sm:$0xff] %v5264_v61  ;;  %v497_v52 = vrot.slane %v495_v19, 5  ;;  %v1293_v55 = vrot.slane %v5048_v25, 5  ;;  %v474_v59 = vsel %vm5064_vm2, %v469_v44, %v473_v57  ;;  %v509_v19 = vshll.u32 %v5289_v53, 16 }
  0x3f   : > { %4179 = vmatpush3.bf16.msra.mxu1 %v4863_v2  ;;  %4150 = vmatprep.mubr.bf16.mxu1 %v5264_v61  ;;  %v459_v2 = vrot.slane %v458_v62, 4  ;;  %v482_v49 = vor.u32 %v481_v8, %v478_v4  ;;  %v1291_v24 = vsel %vm5271_vm5, %v3695_v38, %v1290_v39  ;;  %v1292_v54 = vrot.slane %v1290_v39, 4  ;;  %v5297_v62 = vld [vmem:[%s5019_s14 + $0x74] sm:$0x1]  ;;  %v4869_v4 = vld [vmem:[%s6069_s1 + $0x38] sm:$0xff]  }
  0x40   : > { %4180 = vmatprep.subr.bf16.mxu1 %v4865_v34  ;;  %4339 = vmatmul.mubr.bf16.gmra.mrb[8].mxu0 %v5264_v61  ;;  %v492_v8 = vor.u32 %v491_v36, %v487_v31  ;;  %v511_v36 = vrot.slane %v509_v19, 5  ;;  %v1311_v20 = vrot.slane %v5122_v30, 5 }
  0x41   : > { %4371 = vmatpush3.bf16.msra.mxu0 %v4858_v63  ;;  %v4861_v63 = vld [vmem:[%s6069_s1 + $0x170] sm:$0xff]   ;;  %v464_v21 = vsel %vm5064_vm2, %v459_v2, %v463_v46  ;;  %v483_v16 = vrot.slane %v482_v49, 4  ;;  %v500_v46 = vshrl.u32 %v5282_v40, 16  ;;  %v1294_v25 = vsel %vm5271_vm5, %v1292_v54, %v1293_v55  ;;  %v5312_v2 = vld [vmem:[%s5019_s14 + $0x78] sm:$0xf] }
  0x42   : > { %4372 = vmatprep.subr.bf16.mxu0 %v4859_v45  ;;  %v5305_v17 = vcombine.low %v464_v21, %v474_v59  ;;  %v493_v38 = vrot.slane %v492_v8, 4  ;;  %v5319_v39 = vcombine.low %v1291_v24, %v1294_v25  ;;  %v513_v21 = vshrl.u32 %v5289_v53, 16  ;;  %v5326_v54 = vld [vmem:[%s5019_s14 + $0x7c] sm:$0xf] }
  0x43   : > { %4181 = vmatpush3.bf16.msra.mxu1 %v4865_v34  ;;  %v503_v34 = vshll.u32 %v5282_v40, 16  ;;  %v488_v57 = vsel %vm5064_vm2, %v483_v16, %v487_v31  ;;  %v502_v44 = vrot.slane %v500_v46, 4  ;;  %v519_v31 = vshll.u32 %v5297_v62, 16  ;;  %v5333_v16 = vld [vmem:[%s5019_s14 + $0x80] sm:$0x1] }
  0x44   : > { %4182 = vmatprep.subr.bf16.mxu1 %v4867_v29  ;;  %6097 = vst [vmem:[#allocation6_spill] sm:$0xff] %v5305_v17  ;;  %4342 = vmatprep.mubr.bf16.mxu0 %v5305_v17  ;;  %v498_v55 = vsel %vm5064_vm2, %v493_v38, %v497_v52  ;;  %v3696_v59 = vrot.slane %v5070_v41, 9  ;;  %v1297_v24 = vrot.slane %v5073_v42, 5  ;;  %v524_v8 = vshrl.u32 %v5312_v2, 16  ;;  %v5341_v52 = vld [vmem:[%s6069_s1 + $0x80] sm:$0xff]  }
  0x45   : > { %4373 = vmatpush3.bf16.msra.mxu0 %v4859_v45  ;;  %v4862_v45 = vld [vmem:[%s6069_s1 + $0x178] sm:$0xff]   ;;  %v505_v49 = vrot.slane %v503_v34, 5  ;;  %v5336_v46 = vcombine.low %v488_v57, %v498_v55  ;;  %v515_v34 = vrot.slane %v513_v21, 4  ;;  %v521_v19 = vrot.slane %v519_v31, 5  ;;  %v5350_v38 = vld [vmem:[%s5019_s14 + $0x84] sm:$0xf] }
  0x46   : > { %4374 = vmatprep.subr.bf16.mxu0 %v4861_v63  ;;  %4151 = vmatmul.mubr.bf16.gmra.mrb[12].mxu1 %v5305_v17  ;;  %v1298_v41 = vsel %vm5271_vm5, %v3696_v59, %v1297_v24  ;;  %v1299_v42 = vrot.slane %v1297_v24, 4  ;;  %v526_v57 = vrot.slane %v524_v8, 4  ;;  %v533_v21 = vshll.u32 %v5326_v54, 16 }
  0x47   : > { %4183 = vmatpush3.bf16.msra.mxu1 %v4867_v29  ;;  %6098 = vst [vmem:[#allocation7_spill] sm:$0xff] %v5336_v46  ;;  %v506_v25 = vor.u32 %v505_v49, %v502_v44  ;;  %v4864_v29 = vld [vmem:[%s6069_s1 + $0x180] sm:$0xff]   ;;  %4154 = vmatprep.mubr.bf16.mxu1 %v5336_v46  ;;  %v516_v49 = vor.u32 %v515_v34, %v511_v36  ;;  %v537_v31 = vshrl.u32 %v5326_v54, 16  ;;  %v543_v24 = vshll.u32 %v5333_v16, 16 }
  0x48   : > { %4184 = vmatprep.subr.bf16.mxu1 %v4869_v4  ;;  %4343 = vmatmul.mubr.bf16.gmra.mrb[12].mxu0 %v5336_v46  ;;  %v1301_v55 = vsel %vm5271_vm5, %v1299_v42, %v1300_v7  ;;  %v3697_v8 = vrot.slane %v5097_v3, 9  ;;  %v535_v46 = vrot.slane %v533_v21, 5  ;;  %v5370_v3 = vld [vmem:[%s5019_s14 + $0x88] sm:$0xf] }
  0x49   : > { %4375 = vmatpush3.bf16.msra.mxu0 %v4861_v63  ;;  %v527_v63 = vshll.u32 %v5312_v2, 16  ;;  %v507_v44 = vrot.slane %v506_v25, 4  ;;  %4378 = vmatprep.mubr.bf16.mxu0 %v5319_v39  ;;  %v517_v34 = vrot.slane %v516_v49, 4  ;;  %v5365_v26 = vcombine.low %v1298_v41, %v1301_v55 }
  0x4a   : > { %4376 = vmatprep.subr.bf16.mxu0 %v4862_v45  ;;  %v539_v7 = vrot.slane %v537_v31, 4  ;;  %v545_v42 = vrot.slane %v543_v24, 5  ;;  %v548_v41 = vshrl.u32 %v5350_v38, 16  ;;  %v4866_v31 = vld [vmem:[%s6069_s1 + $0x188] sm:$0xff]   ;;  %v5389_v24 = vld [vmem:[%s5019_s14 + $0x90] sm:$0xf] }
  0x4b   : > { %v529_v59 = vrot.slane %v527_v63, 5  ;;  %4185 = vmatpush3.bf16.msra.mxu1 %v4869_v4  ;;  %v512_v25 = vsel %vm5064_vm2, %v507_v44, %v511_v36  ;;  %v1304_v63 = vrot.slane %v5105_v9, 5  ;;  %v522_v4 = vsel %vm5064_vm2, %v517_v34, %v521_v19  ;;  %v5376_v36 = vld [vmem:[%s5019_s14 + $0x8c] sm:$0x1]  ;;  %v5392_v34 = vld [vmem:[%s5019_s14 + $0x94] sm:$0xf] }
  0x4c   : > { %4218 = vmatprep.subr.bf16.mxu1 %v5341_v52  ;;  %v551_v44 = vshll.u32 %v5350_v38, 16  ;;  %v540_v21 = vor.u32 %v539_v7, %v535_v46  ;;  %v550_v55 = vrot.slane %v548_v41, 4  ;;  %v567_v7 = vshll.u32 %v5376_v36, 16 }
  0x4d   : > { %4377 = vmatpush3.bf16.msra.mxu0 %v4862_v45  ;;  %v530_v48 = vor.u32 %v529_v59, %v526_v57  ;;  %v1307_v45 = vrot.slane %v5112_v14, 5  ;;  %v5380_v57 = vcombine.low %v512_v25, %v522_v4  ;;  %v1305_v9 = vsel %vm5271_vm5, %v3697_v8, %v1304_v63 }
  0x4e   : > { %4410 = vmatprep.subr.bf16.mxu0 %v4864_v29  ;;  %v1306_v19 = vrot.slane %v1304_v63, 4  ;;  %v553_v14 = vrot.slane %v551_v44, 5  ;;  %v557_v59 = vshll.u32 %v5370_v3, 16  ;;  %v561_v8 = vshrl.u32 %v5370_v3, 16 }
  0x4f   : > { %6099 = vst [vmem:[#allocation8_spill] sm:$0xff] %v5380_v57  ;;  %v531_v49 = vrot.slane %v530_v48, 4  ;;  %4155 = vmatmul.mubr.bf16.gmra.mrb[16].mxu1 %v5380_v57  ;;  %v541_v48 = vrot.slane %v540_v21, 4  ;;  %v3698_v44 = vrot.slane %v5117_v22, 9  ;;  %v569_v21 = vrot.slane %v567_v7, 5  ;;  %v4868_v22 = vld [vmem:[%s6069_s1 + $0x190] sm:$0xff]  }
  0x50   : > { %4379 = vmatmul.mubr.bf16.vlgmr.msra.gmra.mrb[0].mxu0 %v5365_v26  ;;  %v1308_v63 = vsel %vm5271_vm5, %v1306_v19, %v1307_v45  ;;  %v554_v4 = vor.u32 %v553_v14, %v550_v55  ;;  %v559_v41 = vrot.slane %v557_v59, 5  ;;  %v1314_v45 = vrot.slane %v5131_v35, 5  ;;  %v5428_v59 = vld [vmem:[%s5019_s14 + $0x9c] sm:$0xf] }
  0x51   : > { %v536_v25 = vsel %vm5064_vm2, %v531_v49, %v535_v46  ;;  %4411 = vmatpush3.bf16.msra.mxu0 %v4864_v29  ;;  %v546_v57 = vsel %vm5064_vm2, %v541_v48, %v545_v42  ;;  %v5405_v46 = vcombine.low %v1305_v9, %v1308_v63  ;;  %v563_v49 = vrot.slane %v561_v8, 4  ;;  %v5416_v42 = vld [vmem:[%s5019_s14 + $0x98] sm:$0x1]  ;;  %v5431_v63 = vld [vmem:[%s5019_s14 + $0xa0] sm:$0xf] }
  0x52   : > { %v5407_v17 = vcombine.low %v536_v25, %v546_v57  ;;  %v555_v61 = vrot.slane %v554_v4, 4  ;;  %4412 = vmatprep.subr.bf16.mxu0 %v4866_v31  ;;  %v572_v57 = vshrl.u32 %v5389_v24, 16  ;;  %v575_v9 = vshll.u32 %v5389_v24, 16 }
  0x53   : > { %4382 = vmatprep.mubr.bf16.mxu0 %v5405_v46  ;;  %v564_v29 = vor.u32 %v563_v49, %v559_v41  ;;  %v581_v19 = vshll.u32 %v5392_v34, 16  ;;  %v1312_v35 = vsel %vm5271_vm5, %v3698_v44, %v1311_v20  ;;  %v1313_v55 = vrot.slane %v1311_v20, 4  ;;  %v5438_v20 = vld [vmem:[%s5019_s14 + $0xa4] sm:$0x1] }
  0x54   : > { %6100 = vst [vmem:[#allocation9_spill] sm:$0xff] %v5407_v17  ;;  %4158 = vmatprep.mubr.bf16.mxu1 %v5407_v17  ;;  %v560_v30 = vsel %vm5064_vm2, %v555_v61, %v559_v41  ;;  %v585_v14 = vshrl.u32 %v5392_v34, 16  ;;  %v574_v48 = vrot.slane %v572_v57, 4  ;;  %v577_v8 = vrot.slane %v575_v9, 5 }
  0x55   : > { %v565_v25 = vrot.slane %v564_v29, 4  ;;  %4413 = vmatpush3.bf16.msra.mxu0 %v4866_v31  ;;  %v583_v7 = vrot.slane %v581_v19, 5  ;;  %v1315_v4 = vsel %vm5271_vm5, %v1313_v55, %v1314_v45  ;;  %v591_v61 = vshll.u32 %v5416_v42, 16  ;;  %v4870_v45 = vld [vmem:[%s6069_s1 + $0x198] sm:$0xff]  }
  0x56   : > { %v587_v49 = vrot.slane %v585_v14, 4  ;;  %v3699_v41 = vrot.slane %v5146_v58, 9  ;;  %4414 = vmatprep.subr.bf16.mxu0 %v4868_v22  ;;  %v5442_v44 = vcombine.low %v1312_v35, %v1315_v4  ;;  %v578_v29 = vor.u32 %v577_v8, %v574_v48 }
  0x57   : > { %v570_v31 = vsel %vm5064_vm2, %v565_v25, %v569_v21  ;;  %v1318_v57 = vrot.slane %v5160_v0, 5  ;;  %v593_v58 = vrot.slane %v591_v61, 5  ;;  %v1321_v55 = vrot.slane %v5163_v1, 5  ;;  %v5456_v25 = vld [vmem:[%s5019_s14 + $0xa8] sm:$0xf] }
  0x58   : > { %v5448_v9 = vcombine.low %v560_v30, %v570_v31  ;;  %v588_v19 = vor.u32 %v587_v49, %v583_v7  ;;  %4383 = vmatmul.mubr.bf16.gmra.mrb[4].mxu0 %v5442_v44  ;;  %v579_v14 = vrot.slane %v578_v29, 4  ;;  %v596_v0 = vshrl.u32 %v5428_v59, 16  ;;  %v4874_v30 = vld [vmem:[%s6069_s1 + $0x1a0] sm:$0xff]   ;;  %v5466_v49 = vld [vmem:[%s5019_s14 + $0xac] sm:$0xf] }
  0x59   : > { %v1319_v21 = vsel %vm5271_vm5, %v3699_v41, %v1318_v57  ;;  %v1320_v35 = vrot.slane %v1318_v57, 4  ;;  %v599_v1 = vshll.u32 %v5428_v59, 16  ;;  %v605_v8 = vshll.u32 %v5431_v63, 16  ;;  %4415 = vmatpush3.bf16.msra.mxu0 %v4868_v22 }
  0x5a   : > { %6101 = vst [vmem:[#allocation10_spill] sm:$0xff] %v5448_v9  ;;  %4159 = vmatmul.mubr.bf16.gmra.mrb[20].mxu1 %v5448_v9  ;;  %v589_v48 = vrot.slane %v588_v19, 4  ;;  %v609_v4 = vshrl.u32 %v5431_v63, 16  ;;  %v584_v61 = vsel %vm5064_vm2, %v579_v14, %v583_v7  ;;  %v598_v31 = vrot.slane %v596_v0, 4  ;;  %4416 = vmatprep.subr.bf16.mxu0 %v4870_v45  ;;  %v5481_v14 = vld [vmem:[%s5019_s14 + $0xb0] sm:$0x1] }
  0x5b   : > { %v1322_v41 = vsel %vm5271_vm5, %v1320_v35, %v1321_v55  ;;  %v615_v29 = vshll.u32 %v5438_v20, 16  ;;  %v601_v9 = vrot.slane %v599_v1, 5  ;;  %v607_v17 = vrot.slane %v605_v8, 5 }
  0x5c   : > { %v594_v57 = vsel %vm5064_vm2, %v589_v48, %v593_v58  ;;  %v5475_v19 = vcombine.low %v1319_v21, %v1322_v41  ;;  %v611_v56 = vrot.slane %v609_v4, 4  ;;  %v3700_v7 = vrot.slane %v5177_v27, 9 }
  0x5d   : > { %v5477_v22 = vcombine.low %v584_v61, %v594_v57  ;;  %v617_v18 = vrot.slane %v615_v29, 5  ;;  %v602_v55 = vor.u32 %v601_v9, %v598_v31  ;;  %v1325_v35 = vrot.slane %v5180_v28, 5  ;;  %4417 = vmatpush3.bf16.msra.mxu0 %v4870_v45  ;;  %v4878_v28 = vld [vmem:[%s6069_s1 + $0x1a8] sm:$0xff]  }
  0x5e   : > { %4386 = vmatprep.mubr.bf16.mxu0 %v5475_v19  ;;  %v1328_v0 = vrot.slane %v5186_v33, 5  ;;  %v620_v58 = vshrl.u32 %v5456_v25, 16  ;;  %v612_v21 = vor.u32 %v611_v56, %v607_v17  ;;  %v623_v48 = vshll.u32 %v5456_v25, 16  ;;  %4418 = vmatprep.subr.bf16.mxu0 %v4874_v30 }
  0x5f   : > { %6102 = vst [vmem:[#allocation11_spill] sm:$0xff] %v5477_v22  ;;  %4162 = vmatprep.mubr.bf16.mxu1 %v5477_v22  ;;  %v629_v1 = vshll.u32 %v5466_v49, 16  ;;  %v633_v27 = vshrl.u32 %v5466_v49, 16  ;;  %v603_v9 = vrot.slane %v602_v55, 4  ;;  %v1326_v33 = vsel %vm5271_vm5, %v3700_v7, %v1325_v35  ;;  %v5503_v22 = vld [vmem:[%s5019_s14 + $0xb4] sm:$0xf] }
  0x60   : > { %v1327_v45 = vrot.slane %v1325_v35, 4  ;;  %v622_v8 = vrot.slane %v620_v58, 4  ;;  %v613_v56 = vrot.slane %v612_v21, 4  ;;  %v625_v4 = vrot.slane %v623_v48, 5  ;;  %v5510_v48 = vld [vmem:[%s5019_s14 + $0xb8] sm:$0xf] }
  0x61   : > { %v631_v61 = vrot.slane %v629_v1, 5  ;;  %v635_v41 = vrot.slane %v633_v27, 4  ;;  %v608_v31 = vsel %vm5064_vm2, %v603_v9, %v607_v17  ;;  %v639_v57 = vshll.u32 %v5481_v14, 16  ;;  %4419 = vmatpush3.bf16.msra.mxu0 %v4874_v30  ;;  %v4882_v17 = vld [vmem:[%s6069_s1 + $0x1b0] sm:$0xff]   ;;  %v5520_v27 = vld [vmem:[%s5019_s14 + $0xbc] sm:$0x1] }
  0x62   : > { %v1329_v29 = vsel %vm5271_vm5, %v1327_v45, %v1328_v0  ;;  %v3701_v55 = vrot.slane %v5214_v5, 9  ;;  %v618_v7 = vsel %vm5064_vm2, %v613_v56, %v617_v18  ;;  %v626_v58 = vor.u32 %v625_v4, %v622_v8  ;;  %4420 = vmatprep.subr.bf16.mxu0 %v4878_v28  ;;  %v4886_v4 = vld [vmem:[%s6069_s1 + $0x1b8] sm:$0xff]  }
  0x63   : > { %v5507_v35 = vcombine.low %v1326_v33, %v1329_v29  ;;  %v636_v21 = vor.u32 %v635_v41, %v631_v61  ;;  %v5515_v0 = vcombine.low %v608_v31, %v618_v7  ;;  %v641_v5 = vrot.slane %v639_v57, 5 }
  0x64   : > { %v1332_v1 = vrot.slane %v5217_v6, 5  ;;  %v1335_v30 = vrot.slane %v5220_v10, 5  ;;  %v627_v18 = vrot.slane %v626_v58, 4  ;;  %v644_v33 = vshrl.u32 %v5503_v22, 16 }
  0x65   : > { %6103 = vst [vmem:[#allocation12_spill] sm:$0xff] %v5515_v0  ;;  %4387 = vmatmul.mubr.bf16.gmra.mrb[8].mxu0 %v5507_v35  ;;  %v637_v9 = vrot.slane %v636_v21, 4  ;;  %v647_v45 = vshll.u32 %v5503_v22, 16  ;;  %4163 = vmatmul.mubr.bf16.gmra.mrb[24].mxu1 %v5515_v0  ;;  %v653_v6 = vshll.u32 %v5510_v48, 16  ;;  %v657_v10 = vshrl.u32 %v5510_v48, 16 }
  0x66   : > { %v1333_v8 = vsel %vm5271_vm5, %v3701_v55, %v1332_v1  ;;  %v1334_v56 = vrot.slane %v1332_v1, 4  ;;  %4421 = vmatpush3.bf16.msra.mxu0 %v4878_v28  ;;  %v632_v41 = vsel %vm5064_vm2, %v627_v18, %v631_v61  ;;  %v646_v29 = vrot.slane %v644_v33, 4 }
  0x67   : > { %v642_v31 = vsel %vm5064_vm2, %v637_v9, %v641_v5  ;;  %v649_v57 = vrot.slane %v647_v45, 5  ;;  %4422 = vmatprep.subr.bf16.mxu0 %v4882_v17  ;;  %v655_v58 = vrot.slane %v653_v6, 5  ;;  %v659_v28 = vrot.slane %v657_v10, 4 }
  0x68   : > { %v5537_v55 = vcombine.low %v632_v41, %v642_v31  ;;  %v1336_v7 = vsel %vm5271_vm5, %v1334_v56, %v1335_v30  ;;  %v663_v0 = vshll.u32 %v5520_v27, 16  ;;  %v3702_v61 = vrot.slane %v5240_v32, 9  ;;  %v5552_v30 = vld [vmem:[%s6069_s1 + $0x1c0] sm:$0xff]  }
  0x69   : > { %v5541_v21 = vcombine.low %v1333_v8, %v1336_v7  ;;  %v650_v1 = vor.u32 %v649_v57, %v646_v29  ;;  %v660_v5 = vor.u32 %v659_v28, %v655_v58  ;;  %v1339_v18 = vrot.slane %v5248_v47, 5 }
  0x6a   : > { %4166 = vmatprep.mubr.bf16.mxu1 %v5537_v55  ;;  %v1342_v9 = vrot.slane %v5254_v50, 5  ;;  %v3703_v33 = vrot.slane %v5282_v40, 9  ;;  %4423 = vmatpush3.bf16.msra.mxu0 %v4882_v17  ;;  %v665_v8 = vrot.slane %v663_v0, 5  ;;  %v1346_v56 = vrot.slane %v5289_v53, 5 }
  0x6b   : > { %4390 = vmatprep.mubr.bf16.mxu0 %v5541_v21  ;;  %v651_v45 = vrot.slane %v650_v1, 4  ;;  %v1349_v6 = vrot.slane %v5297_v62, 5  ;;  %4424 = vmatprep.subr.bf16.mxu0 %v4886_v4  ;;  %v661_v10 = vrot.slane %v660_v5, 4  ;;  %v1340_v50 = vsel %vm5271_vm5, %v3702_v61, %v1339_v18 }
  0x6c   : > { %v1341_v41 = vrot.slane %v1339_v18, 4  ;;  %v3704_v17 = vrot.slane %v5312_v2, 9  ;;  %v1347_v29 = vsel %vm5271_vm5, %v3703_v33, %v1346_v56  ;;  %v1348_v57 = vrot.slane %v1346_v56, 4 }
  0x6d   : > { %v656_v31 = vsel %vm5064_vm2, %v651_v45, %v655_v58  ;;  %v1353_v0 = vrot.slane %v5326_v54, 5  ;;  %v666_v62 = vsel %vm5064_vm2, %v661_v10, %v665_v8  ;;  %v1356_v28 = vrot.slane %v5333_v16, 5 }
  0x6e   : > { %v1343_v7 = vsel %vm5271_vm5, %v1341_v41, %v1342_v9  ;;  %v3705_v1 = vrot.slane %v5350_v38, 9  ;;  %4425 = vmatpush3.bf16.msra.mxu0 %v4886_v4  ;;  %v5571_v61 = vcombine.low %v656_v31, %v666_v62  ;;  %v1350_v5 = vsel %vm5271_vm5, %v1348_v57, %v1349_v6  ;;  %v4877_v57 = vld [vmem:[%s6069_s1 + $0x88] sm:$0xff]  }
  0x6f   : > { %v5573_v58 = vcombine.low %v1340_v50, %v1343_v7  ;;  %4458 = vmatprep.subr.bf16.mxu0 %v5552_v30  ;;  %v5578_v18 = vcombine.low %v1347_v29, %v1350_v5  ;;  %v1355_v33 = vrot.slane %v1353_v0, 4  ;;  %v1360_v45 = vrot.slane %v5370_v3, 5 }
  0x70   : > { %v1363_v9 = vrot.slane %v5376_v36, 5  ;;  %4167 = vmatmul.mubr.bf16.gmra.mrb[28].mxu1 %v5571_v61  ;;  %v6104_v16 = vcombine.low %v5028_v12, %v5031_v13  ;;  %v1354_v4 = vsel %vm5271_vm5, %v3704_v17, %v1353_v0  ;;  %v1367_v6 = vrot.slane %v5392_v34, 5 }
  0x71   : > { %4391 = vmatmul.mubr.bf16.gmra.mrb[12].mxu0 %v5573_v58  ;;  %v1357_v8 = vsel %vm5271_vm5, %v1355_v33, %v1356_v28  ;;  %v1362_v56 = vrot.slane %v1360_v45, 4  ;;  %v1374_v36 = vrot.slane %v5431_v63, 5  ;;  %v1361_v10 = vsel %vm5271_vm5, %v3705_v1, %v1360_v45 }
  0x72   : > { %4186 = vmatprep.mubr.bf16.mxu1 %v6104_v16  ;;  %4394 = vmatprep.mubr.bf16.mxu0 %v5578_v18  ;;  %v5598_v13 = vcombine.low %v1354_v4, %v1357_v8  ;;  %v3706_v50 = vrot.slane %v5389_v24, 9  ;;  %v1370_v41 = vrot.slane %v5416_v42, 5  ;;  %v1369_v17 = vrot.slane %v1367_v6, 4 }
  0x73   : > { %v1364_v12 = vsel %vm5271_vm5, %v1362_v56, %v1363_v9  ;;  %v3707_v31 = vrot.slane %v5428_v59, 9  ;;  %v1376_v0 = vrot.slane %v1374_v36, 4  ;;  %v1377_v62 = vrot.slane %v5438_v20, 5 }
  0x74   : > { %v5603_v29 = vcombine.low %v1361_v10, %v1364_v12  ;;  %v1368_v7 = vsel %vm5271_vm5, %v3706_v50, %v1367_v6  ;;  %v1381_v42 = vrot.slane %v5466_v49, 5  ;;  %v5616_v28 = vcombine.low %v5240_v32, %v5248_v47  ;;  %v4881_v47 = vld [vmem:[%s6069_s1 + $0x90] sm:$0xff]   ;;  %v260_v6 = vld [vmem:[%s5019_s14 + $0xc8] sm:$0x1]  ;;  %v4926_v10 = vld [vmem:[%s5019_s14 + $0x40] sm:$0xf] }
  0x75   : > { %v1371_v20 = vsel %vm5271_vm5, %v1369_v17, %v1370_v41  ;;  %v1375_v1 = vsel %vm5271_vm5, %v3707_v31, %v1374_v36  ;;  %v3708_v5 = vrot.slane %v5456_v25, 9  ;;  %v5627_v33 = vcombine.low %v5282_v40, %v5289_v53  ;;  %v4925_v36 = vld [vmem:[%s5019_s14 + $0x3c] sm:$0xf]  ;;  %v4927_v41 = vld [vmem:[%s5019_s14 + $0x48] sm:$0xf] }
  0x76   : > { %v1378_v32 = vsel %vm5271_vm5, %v1376_v0, %v1377_v62  ;;  %v5638_v45 = vcombine.low %v5312_v2, %v5326_v54  ;;  %v5642_v40 = vcombine.low %v5350_v38, %v5370_v3  ;;  %v5646_v53 = vcombine.low %v5389_v24, %v5392_v34  ;;  %v5666_v24 = vld [vmem:[%s5019_s14 + $0xc4] sm:$0xf]  ;;  %v4928_v17 = vld [vmem:[%s5019_s14 + $0x4c] sm:$0xf] }
  0x77   : > { %v5650_v9 = vcombine.low %v5428_v59, %v5431_v63  ;;  %v5654_v16 = vcombine.low %v5456_v25, %v5466_v49  ;;  %v5656_v4 = vcombine.low %v1368_v7, %v1371_v20  ;;  %v1383_v2 = vrot.slane %v1381_v42, 4  ;;  %v4885_v25 = vld [vmem:[%s6069_s1 + $0x98] sm:$0xff]  }
  0x78   : > { %4187 = vmatmul.mubr.bf16.vlgmr.msra.gmra.mrb[0].mxu1 %v5077_v43  ;;  %v1384_v54 = vrot.slane %v5481_v14, 5  ;;  %v5661_v38 = vcombine.low %v5503_v22, %v5510_v48  ;;  %v5663_v3 = vcombine.low %v1375_v1, %v1378_v32  ;;  %v3709_v34 = vrot.slane %v5503_v22, 9  ;;  %v5680_v14 = vld [vmem:[%s5019_s14 + $0xc0] sm:$0xf] }
  0x79   : > { %4395 = vmatmul.mubr.bf16.gmra.mrb[16].mxu0 %v5598_v13  ;;  %4219 = vmatpush3.bf16.msra.mxu1 %v5341_v52  ;;  %v1388_v52 = vrot.slane %v5510_v48, 5  ;;  %v1391_v63 = vrot.slane %v5520_v27, 5  ;;  %v1382_v49 = vsel %vm5271_vm5, %v3708_v5, %v1381_v42  ;;  %v2268_v48 = vrot.slane %v5666_v24, 5  ;;  %v4889_v27 = vld [vmem:[%s6069_s1 + $0xa0] sm:$0xff]  }
  0x7a   : > { %4190 = vmatprep.mubr.bf16.mxu1 %v5153_v60  ;;  %4398 = vmatprep.mubr.bf16.mxu0 %v5603_v29  ;;  %v1385_v22 = vsel %vm5271_vm5, %v1383_v2, %v1384_v54  ;;  %v5695_v12 = vcombine.low %v4925_v36, %v4926_v10  ;;  %v5701_v31 = vcombine.low %v4927_v41, %v4928_v17  ;;  %v1983_v0 = vshll.u32 %v5680_v14, 16  ;;  %v4893_v54 = vld [vmem:[%s6069_s1 + $0xa8] sm:$0xff]   ;;  %v4897_v36 = vld [vmem:[%s6069_s1 + $0xb0] sm:$0xff]   ;;  %v4930_v10 = vld [vmem:[%s5019_s14 + $0x58] sm:$0xf] }
  0x7b   : > { %4220 = vmatprep.subr.bf16.mxu1 %v4877_v57  ;;  %v1390_v59 = vrot.slane %v1388_v52, 4  ;;  %v1389_v8 = vsel %vm5271_vm5, %v3709_v34, %v1388_v52  ;;  %v5697_v50 = vcombine.low %v1382_v49, %v1385_v22  ;;  %v1989_v62 = vshll.u32 %v5666_v24, 16 }
  0x7c   : > { %v1993_v7 = vshrl.u32 %v5666_v24, 16  ;;  %v3800_v20 = vrot.slane %v5680_v14, 9  ;;  %v2270_v1 = vrot.slane %v2268_v48, 4  ;;  %v2271_v5 = vrot.slane %v260_v6, 5 }
  0x7d   : > { %4221 = vmatpush3.bf16.msra.mxu1 %v4877_v57  ;;  %v1392_v56 = vsel %vm5271_vm5, %v1390_v59, %v1391_v63  ;;  %v1980_v57 = vshrl.u32 %v5680_v14, 16  ;;  %v1991_v52 = vrot.slane %v1989_v62, 5  ;;  %v1999_v63 = vshll.u32 %v260_v6, 16  ;;  %v4929_v6 = vld [vmem:[%s5019_s14 + $0x54] sm:$0xf]  ;;  %v4903_v62 = vld [vmem:[%s6069_s1 + $0xc0] sm:$0xff]  }
  0x7e   : > { %4222 = vmatprep.subr.bf16.mxu1 %v4881_v47  ;;  %v5707_v42 = vcombine.low %v1389_v8, %v1392_v56  ;;  %v1995_v2 = vrot.slane %v1993_v7, 4  ;;  %v2272_v49 = vsel %vm5271_vm5, %v2270_v1, %v2271_v5  ;;  %v5726_v41 = vcombine.low %v4929_v6, %v4930_v10  ;;  %v4894_v7 = vld [vmem:[%s6069_s1 + $0x1c8] sm:$0xff]   ;;  %v4902_v1 = vld [vmem:[%s6069_s1 + $0x1d8] sm:$0xff]   ;;  %v4907_v6 = vld [vmem:[%s6069_s1 + $0xd0] sm:$0xff]  }
  0x7f   : > { %v1982_v32 = vrot.slane %v1980_v57, 4  ;;  %v2001_v56 = vrot.slane %v1999_v63, 5  ;;  %v4910_v10 = vld [vmem:[%s6069_s1 + $0xd8] sm:$0xff]  }
  0x80   : > { %4191 = vmatmul.mubr.bf16.gmra.mrb[4].mxu1 %v5224_v11  ;;  %v1996_v59 = vor.u32 %v1995_v2, %v1991_v52  ;;  %v4933_v2 = vld [vmem:[%s5019_s14] sm:$0xf] }
  0x81   : > { %4399 = vmatmul.mubr.bf16.gmra.mrb[20].mxu0 %v5656_v4  ;;  %4194 = vmatprep.mubr.bf16.mxu1 %v5228_v15 }
  0x82   : > { %4402 = vmatprep.mubr.bf16.mxu0 %v5663_v3  ;;  %4223 = vmatpush3.bf16.msra.mxu1 %v4881_v47  ;;  %v1985_v47 = vrot.slane %v1983_v0, 5  ;;  %v1997_v8 = vrot.slane %v1996_v59, 4  ;;  %v4901_v0 = vld [vmem:[%s6069_s1 + $0xb8] sm:$0xff]   ;;  %v4906_v59 = vld [vmem:[%s6069_s1 + $0x1e8] sm:$0xff]  }
  0x83   : > { %4224 = vmatprep.subr.bf16.mxu1 %v4885_v25 }
  0x84   : > { %v1986_v34 = vor.u32 %v1985_v47, %v1982_v32  ;;  %v4904_v32 = vld [vmem:[%s6069_s1 + $0x1e0] sm:$0xff]   ;;  %v4932_v47 = vld [vmem:[%s5019_s14 + $0x8] sm:$0x1] }
  0x86   : > { %4225 = vmatpush3.bf16.msra.mxu1 %v4885_v25  ;;  %v2269_v25 = vsel %vm5271_vm5, %v3800_v20, %v2268_v48  ;;  %v1987_v22 = vrot.slane %v1986_v34, 4  ;;  %v4898_v20 = vld [vmem:[%s6069_s1 + $0x1d0] sm:$0xff]  }
  0x87   : > { %4226 = vmatprep.subr.bf16.mxu1 %v4889_v27  ;;  %v5728_v17 = vcombine.low %v2269_v25, %v2272_v49  ;;  %v4908_v49 = vld [vmem:[%s6069_s1 + $0x1f0] sm:$0xff]  }
  0x88   : > { %4195 = vmatmul.mubr.bf16.gmra.mrb[8].mxu1 %v5695_v12  ;;  %v1992_v48 = vsel %vm5064_vm2, %v1987_v22, %v1991_v52  ;;  %v1286_v52 = vrot.slane %v4932_v47, 5  ;;  %v6107_v47 = vld [vmem:[#allocation4_spill] sm:$0xff] }
  0x89   : > { %4403 = vmatmul.mubr.bf16.gmra.mrb[24].mxu0 %v5697_v50  ;;  %4198 = vmatprep.mubr.bf16.mxu1 %v5701_v31 }
  0x8a   : > { %4406 = vmatprep.mubr.bf16.mxu0 %v5707_v42  ;;  %4227 = vmatpush3.bf16.msra.mxu1 %v4889_v27  ;;  %v2002_v27 = vsel %vm5064_vm2, %v1997_v8, %v2001_v56  ;;  %v4912_v8 = vld [vmem:[%s6069_s1 + $0x1f8] sm:$0xff]   ;;  %v4914_v56 = vld [vmem:[%s6069_s1 + $0x200] sm:$0xff]  }
  0x8b   : > { %4228 = vmatprep.subr.bf16.mxu1 %v4893_v54  ;;  %v5734_v57 = vcombine.low %v1992_v48, %v2002_v27  ;;  %v5815_v48 = vcombine.low %v5680_v14, %v5666_v24  ;;  %v4915_v27 = vld [vmem:[%s6069_s1 + $0xe8] sm:$0xff]   ;;  %v4917_v24 = vld [vmem:[%s6069_s1 + $0xf0] sm:$0xff]  }
  0x8e   : > { %4229 = vmatpush3.bf16.msra.mxu1 %v4893_v54  ;;  %v3694_v54 = vrot.slane %v4933_v2, 9  ;;  %v4921_v2 = vld [vmem:[%s6069_s1 + $0x220] sm:$0xff]  }
  0x8f   : > { %4230 = vmatprep.subr.bf16.mxu1 %v4897_v36 }
  0x90   : > { %4199 = vmatmul.mubr.bf16.gmra.mrb[12].mxu1 %v5726_v41 }
  0x91   : > { %4407 = vmatmul.mubr.bf16.gmra.mrb[28].mxu0 %v5728_v17  ;;  %4202 = vmatprep.mubr.bf16.mxu1 %v5616_v28 }
  0x92   : > { %4426 = vmatprep.mubr.bf16.mxu0 %v5153_v60  ;;  %4231 = vmatpush3.bf16.msra.mxu1 %v4897_v36  ;;  %v4905_v36 = vld [vmem:[%s6069_s1 + $0xc8] sm:$0xff]  }
  0x93   : > { %4232 = vmatprep.subr.bf16.mxu1 %v4901_v0 }
  0x96   : > { %4233 = vmatpush3.bf16.msra.mxu1 %v4901_v0  ;;  %v5825_v0 = vld [vmem:[%s5019_s14 + $0xcc] sm:$0xf] }
  0x97   : > { %4266 = vmatprep.subr.bf16.mxu1 %v4903_v62 }
  0x98   : > { %4203 = vmatmul.mubr.bf16.gmra.mrb[16].mxu1 %v5627_v33 }
  0x99   : > { %4427 = vmatmul.mubr.bf16.vlgmr.msra.gmra.mrb[0].mxu0 %v5224_v11  ;;  %4206 = vmatprep.mubr.bf16.mxu1 %v5638_v45 }
  0x9a   : > { %4459 = vmatpush3.bf16.msra.mxu0 %v5552_v30  ;;  %4430 = vmatprep.mubr.bf16.mxu0 %v5228_v15  ;;  %v4931_v30 = vld [vmem:[%s5019_s14 + $0x4] sm:$0xf] }
  0x9b   : > { %4460 = vmatprep.subr.bf16.mxu0 %v4894_v7  ;;  %v1283_v5 = vrot.slane %v4931_v30, 5  ;;  %v6105_v30 = vld [vmem:[#allocation2_spill] sm:$0xff] }
  0x9d   : > { %v1285_v34 = vrot.slane %v1283_v5, 4  ;;  %v1284_v63 = vsel %vm5271_vm5, %v3694_v54, %v1283_v5  ;;  %v4918_v5 = vld [vmem:[%s6069_s1 + $0x210] sm:$0xff]   ;;  %v4922_v54 = vld [vmem:[%s6069_s1 + $0x228] sm:$0xff]  }
  0x9e   : > { %4461 = vmatpush3.bf16.msra.mxu0 %v4894_v7  ;;  %v4919_v7 = vld [vmem:[%s6069_s1 + $0xf8] sm:$0xff]  }
  0x9f   : > { %4462 = vmatprep.subr.bf16.mxu0 %v4898_v20  ;;  %v1287_v25 = vsel %vm5271_vm5, %v1285_v34, %v1286_v52  ;;  %v6108_v52 = vld [vmem:[#allocation5_spill] sm:$0xff]  ;;  %v6109_v34 = vld [vmem:[#allocation6_spill] sm:$0xff] }
  0xa0   : > { %4207 = vmatmul.mubr.bf16.gmra.mrb[20].mxu1 %v5642_v40  ;;  %v3726_v22 = vcombine.low %v1284_v63, %v1287_v25  ;;  %v4923_v63 = vld [vmem:[%s6069_s1 + $0x230] sm:$0xff]   ;;  %v4924_v25 = vld [vmem:[%s6069_s1 + $0x238] sm:$0xff]  }
  0xa1   : > { %4431 = vmatmul.mubr.bf16.gmra.mrb[4].mxu0 %v5695_v12  ;;  %4210 = vmatprep.mubr.bf16.mxu1 %v5646_v53 }
  0xa2   : > { %4434 = vmatprep.mubr.bf16.mxu0 %v5701_v31  ;;  %4463 = vmatpush3.bf16.msra.mxu0 %v4898_v20  ;;  %v4916_v20 = vld [vmem:[%s6069_s1 + $0x208] sm:$0xff]  }
  0xa3   : > { %4464 = vmatprep.subr.bf16.mxu0 %v4902_v1 }
  0xa6   : > { %4465 = vmatpush3.bf16.msra.mxu0 %v4902_v1  ;;  %v4934_v1 = vld [vmem:[%s6069_s1 + $0x100] sm:$0xff]  }
  0xa7   : > { %4466 = vmatprep.subr.bf16.mxu0 %v4904_v32 }
  0xa8   : > { %4211 = vmatmul.mubr.bf16.gmra.mrb[24].mxu1 %v5650_v9 }
  0xa9   : > { %4435 = vmatmul.mubr.bf16.gmra.mrb[8].mxu0 %v5726_v41  ;;  %4214 = vmatprep.mubr.bf16.mxu1 %v5654_v16 }
  0xaa   : > { %4438 = vmatprep.mubr.bf16.mxu0 %v5616_v28  ;;  %4467 = vmatpush3.bf16.msra.mxu0 %v4904_v32  ;;  %v4920_v32 = vld [vmem:[%s6069_s1 + $0x218] sm:$0xff]  }
  0xab   : > { %4468 = vmatprep.subr.bf16.mxu0 %v4906_v59 }
  0xae   : > { %4469 = vmatpush3.bf16.msra.mxu0 %v4906_v59  ;;  %v6110_v59 = vld [vmem:[#allocation7_spill] sm:$0xff] }
  0xaf   : > { %4470 = vmatprep.subr.bf16.mxu0 %v4908_v49 }
  0xb0   : > { %4215 = vmatmul.mubr.bf16.gmra.mrb[28].mxu1 %v5661_v38 }
  0xb1   : > { %4439 = vmatmul.mubr.bf16.gmra.mrb[12].mxu0 %v5627_v33  ;;  %4234 = vmatprep.mubr.bf16.mxu1 %v3726_v22  ;;  %v6112_v22 = vld [vmem:[#allocation9_spill] sm:$0xff] }
  0xb2   : > { %4442 = vmatprep.mubr.bf16.mxu0 %v5638_v45  ;;  %4471 = vmatpush3.bf16.msra.mxu0 %v4908_v49  ;;  %v6111_v49 = vld [vmem:[#allocation8_spill] sm:$0xff] }
  0xb3   : > { %4472 = vmatprep.subr.bf16.mxu0 %v4912_v8 }
  0xb6   : > { %4473 = vmatpush3.bf16.msra.mxu0 %v4912_v8  ;;  %v6113_v8 = vld [vmem:[#allocation10_spill] sm:$0xff] }
  0xb7   : > { %4506 = vmatprep.subr.bf16.mxu0 %v4914_v56 }
  0xb8   : > { %4235 = vmatmul.mubr.bf16.vlgmr.msra.gmra.mrb[0].mxu1 %v5319_v39  ;;  %v4913_v39 = vld [vmem:[%s6069_s1 + $0xe0] sm:$0xff]  }
  0xb9   : > { %4443 = vmatmul.mubr.bf16.gmra.mrb[16].mxu0 %v5642_v40  ;;  %4267 = vmatpush3.bf16.msra.mxu1 %v4903_v62  ;;  %v5828_v62 = vld [vmem:[%s5019_s14 + $0xd0] sm:$0xf] }
  0xba   : > { %4238 = vmatprep.mubr.bf16.mxu1 %v5365_v26  ;;  %4446 = vmatprep.mubr.bf16.mxu0 %v5646_v53  ;;  %v3842_v14 = vcombine.low %v5825_v0, %v5828_v62 }
  0xbb   : > { %4268 = vmatprep.subr.bf16.mxu1 %v4905_v36 }
  0xbd   : > { %4269 = vmatpush3.bf16.msra.mxu1 %v4905_v36  ;;  %v2803_v36 = vshll.u32 %v5825_v0, 16 }
  0xbe   : > { %4270 = vmatprep.subr.bf16.mxu1 %v4907_v6 }
  0xc0   : > { %4239 = vmatmul.mubr.bf16.gmra.mrb[4].mxu1 %v5405_v46 }
  0xc1   : > { %4447 = vmatmul.mubr.bf16.gmra.mrb[20].mxu0 %v5650_v9  ;;  %4242 = vmatprep.mubr.bf16.mxu1 %v5442_v44 }
  0xc2   : > { %4450 = vmatprep.mubr.bf16.mxu0 %v5654_v16  ;;  %4271 = vmatpush3.bf16.msra.mxu1 %v4907_v6  ;;  %v2813_v6 = vshrl.u32 %v5828_v62, 16 }
  0xc3   : > { %4272 = vmatprep.subr.bf16.mxu1 %v4910_v10 }
  0xc6   : > { %4273 = vmatpush3.bf16.msra.mxu1 %v4910_v10  ;;  %v6114_v10 = vld [vmem:[#allocation11_spill] sm:$0xff] }
  0xc7   : > { %4274 = vmatprep.subr.bf16.mxu1 %v4913_v39 }
  0xc8   : > { %4243 = vmatmul.mubr.bf16.gmra.mrb[8].mxu1 %v5475_v19 }
  0xc9   : > { %4451 = vmatmul.mubr.bf16.gmra.mrb[24].mxu0 %v5661_v38  ;;  %4246 = vmatprep.mubr.bf16.mxu1 %v5507_v35 }
  0xca   : > { %4454 = vmatprep.mubr.bf16.mxu0 %v5815_v48  ;;  %4275 = vmatpush3.bf16.msra.mxu1 %v4913_v39 }
  0xcb   : > { %4276 = vmatprep.subr.bf16.mxu1 %v4915_v27 }
  0xce   : > { %4277 = vmatpush3.bf16.msra.mxu1 %v4915_v27  ;;  %v2805_v27 = vrot.slane %v2803_v36, 5 }
  0xcf   : > { %4278 = vmatprep.subr.bf16.mxu1 %v4917_v24 }
  0xd0   : > { %4247 = vmatmul.mubr.bf16.gmra.mrb[12].mxu1 %v5541_v21 }
  0xd1   : > { %4455 = vmatmul.mubr.bf16.gmra.mrb[28].mxu0 %v3842_v14  ;;  %4250 = vmatprep.mubr.bf16.mxu1 %v5573_v58  ;;  %v2815_v14 = vrot.slane %v2813_v6, 4 }
  0xd2   : > { %4474 = vmatprep.mubr.bf16.mxu0 %v5141_v51  ;;  %4279 = vmatpush3.bf16.msra.mxu1 %v4917_v24  ;;  %v6106_v51 = vld [vmem:[#allocation3_spill] sm:$0xff] }
  0xd3   : > { %4280 = vmatprep.subr.bf16.mxu1 %v4919_v7 }
  0xd6   : > { %4281 = vmatpush3.bf16.msra.mxu1 %v4919_v7  ;;  %v4936_v7 = vld [vmem:[%s6069_s1 + $0x110] sm:$0xff]  }
  0xd7   : > { %4554 = vmatprep.subr.bf16.mxu1 %v4934_v1 }
  0xd8   : > { %4251 = vmatmul.mubr.bf16.gmra.mrb[16].mxu1 %v5578_v18 }
  0xd9   : > { %4475 = vmatmul.mubr.bf16.vlgmr.msra.gmra.mrb[0].mxu0 %v6105_v30  ;;  %4254 = vmatprep.mubr.bf16.mxu1 %v5598_v13 }
  0xda   : > { %4507 = vmatpush3.bf16.msra.mxu0 %v4914_v56  ;;  %4478 = vmatprep.mubr.bf16.mxu0 %v6106_v51  ;;  %v2800_v56 = vshrl.u32 %v5825_v0, 16 }
  0xdb   : > { %4508 = vmatprep.subr.bf16.mxu0 %v4916_v20 }
  0xdc   : > { %v2802_v39 = vrot.slane %v2800_v56, 4 }
  0xde   : > { %4509 = vmatpush3.bf16.msra.mxu0 %v4916_v20  ;;  %v6115_v20 = vld [vmem:[#allocation12_spill] sm:$0xff] }
  0xdf   : > { %4510 = vmatprep.subr.bf16.mxu0 %v4918_v5 }
  0xe0   : > { %4255 = vmatmul.mubr.bf16.gmra.mrb[20].mxu1 %v5603_v29 }
  0xe1   : > { %4479 = vmatmul.mubr.bf16.gmra.mrb[4].mxu0 %v6107_v47  ;;  %4258 = vmatprep.mubr.bf16.mxu1 %v5656_v4 }
  0xe2   : > { %4482 = vmatprep.mubr.bf16.mxu0 %v6108_v52  ;;  %4511 = vmatpush3.bf16.msra.mxu0 %v4918_v5  ;;  %v4937_v5 = vld [vmem:[%s6069_s1 + $0x118] sm:$0xff]  }
  0xe3   : > { %4512 = vmatprep.subr.bf16.mxu0 %v4920_v32 }
  0xe6   : > { %4513 = vmatpush3.bf16.msra.mxu0 %v4920_v32 }
  0xe7   : > { %4514 = vmatprep.subr.bf16.mxu0 %v4921_v2 }
  0xe8   : > { %4259 = vmatmul.mubr.bf16.gmra.mrb[24].mxu1 %v5663_v3 }
  0xe9   : > { %4483 = vmatmul.mubr.bf16.gmra.mrb[8].mxu0 %v6109_v34  ;;  %4262 = vmatprep.mubr.bf16.mxu1 %v5697_v50 }
  0xea   : > { %4486 = vmatprep.mubr.bf16.mxu0 %v6110_v59  ;;  %4515 = vmatpush3.bf16.msra.mxu0 %v4921_v2 }
  0xeb   : > { %4516 = vmatprep.subr.bf16.mxu0 %v4922_v54 }
  0xee   : > { %4517 = vmatpush3.bf16.msra.mxu0 %v4922_v54  ;;  %v4939_v54 = vld [vmem:[%s6069_s1 + $0x128] sm:$0xff]  }
  0xef   : > { %4518 = vmatprep.subr.bf16.mxu0 %v4923_v63 }
  0xf0   : > { %4263 = vmatmul.mubr.bf16.gmra.mrb[28].mxu1 %v5707_v42 }
  0xf1   : > { %4487 = vmatmul.mubr.bf16.gmra.mrb[12].mxu0 %v6111_v49  ;;  %4282 = vmatprep.mubr.bf16.mxu1 %v5077_v43  ;;  %v2809_v43 = vshll.u32 %v5828_v62, 16 }
  0xf2   : > { %4490 = vmatprep.mubr.bf16.mxu0 %v6112_v22  ;;  %4519 = vmatpush3.bf16.msra.mxu0 %v4923_v63 }
  0xf3   : > { %4520 = vmatprep.subr.bf16.mxu0 %v4924_v25  ;;  %v2811_v24 = vrot.slane %v2809_v43, 5 }
  0xf5   : > { %v2816_v30 = vor.u32 %v2815_v14, %v2811_v24 }
  0xf6   : > { %4521 = vmatpush3.bf16.msra.mxu0 %v4924_v25 }
  0xf7   : > { %v2817_v47 = vrot.slane %v2816_v30, 4 }
  0xf8   : > { %4283 = vmatmul.mubr.bf16.vlgmr.msra.gmra.mrb[0].mxu1 %v5153_v60  ;;  %v4935_v60 = vld [vmem:[%s6069_s1 + $0x108] sm:$0xff]  }
  0xf9   : > { %4491 = vmatmul.mubr.bf16.gmra.mrb[16].mxu0 %v6113_v8  ;;  %4562 = vmatpush3.bf16.msra.mxu1 %v4934_v1  ;;  %v2806_v1 = vor.u32 %v2805_v27, %v2802_v39 }
  0xfa   : > { %4286 = vmatprep.mubr.bf16.mxu1 %v5224_v11  ;;  %4494 = vmatprep.mubr.bf16.mxu0 %v6114_v10  ;;  %v5896_v11 = vld [vmem:[%s5019_s14 + $0xd4] sm:$0x1] }
  0xfb   : > { %4555 = vmatprep.subr.bf16.mxu1 %v4935_v60  ;;  %v2819_v51 = vshll.u32 %v5896_v11, 16  ;;  %v2807_v32 = vrot.slane %v2806_v1, 4 }
  0xfd   : > { %4563 = vmatpush3.bf16.msra.mxu1 %v4935_v60  ;;  %v2821_v52 = vrot.slane %v2819_v51, 5 }
  0xfe   : > { %4556 = vmatprep.subr.bf16.mxu1 %v4936_v7 }
  0xff   : > { %v2822_v2 = vsel %vm5064_vm2, %v2817_v47, %v2821_v52 }
 0x100   : > { %4287 = vmatmul.mubr.bf16.gmra.mrb[4].mxu1 %v5228_v15  ;;  %v4938_v15 = vld [vmem:[%s6069_s1 + $0x120] sm:$0xff]  }
 0x101   : > { %4495 = vmatmul.mubr.bf16.gmra.mrb[20].mxu0 %v6115_v20  ;;  %4290 = vmatprep.mubr.bf16.mxu1 %v5695_v12  ;;  %v2812_v12 = vsel %vm5064_vm2, %v2807_v32, %v2811_v24 }
 0x102   : > { %4498 = vmatprep.mubr.bf16.mxu0 %v5537_v55  ;;  %4564 = vmatpush3.bf16.msra.mxu1 %v4936_v7  ;;  %v3867_v34 = vcombine.low %v2812_v12, %v2822_v2 }
 0x103   : > { %4557 = vmatprep.subr.bf16.mxu1 %v4937_v5 }
 0x106   : > { %4565 = vmatpush3.bf16.msra.mxu1 %v4937_v5 }
 0x107   : > { %4558 = vmatprep.subr.bf16.mxu1 %v4938_v15 }
 0x108   : > { %4291 = vmatmul.mubr.bf16.gmra.mrb[8].mxu1 %v5701_v31  ;;  %v4940_v31 = vld [vmem:[%s6069_s1 + $0x130] sm:$0xff]  }
 0x109   : > { %4499 = vmatmul.mubr.bf16.gmra.mrb[24].mxu0 %v5571_v61  ;;  %4294 = vmatprep.mubr.bf16.mxu1 %v5726_v41 }
 0x10a   : > { %4502 = vmatprep.mubr.bf16.mxu0 %v5734_v57  ;;  %4566 = vmatpush3.bf16.msra.mxu1 %v4938_v15 }
 0x10b   : > { %4559 = vmatprep.subr.bf16.mxu1 %v4939_v54 }
 0x10e   : > { %4567 = vmatpush3.bf16.msra.mxu1 %v4939_v54 }
 0x10f   : > { %4560 = vmatprep.subr.bf16.mxu1 %v4940_v31 }
 0x110   : > { %4295 = vmatmul.mubr.bf16.gmra.mrb[12].mxu1 %v5616_v28 }
 0x111   : > { %4503 = vmatmul.mubr.bf16.gmra.mrb[28].mxu0 %v3867_v34  ;;  %4298 = vmatprep.mubr.bf16.mxu1 %v5627_v33 }
 0x112   : > { %4522 = vmatprep.mubr.bf16.mxu0 %v5365_v26  ;;  %4568 = vmatpush3.bf16.msra.mxu1 %v4940_v31  ;;  %v3088_v26 = vrot.slane %v5828_v62, 5 }
 0x113   : > { %4561 = vmatprep.subr.bf16.mxu1 %v4941_v37 }
 0x116   : > { %4569 = vmatpush3.bf16.msra.mxu1 %v4941_v37 }
 0x118   : > { %4299 = vmatmul.mubr.bf16.gmra.mrb[16].mxu1 %v5638_v45 }
 0x119   : > { %4523 = vmatmul.mubr.bf16.vlgmr.msra.gmra.mrb[0].mxu0 %v5405_v46  ;;  %4302 = vmatprep.mubr.bf16.mxu1 %v5642_v40  ;;  %v3876_v46 = vrot.slane %v5825_v0, 9 }
 0x11a   : > { %4526 = vmatprep.mubr.bf16.mxu0 %v5442_v44  ;;  %v3090_v44 = vrot.slane %v3088_v26, 4 }
 0x120   : > { %4303 = vmatmul.mubr.bf16.gmra.mrb[20].mxu1 %v5646_v53 }
 0x121   : > { %4527 = vmatmul.mubr.bf16.gmra.mrb[4].mxu0 %v5475_v19  ;;  %4306 = vmatprep.mubr.bf16.mxu1 %v5650_v9  ;;  %v3091_v19 = vrot.slane %v5896_v11, 5 }
 0x122   : > { %4530 = vmatprep.mubr.bf16.mxu0 %v5507_v35  ;;  %v3089_v35 = vsel %vm5271_vm5, %v3876_v46, %v3088_v26 }
 0x128   : > { %4307 = vmatmul.mubr.bf16.gmra.mrb[24].mxu1 %v5654_v16 }
 0x129   : > { %4531 = vmatmul.mubr.bf16.gmra.mrb[8].mxu0 %v5541_v21  ;;  %4310 = vmatprep.mubr.bf16.mxu1 %v5661_v38  ;;  %v3092_v21 = vsel %vm5271_vm5, %v3090_v44, %v3091_v19 }
 0x12a   : > { %4534 = vmatprep.mubr.bf16.mxu0 %v5573_v58  ;;  %v3893_v58 = vcombine.low %v3089_v35, %v3092_v21 }
 0x130   : > { %4311 = vmatmul.mubr.bf16.gmra.mrb[28].mxu1 %v5815_v48 }
 0x131   : > { %4535 = vmatmul.mubr.bf16.gmra.mrb[12].mxu0 %v5578_v18  ;;  %4346 = vmatprep.mubr.bf16.mxu1 %v6111_v49 }
 0x132   : > { %4538 = vmatprep.mubr.bf16.mxu0 %v5598_v13 }
 0x138   : > { %4347 = vmatmul.mubr.bf16.vlgmr.msra.gmra.mrb[16].mxu1 %v6112_v22 }
 0x139   : > { %4539 = vmatmul.mubr.bf16.gmra.mrb[16].mxu0 %v5603_v29  ;;  %4350 = vmatprep.mubr.bf16.mxu1 %v6113_v8 }
 0x13a   : > { %4542 = vmatprep.mubr.bf16.mxu0 %v5656_v4 }
 0x140   : > { %4351 = vmatmul.mubr.bf16.gmra.mrb[20].mxu1 %v6114_v10 }
 0x141   : > { %4543 = vmatmul.mubr.bf16.gmra.mrb[20].mxu0 %v5663_v3  ;;  %4354 = vmatprep.mubr.bf16.mxu1 %v6115_v20 }
 0x142   : > { %4546 = vmatprep.mubr.bf16.mxu0 %v5697_v50 }
 0x148   : > { %4355 = vmatmul.mubr.bf16.gmra.mrb[24].mxu1 %v5537_v55 }
 0x149   : > { %4547 = vmatmul.mubr.bf16.gmra.mrb[24].mxu0 %v5707_v42  ;;  %4358 = vmatprep.mubr.bf16.mxu1 %v5571_v61  ;;  %v5983_v42 = vld [vmem:[%s6070_s2] ss:$0 sm:$0xff] }
 0x14a   : > { %4550 = vmatprep.mubr.bf16.mxu0 %v5728_v17 }
 0x150   : > { %4359 = vmatmul.mubr.bf16.gmra.mrb[28].mxu1 %v5734_v57 }
 0x151   : > { %4551 = vmatmul.mubr.bf16.gmra.mrb[28].mxu0 %v3893_v58 }
 0x1cb   : > { %v4284_v18 = vpop.f32.mrb[0].mxu1 }
 0x1cc   : > { %v1820_v13 = vpop.f32.mrb[1].mxu1 }
 0x1cd   : > { %v4285_v55 = vpop.f32.mrb[2].mxu1 }
 0x1ce   : > { %v1823_v29 = vpop.f32.mrb[3].mxu1 }
 0x1d3   : > { %v4288_v28 = vpop.f32.mrb[4].mxu1 }
 0x1d4   : > { %v1836_v33 = vpop.f32.mrb[5].mxu1 }
 0x1d5   : > { %v4289_v61 = vpop.f32.mrb[6].mxu1 }
 0x1d6   : > { %v1839_v45 = vpop.f32.mrb[7].mxu1 }
 0x1db   : > { %v4292_v40 = vpop.f32.mrb[8].mxu1 }
 0x1dc   : > { %v5965_v53 = vpop.f32.mrb[9].mxu1 }
 0x1dd   : > { %v5967_v9 = vpop.f32.mrb[10].mxu1 }
 0x1de   : > { %v5969_v23 = vpop.f32.mrb[11].mxu1 }
 0x1e3   : > { %v5971_v16 = vpop.f32.mrb[12].mxu1 }
 0x1e4   : > { %v5973_v4 = vpop.f32.mrb[13].mxu1 }
 0x1e5   : > { %v5975_v38 = vpop.f32.mrb[14].mxu1 }
 0x1e6   : > { %v5977_v3 = vpop.f32.mrb[15].mxu1 }
 0x1ec   : > { %v4524_v50 = vpop.f32.mrb[0].mxu0 }
 0x1ed   : > { %v4570_v41 = vadd.f32 %v4524_v50, %v4284_v18  ;;  %v3196_v17 = vpop.f32.mrb[1].mxu0 }
 0x1ee   : > { %v4571_v57 = vadd.f32 %v3196_v17, %v1820_v13  ;;  %v4525_v48 = vpop.f32.mrb[2].mxu0 }
 0x1ef   : > { %v3364_v0 = vadd.f32 %v4570_v41, %v5983_v42  ;;  %v4572_v62 = vadd.f32 %v4525_v48, %v4285_v55  ;;  %v3199_v59 = vpop.f32.mrb[3].mxu0 }
 0x1f0   : > { %v3362_v63 = vadd.f32 %v4571_v57, %v5983_v42  ;;  %v4573_v25 = vadd.f32 %v3199_v59, %v1823_v29 }
 0x1f1   : > { %3396 = vst [vmem:[%s5988_s23 + $0x10] sm:$0xff] %v3364_v0  ;;  %v3365_v49 = vadd.f32 %v4572_v62, %v5983_v42  ;;  %v3465_v60 = vmul.f32 %v3364_v0, %v3364_v0 }
 0x1f2   : > { %3394 = vst [vmem:[%s5988_s23] sm:$0xff] %v3362_v63  ;;  %v3363_v22 = vadd.f32 %v4573_v25, %v5983_v42  ;;  %v3463_v8 = vmul.f32 %v3362_v63, %v3362_v63 }
 0x1f3   : > { %3397 = vst [vmem:[%s5988_s23 + $0x18] sm:$0xff] %v3365_v49  ;;  %v3466_v7 = vmul.f32 %v3365_v49, %v3365_v49 }
 0x1f4   : > { %3395 = vst [vmem:[%s5988_s23 + $0x8] sm:$0xff] %v3363_v22  ;;  %v3426_v56 = vadd.f32 %v3363_v22, %v3362_v63  ;;  %v3464_v36 = vmul.f32 %v3363_v22, %v3363_v22  ;;  %v4528_v6 = vpop.f32.mrb[4].mxu0 }
 0x1f5   : > { %v4574_v43 = vadd.f32 %v4528_v6, %v4288_v28  ;;  %v3212_v10 = vpop.f32.mrb[5].mxu0 }
 0x1f6   : > { %v3427_v39 = vadd.f32 %v3426_v56, %v3364_v0  ;;  %v3495_v27 = vadd.f32 %v3464_v36, %v3463_v8  ;;  %v4575_v24 = vadd.f32 %v3212_v10, %v1836_v33  ;;  %v4529_v14 = vpop.f32.mrb[6].mxu0 }
 0x1f7   : > { %v3368_v11 = vadd.f32 %v4574_v43, %v5983_v42  ;;  %v4576_v20 = vadd.f32 %v4529_v14, %v4289_v61  ;;  %v3215_v1 = vpop.f32.mrb[7].mxu0 }
 0x1f8   : > { %v3496_v30 = vadd.f32 %v3495_v27, %v3465_v60  ;;  %v3366_v51 = vadd.f32 %v4575_v24, %v5983_v42  ;;  %v3428_v5 = vadd.f32 %v3427_v39, %v3365_v49  ;;  %v4577_v32 = vadd.f32 %v3215_v1, %v1839_v45 }
 0x1f9   : > { %3400 = vst [vmem:[%s5988_s23 + $0x30] sm:$0xff] %v3368_v11  ;;  %v3369_v47 = vadd.f32 %v4576_v20, %v5983_v42  ;;  %v3469_v44 = vmul.f32 %v3368_v11, %v3368_v11 }
 0x1fa   : > { %3398 = vst [vmem:[%s5988_s23 + $0x20] sm:$0xff] %v3366_v51  ;;  %v3429_v52 = vadd.f32 %v3428_v5, %v3366_v51  ;;  %v3467_v15 = vmul.f32 %v3366_v51, %v3366_v51  ;;  %v3497_v12 = vadd.f32 %v3496_v30, %v3466_v7  ;;  %v3367_v2 = vadd.f32 %v4577_v32, %v5983_v42 }
 0x1fb   : > { %3401 = vst [vmem:[%s5988_s23 + $0x38] sm:$0xff] %v3369_v47  ;;  %v3470_v18 = vmul.f32 %v3369_v47, %v3369_v47 }
 0x1fc   : > { %v3498_v54 = vadd.f32 %v3497_v12, %v3467_v15  ;;  %3399 = vst [vmem:[%s5988_s23 + $0x28] sm:$0xff] %v3367_v2  ;;  %v3430_v34 = vadd.f32 %v3429_v52, %v3367_v2  ;;  %v3468_v31 = vmul.f32 %v3367_v2, %v3367_v2  ;;  %v4532_v37 = vpop.f32.mrb[8].mxu0 }
 0x1fd   : > { %v4578_v26 = vadd.f32 %v4532_v37, %v4292_v40  ;;  %v3228_v46 = vpop.f32.mrb[9].mxu0 }
 0x1fe   : > { %v3431_v19 = vadd.f32 %v3430_v34, %v3368_v11  ;;  %v3499_v35 = vadd.f32 %v3498_v54, %v3468_v31  ;;  %v4579_v21 = vadd.f32 %v3228_v46, %v5965_v53  ;;  %v4533_v58 = vpop.f32.mrb[10].mxu0 }
 0x1ff   : > { %v3372_v13 = vadd.f32 %v4578_v26, %v5983_v42  ;;  %v4580_v55 = vadd.f32 %v4533_v58, %v5967_v9  ;;  %v3231_v29 = vpop.f32.mrb[11].mxu0 }
 0x200   : > { %v3500_v28 = vadd.f32 %v3499_v35, %v3469_v44  ;;  %v3370_v33 = vadd.f32 %v4579_v21, %v5983_v42  ;;  %v3432_v61 = vadd.f32 %v3431_v19, %v3369_v47  ;;  %v4581_v45 = vadd.f32 %v3231_v29, %v5969_v23 }
 0x201   : > { %3404 = vst [vmem:[%s5988_s23 + $0x50] sm:$0xff] %v3372_v13  ;;  %v3373_v40 = vadd.f32 %v4580_v55, %v5983_v42  ;;  %v3473_v23 = vmul.f32 %v3372_v13, %v3372_v13 }
 0x202   : > { %3402 = vst [vmem:[%s5988_s23 + $0x40] sm:$0xff] %v3370_v33  ;;  %v3433_v53 = vadd.f32 %v3432_v61, %v3370_v33  ;;  %v3471_v50 = vmul.f32 %v3370_v33, %v3370_v33  ;;  %v3501_v41 = vadd.f32 %v3500_v28, %v3470_v18  ;;  %v3371_v17 = vadd.f32 %v4581_v45, %v5983_v42 }
 0x203   : > { %3405 = vst [vmem:[%s5988_s23 + $0x58] sm:$0xff] %v3373_v40  ;;  %v3474_v8 = vmul.f32 %v3373_v40, %v3373_v40 }
 0x204   : > { %v3502_v57 = vadd.f32 %v3501_v41, %v3471_v50  ;;  %3403 = vst [vmem:[%s5988_s23 + $0x48] sm:$0xff] %v3371_v17  ;;  %v3434_v9 = vadd.f32 %v3433_v53, %v3371_v17  ;;  %v3472_v48 = vmul.f32 %v3371_v17, %v3371_v17  ;;  %v4536_v0 = vpop.f32.mrb[12].mxu0 }
 0x205   : > { %v4582_v62 = vadd.f32 %v4536_v0, %v5971_v16  ;;  %v3244_v59 = vpop.f32.mrb[13].mxu0 }
 0x206   : > { %v3435_v63 = vadd.f32 %v3434_v9, %v3372_v13  ;;  %v3503_v25 = vadd.f32 %v3502_v57, %v3472_v48  ;;  %v4583_v49 = vadd.f32 %v3244_v59, %v5973_v4  ;;  %v4537_v22 = vpop.f32.mrb[14].mxu0 }
 0x207   : > { %v3376_v56 = vadd.f32 %v4582_v62, %v5983_v42  ;;  %v4584_v36 = vadd.f32 %v4537_v22, %v5975_v38  ;;  %v3247_v6 = vpop.f32.mrb[15].mxu0 }
 0x208   : > { %v3504_v43 = vadd.f32 %v3503_v25, %v3473_v23  ;;  %v3374_v10 = vadd.f32 %v4583_v49, %v5983_v42  ;;  %v3436_v16 = vadd.f32 %v3435_v63, %v3373_v40  ;;  %v4585_v60 = vadd.f32 %v3247_v6, %v5977_v3 }
 0x209   : > { %3408 = vst [vmem:[%s5988_s23 + $0x70] sm:$0xff] %v3376_v56  ;;  %v3377_v39 = vadd.f32 %v4584_v36, %v5983_v42  ;;  %v3477_v3 = vmul.f32 %v3376_v56, %v3376_v56 }
 0x20a   : > { %3406 = vst [vmem:[%s5988_s23 + $0x60] sm:$0xff] %v3374_v10  ;;  %v3437_v4 = vadd.f32 %v3436_v16, %v3374_v10  ;;  %v3475_v27 = vmul.f32 %v3374_v10, %v3374_v10  ;;  %v3505_v24 = vadd.f32 %v3504_v43, %v3474_v8  ;;  %v3375_v14 = vadd.f32 %v4585_v60, %v5983_v42 }
 0x20b   : > { %3409 = vst [vmem:[%s5988_s23 + $0x78] sm:$0xff] %v3377_v39  ;;  %v4348_v20 = vpop.f32.mrb[16].mxu1  ;;  %v3478_v2 = vmul.f32 %v3377_v39, %v3377_v39 }
 0x20c   : > { %v3506_v7 = vadd.f32 %v3505_v24, %v3475_v27  ;;  %3407 = vst [vmem:[%s5988_s23 + $0x68] sm:$0xff] %v3375_v14  ;;  %v3438_v38 = vadd.f32 %v3437_v4, %v3375_v14  ;;  %v3476_v11 = vmul.f32 %v3375_v14, %v3375_v14  ;;  %v4540_v1 = vpop.f32.mrb[16].mxu0  ;;  %v2170_v51 = vpop.f32.mrb[17].mxu1 }
 0x20d   : > { %v4586_v30 = vadd.f32 %v4540_v1, %v4348_v20  ;;  %v3260_v5 = vpop.f32.mrb[17].mxu0  ;;  %v4349_v15 = vpop.f32.mrb[18].mxu1 }
 0x20e   : > { %v3439_v32 = vadd.f32 %v3438_v38, %v3376_v56  ;;  %v3507_v47 = vadd.f32 %v3506_v7, %v3476_v11  ;;  %v4587_v52 = vadd.f32 %v3260_v5, %v2170_v51  ;;  %v4541_v12 = vpop.f32.mrb[18].mxu0  ;;  %v2173_v31 = vpop.f32.mrb[19].mxu1 }
 0x20f   : > { %v3380_v54 = vadd.f32 %v4586_v30, %v5983_v42  ;;  %v4588_v34 = vadd.f32 %v4541_v12, %v4349_v15  ;;  %v3263_v37 = vpop.f32.mrb[19].mxu0 }
 0x210   : > { %v3508_v26 = vadd.f32 %v3507_v47, %v3477_v3  ;;  %v3378_v46 = vadd.f32 %v4587_v52, %v5983_v42  ;;  %v3440_v44 = vadd.f32 %v3439_v32, %v3377_v39  ;;  %v4589_v19 = vadd.f32 %v3263_v37, %v2173_v31 }
 0x211   : > { %3412 = vst [vmem:[%s5988_s23 + $0x90] sm:$0xff] %v3380_v54  ;;  %v3381_v35 = vadd.f32 %v4588_v34, %v5983_v42  ;;  %v3481_v50 = vmul.f32 %v3380_v54, %v3380_v54 }
 0x212   : > { %3410 = vst [vmem:[%s5988_s23 + $0x80] sm:$0xff] %v3378_v46  ;;  %v3441_v21 = vadd.f32 %v3440_v44, %v3378_v46  ;;  %v3479_v58 = vmul.f32 %v3378_v46, %v3378_v46  ;;  %v3509_v18 = vadd.f32 %v3508_v26, %v3478_v2  ;;  %v3379_v13 = vadd.f32 %v4589_v19, %v5983_v42 }
 0x213   : > { %3413 = vst [vmem:[%s5988_s23 + $0x98] sm:$0xff] %v3381_v35  ;;  %v4352_v33 = vpop.f32.mrb[20].mxu1  ;;  %v3482_v0 = vmul.f32 %v3381_v35, %v3381_v35 }
 0x214   : > { %v3510_v55 = vadd.f32 %v3509_v18, %v3479_v58  ;;  %3411 = vst [vmem:[%s5988_s23 + $0x88] sm:$0xff] %v3379_v13  ;;  %v3442_v29 = vadd.f32 %v3441_v21, %v3379_v13  ;;  %v3480_v28 = vmul.f32 %v3379_v13, %v3379_v13  ;;  %v4544_v61 = vpop.f32.mrb[20].mxu0  ;;  %v2186_v40 = vpop.f32.mrb[21].mxu1 }
 0x215   : > { %v4590_v45 = vadd.f32 %v4544_v61, %v4352_v33  ;;  %v3276_v53 = vpop.f32.mrb[21].mxu0  ;;  %v4353_v9 = vpop.f32.mrb[22].mxu1 }
 0x216   : > { %v3443_v41 = vadd.f32 %v3442_v29, %v3380_v54  ;;  %v3511_v17 = vadd.f32 %v3510_v55, %v3480_v28  ;;  %v4591_v57 = vadd.f32 %v3276_v53, %v2186_v40  ;;  %v4545_v48 = vpop.f32.mrb[22].mxu0  ;;  %v2189_v23 = vpop.f32.mrb[23].mxu1 }
 0x217   : > { %v3384_v62 = vadd.f32 %v4590_v45, %v5983_v42  ;;  %v4592_v59 = vadd.f32 %v4545_v48, %v4353_v9  ;;  %v3279_v63 = vpop.f32.mrb[23].mxu0 }
 0x218   : > { %v3512_v25 = vadd.f32 %v3511_v17, %v3481_v50  ;;  %v3382_v49 = vadd.f32 %v4591_v57, %v5983_v42  ;;  %v3444_v22 = vadd.f32 %v3443_v41, %v3381_v35  ;;  %v4593_v8 = vadd.f32 %v3279_v63, %v2189_v23 }
 0x219   : > { %3416 = vst [vmem:[%s5988_s23 + $0xb0] sm:$0xff] %v3384_v62  ;;  %v3385_v56 = vadd.f32 %v4592_v59, %v5983_v42  ;;  %v3485_v38 = vmul.f32 %v3384_v62, %v3384_v62 }
 0x21a   : > { %3414 = vst [vmem:[%s5988_s23 + $0xa0] sm:$0xff] %v3382_v49  ;;  %v3445_v36 = vadd.f32 %v3444_v22, %v3382_v49  ;;  %v3483_v6 = vmul.f32 %v3382_v49, %v3382_v49  ;;  %v3513_v43 = vadd.f32 %v3512_v25, %v3482_v0  ;;  %v3383_v10 = vadd.f32 %v4593_v8, %v5983_v42 }
 0x21b   : > { %3417 = vst [vmem:[%s5988_s23 + $0xb8] sm:$0xff] %v3385_v56  ;;  %v4356_v4 = vpop.f32.mrb[24].mxu1  ;;  %v3486_v5 = vmul.f32 %v3385_v56, %v3385_v56 }
 0x21c   : > { %v3514_v16 = vadd.f32 %v3513_v43, %v3483_v6  ;;  %3415 = vst [vmem:[%s5988_s23 + $0xa8] sm:$0xff] %v3383_v10  ;;  %v3446_v60 = vadd.f32 %v3445_v36, %v3383_v10  ;;  %v3484_v39 = vmul.f32 %v3383_v10, %v3383_v10  ;;  %v4548_v27 = vpop.f32.mrb[24].mxu0  ;;  %v2202_v14 = vpop.f32.mrb[25].mxu1 }
 0x21d   : > { %v4594_v24 = vadd.f32 %v4548_v27, %v4356_v4  ;;  %v3292_v7 = vpop.f32.mrb[25].mxu0  ;;  %v4357_v30 = vpop.f32.mrb[26].mxu1 }
 0x21e   : > { %v3447_v11 = vadd.f32 %v3446_v60, %v3384_v62  ;;  %v3515_v20 = vadd.f32 %v3514_v16, %v3484_v39  ;;  %v4595_v1 = vadd.f32 %v3292_v7, %v2202_v14  ;;  %v4549_v51 = vpop.f32.mrb[26].mxu0  ;;  %v2205_v47 = vpop.f32.mrb[27].mxu1 }
 0x21f   : > { %v3388_v3 = vadd.f32 %v4594_v24, %v5983_v42  ;;  %v4596_v32 = vadd.f32 %v4549_v51, %v4357_v30  ;;  %v3295_v52 = vpop.f32.mrb[27].mxu0 }
 0x220   : > { %v3516_v15 = vadd.f32 %v3515_v20, %v3485_v38  ;;  %v3386_v12 = vadd.f32 %v4595_v1, %v5983_v42  ;;  %v3448_v2 = vadd.f32 %v3447_v11, %v3385_v56  ;;  %v4597_v54 = vadd.f32 %v3295_v52, %v2205_v47 }
 0x221   : > { %3420 = vst [vmem:[%s5988_s23 + $0xd0] sm:$0xff] %v3388_v3  ;;  %v3389_v34 = vadd.f32 %v4596_v32, %v5983_v42  ;;  %v3489_v29 = vmul.f32 %v3388_v3, %v3388_v3 }
 0x222   : > { %3418 = vst [vmem:[%s5988_s23 + $0xc0] sm:$0xff] %v3386_v12  ;;  %v3449_v31 = vadd.f32 %v3448_v2, %v3386_v12  ;;  %v3487_v37 = vmul.f32 %v3386_v12, %v3386_v12  ;;  %v3517_v26 = vadd.f32 %v3516_v15, %v3486_v5  ;;  %v3387_v46 = vadd.f32 %v4597_v54, %v5983_v42 }
 0x223   : > { %3421 = vst [vmem:[%s5988_s23 + $0xd8] sm:$0xff] %v3389_v34  ;;  %v4360_v21 = vpop.f32.mrb[28].mxu1  ;;  %v3490_v53 = vmul.f32 %v3389_v34, %v3389_v34 }
 0x224   : > { %v3518_v44 = vadd.f32 %v3517_v26, %v3487_v37  ;;  %3419 = vst [vmem:[%s5988_s23 + $0xc8] sm:$0xff] %v3387_v46  ;;  %v3450_v19 = vadd.f32 %v3449_v31, %v3387_v46  ;;  %v3488_v35 = vmul.f32 %v3387_v46, %v3387_v46  ;;  %v4552_v58 = vpop.f32.mrb[28].mxu0  ;;  %v2218_v13 = vpop.f32.mrb[29].mxu1 }
 0x225   : > { %v4598_v18 = vadd.f32 %v4552_v58, %v4360_v21  ;;  %v3308_v55 = vpop.f32.mrb[29].mxu0  ;;  %v4361_v45 = vpop.f32.mrb[30].mxu1 }
 0x226   : > { %v3451_v28 = vadd.f32 %v3450_v19, %v3388_v3  ;;  %v3519_v33 = vadd.f32 %v3518_v44, %v3488_v35  ;;  %v4599_v61 = vadd.f32 %v3308_v55, %v2218_v13  ;;  %v4553_v40 = vpop.f32.mrb[30].mxu0  ;;  %v2221_v17 = vpop.f32.mrb[31].mxu1 }
 0x227   : > { %v3392_v50 = vadd.f32 %v4598_v18, %v5983_v42  ;;  %v4600_v41 = vadd.f32 %v4553_v40, %v4361_v45  ;;  %v3311_v57 = vpop.f32.mrb[31].mxu0 }
 0x228   : > { %v3520_v9 = vadd.f32 %v3519_v33, %v3489_v29  ;;  %v3390_v48 = vadd.f32 %v4599_v61, %v5983_v42  ;;  %v3452_v0 = vadd.f32 %v3451_v28, %v3389_v34  ;;  %v4601_v62 = vadd.f32 %v3311_v57, %v2221_v17 }
 0x229   : > { %3424 = vst [vmem:[%s5988_s23 + $0xf0] sm:$0xff] %v3392_v50  ;;  %v3393_v59 = vadd.f32 %v4600_v41, %v5983_v42  ;;  %v3493_v36 = vmul.f32 %v3392_v50, %v3392_v50 }
 0x22a   : > { %3422 = vst [vmem:[%s5988_s23 + $0xe0] sm:$0xff] %v3390_v48  ;;  %v3453_v23 = vadd.f32 %v3452_v0, %v3390_v48  ;;  %v3491_v63 = vmul.f32 %v3390_v48, %v3390_v48  ;;  %v3521_v25 = vadd.f32 %v3520_v9, %v3490_v53  ;;  %v3391_v49 = vadd.f32 %v4601_v62, %v5983_v42 }
 0x22b   : > { %3425 = vst [vmem:[%s5988_s23 + $0xf8] sm:$0xff] %v3393_v59  ;;  %v3494_v10 = vmul.f32 %v3393_v59, %v3393_v59 }
 0x22c   : > { %v3522_v22 = vadd.f32 %v3521_v25, %v3491_v63  ;;  %3423 = vst [vmem:[%s5988_s23 + $0xe8] sm:$0xff] %v3391_v49  ;;  %v3454_v8 = vadd.f32 %v3453_v23, %v3391_v49  ;;  %v3492_v56 = vmul.f32 %v3391_v49, %v3391_v49 }
 0x22e   : > { %v3455_v6 = vadd.f32 %v3454_v8, %v3392_v50  ;;  %v3523_v43 = vadd.f32 %v3522_v22, %v3492_v56 }
 0x230   : > { %v3456_v16 = vadd.f32 %v3455_v6, %v3393_v59  ;;  %v3524_v60 = vadd.f32 %v3523_v43, %v3493_v36 }
 0x232   : > { %v3457_v39 = vrot.slane %v3456_v16, 4  ;;  %v3525_v4 = vadd.f32 %v3524_v60, %v3494_v10 }
 0x234   : > { %v3458_v27 = vadd.f32 %v3457_v39, %v3456_v16  ;;  %v3526_v24 = vrot.slane %v3525_v4, 4 }
 0x236   : > { %v3459_v14 = vrot.slane %v3458_v27, 2  ;;  %v3527_v7 = vadd.f32 %v3526_v24, %v3525_v4 }
 0x238   : > { %v3460_v38 = vadd.f32 %v3459_v14, %v3458_v27  ;;  %v3528_v42 = vrot.slane %v3527_v7, 2 }
 0x23a   : > { %v3461_v11 = vrot.slane %v3460_v38, 1  ;;  %v3529_v20 = vadd.f32 %v3528_v42, %v3527_v7 }
 0x23c   : > { %v3530_v1 = vrot.slane %v3529_v20, 1  ;;  %v3462_v30 = vadd.f32 %v3461_v11, %v3460_v38 }
 0x23e   : > { %v3531_v51 = vadd.f32 %v3530_v1, %v3529_v20 }
 0x240   : > { %v3533_v5 = vsel %vm3532_vm6, %v3462_v30, %v3531_v51 }
 0x241   : > { %3534 = vst [vmem:[%s208_s27] sm:$0x3] %v3533_v5 }
 0x242 PF: > { %s15_s15 = sadd.s32 1, %s4948_s15  }
 0x243   : > { %p12_p4 = scmp.ge.s32.totalorder %s15_s15, 4  }
 0x245   :  { %14 = sbr.rel (!%p12_p4) target bundleno = 1 (0x1), region = 82 }

// kernel: residual_block_forward.4
= control target key start
LH: loop header
LB: loop body
LE: loop exit
PB: predicated region body
PF: predicated region fallthrough
CT: control target
= control target key end

     0   :  { %s5857_s21 = smov 0   ;;  %s7169_s0 = inlined_call_operand.vmem [shape: f32[2,16,16,128], index: 0, kind: input, shape index: {}]   ;;  %s7170_s1 = inlined_call_operand.vmem [shape: f32[1,128], index: 1, kind: input, shape index: {}]   ;;  %s7171_s2 = inlined_call_operand.vmem [shape: f32[1,128], index: 2, kind: input, shape index: {}]   ;;  %s7172_s3 = inlined_call_operand.vmem [shape: bf16[9,128,128], index: 3, kind: input, shape index: {}]   ;;  %s7173_s4 = inlined_call_operand.vmem [shape: f32[1,128], index: 4, kind: input, shape index: {}]   ;;  %s7174_s5 = inlined_call_operand.vmem [shape: f32[2,16,16,128], index: 5, kind: output, shape index: {0}]   ;;  %s7175_s6 = inlined_call_operand.vmem [shape: f32[2,2,128], index: 6, kind: output, shape index: {1}]  }
   0x1 LB: > { %s4408_s22 = sadd.s32 4294967295, %s5819_s21   ;;  %p4412_p0 = scmp.ge.s32.totalorder %s5819_s21, 1  ;;  %s5819_s21 = sphi %s5857_s21, %s17_s21  }
   0x2   : > { %p215_p1 = scmp.lt.s32.totalorder %s5819_s21, 3 }
   0x4   : > { %p216_p2 = pnand %p4412_p0, %p215_p1 }
   0x6   : > { %219 = sbr.rel (%p216_p2) target bundleno = 676 (0x2a4), region = 40 }
   0xd   : > { %v5690_v0 = vld [vmem:[%s7172_s3 + $0x40] sm:$0xff]   ;;  %v5821_v2 = vmov 0   ;;  %v5692_v3 = vld [vmem:[%s7172_s3 + $0x48] sm:$0xff]   ;;  %v5694_v5 = vld [vmem:[%s7172_s3 + $0x50] sm:$0xff]   ;;  %p249_p3 = scmp.lt.s32.totalorder %s4408_s22, 1  ;;  %vm880_vm3 = vcmask 1043456  }
   0xe   : > { %v5691_v1 = vld [vmem:[%s7172_s3 + $0x100] sm:$0xff]   ;;  %406 = vst [vmem:[#allocation2] sm:$0xf] %v5821_v2  ;;  %407 = vst [vmem:[#allocation2 + $0x4] sm:$0xf] %v5821_v2  ;;  %4977 = vmatprep.subr.bf16.mxu1 %v5690_v0  ;;  %v5693_v4 = vld [vmem:[%s7172_s3 + $0x108] sm:$0xff]  }
   0xf   : > { %408 = vst [vmem:[#allocation2 + $0x8] sm:$0x1] %v5821_v2  ;;  %409 = vst [vmem:[#allocation2 + $0xc] sm:$0xf] %v5821_v2  ;;  %5169 = vmatprep.subr.bf16.mxu0 %v5691_v1  ;;  %4978 = vmatpush3.bf16.msra.mxu1 %v5690_v0  ;;  %v5695_v6 = vld [vmem:[%s7172_s3 + $0x110] sm:$0xff]   ;;  %v5696_v7 = vld [vmem:[%s7172_s3 + $0x58] sm:$0xff]  }
  0x10   : > { %410 = vst [vmem:[#allocation2 + $0x10] sm:$0xf] %v5821_v2  ;;  %411 = vst [vmem:[#allocation2 + $0x14] sm:$0x1] %v5821_v2  ;;  %5170 = vmatpush3.bf16.msra.mxu0 %v5691_v1  ;;  %4979 = vmatprep.subr.bf16.mxu1 %v5692_v3  ;;  %s7222_s22 = smov (!%p249_p3, %s4408_s22), 1  ;;  %v5697_v8 = vld [vmem:[%s7172_s3 + $0x118] sm:$0xff]  }
  0x11   : > { %412 = vst [vmem:[#allocation2 + $0x18] sm:$0xf] %v5821_v2  ;;  %413 = vst [vmem:[#allocation2 + $0x1c] sm:$0xf] %v5821_v2  ;;  %5171 = vmatprep.subr.bf16.mxu0 %v5693_v4  ;;  %v5698_v9 = vld [vmem:[%s7172_s3 + $0x60] sm:$0xff]   ;;  %s4727_s17 = sshll.u32 %s7222_s22, 8 }
  0x12   : > { %414 = vst [vmem:[#allocation2 + $0x20] sm:$0x1] %v5821_v2  ;;  %415 = vst [vmem:[#allocation2 + $0x24] sm:$0xf] %v5821_v2  ;;  %v5699_v10 = vld [vmem:[%s7172_s3 + $0x120] sm:$0xff]   ;;  %v5700_v11 = vld [vmem:[%s7172_s3 + $0x68] sm:$0xff]   ;;  %s5913_s28 = scalar_lea.vmem %s7169_s0, %s4727_s17 }
  0x13   : > { %416 = vst [vmem:[#allocation2 + $0x28] sm:$0xf] %v5821_v2  ;;  %417 = vst [vmem:[#allocation2 + $0x2c] sm:$0x1] %v5821_v2  ;;  %4980 = vmatpush3.bf16.msra.mxu1 %v5692_v3  ;;  %v5701_v12 = vld [vmem:[%s7172_s3 + $0x128] sm:$0xff]   ;;  %v264_v21 = vld [vmem:[%s5913_s28] sm:$0xff] }
  0x14   : > { %418 = vst [vmem:[#allocation2 + $0x30] sm:$0xf] %v5821_v2  ;;  %419 = vst [vmem:[#allocation2 + $0x34] sm:$0xf] %v5821_v2  ;;  %5172 = vmatpush3.bf16.msra.mxu0 %v5693_v4  ;;  %4981 = vmatprep.subr.bf16.mxu1 %v5694_v5  ;;  %vm1067_vm0 = vsmask.f32 3328 }
  0x15   : > { %420 = vst [vmem:[#allocation2 + $0x38] sm:$0x1] %v5821_v2  ;;  %421 = vst [vmem:[#allocation2 + $0x3c] sm:$0xf] %v5821_v2  ;;  %5173 = vmatprep.subr.bf16.mxu0 %v5695_v6  ;;  %v997_v13 = vld [vmem:[#allocation2] sm:$0xf] }
  0x16   : > { %422 = vst [vmem:[#allocation2 + $0x40] sm:$0xf] %v5821_v2  ;;  %423 = vst [vmem:[#allocation2 + $0x44] sm:$0x1] %v5821_v2  ;;  %v998_v14 = vld [vmem:[#allocation2 + $0x4] sm:$0xf] }
  0x17   : > { %424 = vst [vmem:[#allocation2 + $0x48] sm:$0xf] %v5821_v2  ;;  %425 = vst [vmem:[#allocation2 + $0x4c] sm:$0xf] %v5821_v2  ;;  %4982 = vmatpush3.bf16.msra.mxu1 %v5694_v5  ;;  %v999_v15 = vld [vmem:[#allocation2 + $0x8] sm:$0x1] }
  0x18   : > { %426 = vst [vmem:[#allocation2 + $0x50] sm:$0x1] %v5821_v2  ;;  %427 = vst [vmem:[#allocation2 + $0x54] sm:$0xf] %v5821_v2  ;;  %5174 = vmatpush3.bf16.msra.mxu0 %v5695_v6  ;;  %4983 = vmatprep.subr.bf16.mxu1 %v5696_v7  ;;  %vm1068_vm1 = vsmask.f32 7440 }
  0x19   : > { %428 = vst [vmem:[#allocation2 + $0x58] sm:$0xf] %v5821_v2  ;;  %429 = vst [vmem:[#allocation2 + $0x5c] sm:$0x1] %v5821_v2  ;;  %5175 = vmatprep.subr.bf16.mxu0 %v5697_v8  ;;  %v1071_v16 = vshrl.u32 %v997_v13, 16  ;;  %v1074_v17 = vshll.u32 %v997_v13, 16 }
  0x1a   : > { %430 = vst [vmem:[#allocation2 + $0x60] sm:$0xf] %v5821_v2  ;;  %431 = vst [vmem:[#allocation2 + $0x64] sm:$0xf] %v5821_v2  ;;  %v1080_v18 = vshll.u32 %v998_v14, 16  ;;  %v1084_v19 = vshrl.u32 %v998_v14, 16 }
  0x1b   : > { %432 = vst [vmem:[#allocation2 + $0x68] sm:$0x1] %v5821_v2  ;;  %433 = vst [vmem:[#allocation2 + $0x6c] sm:$0xf] %v5821_v2  ;;  %4984 = vmatpush3.bf16.msra.mxu1 %v5696_v7  ;;  %v1090_v20 = vshll.u32 %v999_v15, 16  ;;  %v265_v22 = vld [vmem:[%s5913_s28 + $0x8] sm:$0xff] }
  0x1c   : > { %434 = vst [vmem:[#allocation2 + $0x70] sm:$0xf] %v5821_v2  ;;  %435 = vst [vmem:[#allocation2 + $0x74] sm:$0x1] %v5821_v2  ;;  %5176 = vmatpush3.bf16.msra.mxu0 %v5697_v8  ;;  %4985 = vmatprep.subr.bf16.mxu1 %v5698_v9  ;;  %v1073_v23 = vrot.slane %v1071_v16, 4  ;;  %v1076_v24 = vrot.slane %v1074_v17, 5 }
  0x1d   : > { %436 = vst [vmem:[#allocation2 + $0x78] sm:$0xf] %v5821_v2  ;;  %437 = vst [vmem:[#allocation2 + $0x7c] sm:$0xf] %v5821_v2  ;;  %5177 = vmatprep.subr.bf16.mxu0 %v5699_v10  ;;  %v5920_v25 = vld [vmem:[%s7170_s1] ss:$0 sm:$0xff] }
  0x1e   : > { %438 = vst [vmem:[#allocation2 + $0x80] sm:$0x1] %v5821_v2  ;;  %439 = vst [vmem:[#allocation2 + $0x84] sm:$0xf] %v5821_v2  ;;  %v5925_v26 = vld [vmem:[%s7171_s2] ss:$0 sm:$0xff]  ;;  %v303_v30 = vmul.f32 %v5920_v25, %v264_v21  ;;  %v1077_v32 = vor.u32 %v1076_v24, %v1073_v23  ;;  %v304_v33 = vmul.f32 %v5920_v25, %v265_v22 }
  0x1f   : > { %440 = vst [vmem:[#allocation2 + $0x88] sm:$0xf] %v5821_v2  ;;  %441 = vst [vmem:[#allocation2 + $0x8c] sm:$0x1] %v5821_v2  ;;  %4986 = vmatpush3.bf16.msra.mxu1 %v5698_v9  ;;  %v5702_v27 = vld [vmem:[%s7172_s3 + $0x70] sm:$0xff]   ;;  %v1082_v28 = vrot.slane %v1080_v18, 5 }
  0x20   : > { %442 = vst [vmem:[#allocation2 + $0x90] sm:$0xf] %v5821_v2  ;;  %443 = vst [vmem:[#allocation2 + $0x94] sm:$0xf] %v5821_v2  ;;  %5178 = vmatpush3.bf16.msra.mxu0 %v5699_v10  ;;  %4987 = vmatprep.subr.bf16.mxu1 %v5700_v11  ;;  %v1086_v29 = vrot.slane %v1084_v19, 4  ;;  %v5703_v31 = vld [vmem:[%s7172_s3 + $0x130] sm:$0xff]   ;;  %v342_v37 = vadd.f32 %v5925_v26, %v303_v30  ;;  %v343_v39 = vadd.f32 %v5925_v26, %v304_v33 }
  0x21   : > { %444 = vst [vmem:[#allocation2 + $0x98] sm:$0x1] %v5821_v2  ;;  %445 = vst [vmem:[#allocation2 + $0x9c] sm:$0xf] %v5821_v2  ;;  %5179 = vmatprep.subr.bf16.mxu0 %v5701_v12  ;;  %v1092_v36 = vrot.slane %v1090_v20, 5  ;;  %v1078_v38 = vrot.slane %v1077_v32, 4 }
  0x22   : > { %446 = vst [vmem:[#allocation2 + $0xa0] sm:$0xf] %v5821_v2  ;;  %447 = vst [vmem:[#allocation2 + $0xa4] sm:$0x1] %v5821_v2  ;;  %v1087_v35 = vor.u32 %v1086_v29, %v1082_v28  ;;  %v5704_v40 = vld [vmem:[%s7172_s3 + $0x78] sm:$0xff]   ;;  %v374_v42 = vmax.f32 %v342_v37, 0.0 }
  0x23   : > { %448 = vst [vmem:[#allocation2 + $0xa8] sm:$0xf] %v5821_v2  ;;  %449 = vst [vmem:[#allocation2 + $0xac] sm:$0xf] %v5821_v2  ;;  %4988 = vmatpush3.bf16.msra.mxu1 %v5700_v11  ;;  %vm887_vm4 = vcmask 1040384   ;;  %v266_v43 = vld [vmem:[%s5913_s28 + $0x10] sm:$0xff] }
  0x24   : > { %450 = vst [vmem:[#allocation2 + $0xb0] sm:$0x1] %v5821_v2  ;;  %451 = vst [vmem:[#allocation2 + $0xb4] sm:$0xf] %v5821_v2  ;;  %5180 = vmatpush3.bf16.msra.mxu0 %v5701_v12  ;;  %4989 = vmatprep.subr.bf16.mxu1 %v5702_v27  ;;  %v1088_v41 = vrot.slane %v1087_v35, 4  ;;  %v5705_v44 = vld [vmem:[%s7172_s3 + $0x138] sm:$0xff]   ;;  %v305_v48 = vmul.f32 %v5920_v25, %v266_v43  ;;  %v4729_v50 = vpack.c.bf16 %v374_v42, %v374_v42 }
  0x25   : > { %452 = vst [vmem:[#allocation2 + $0xb8] sm:$0xf] %v5821_v2  ;;  %453 = vst [vmem:[#allocation2 + $0xbc] sm:$0x1] %v5821_v2  ;;  %5181 = vmatprep.subr.bf16.mxu0 %v5703_v31  ;;  %v375_v46 = vmax.f32 %v343_v39, 0.0  ;;  %v267_v47 = vld [vmem:[%s5913_s28 + $0x18] sm:$0xff] }
  0x26   : > { %454 = vst [vmem:[#allocation2 + $0xc0] sm:$0xf] %v5821_v2  ;;  %455 = vst [vmem:[#allocation2 + $0xc4] sm:$0xf] %v5821_v2  ;;  %vm556_vm5 = vsmask.f32 256  ;;  %v306_v51 = vmul.f32 %v5920_v25, %v267_v47  ;;  %v344_v54 = vadd.f32 %v5925_v26, %v305_v48 }
  0x27   : > { %456 = vst [vmem:[#allocation2 + $0xc8] sm:$0x1] %v5821_v2  ;;  %457 = vst [vmem:[#allocation2 + $0xcc] sm:$0xf] %v5821_v2  ;;  %vm557_vm6 = vsmask.f32 4368  ;;  %4990 = vmatpush3.bf16.msra.mxu1 %v5702_v27  ;;  %v4730_v53 = vpack.c.bf16 %v375_v46, %v375_v46 }
  0x28   : > { %458 = vst [vmem:[#allocation2 + $0xd0] sm:$0xf] %v5821_v2  ;;  %459 = vst [vmem:[#allocation2 + $0xd4] sm:$0x1] %v5821_v2  ;;  %vm881_vm7 = vsmask.f32 7938  ;;  %5182 = vmatpush3.bf16.msra.mxu0 %v5703_v31  ;;  %4991 = vmatprep.subr.bf16.mxu1 %v5704_v40  ;;  %v345_v60 = vadd.f32 %v5925_v26, %v306_v51 }
  0x29   : > { %vm5937_vm2 = vmor %vm1067_vm0, %vm1068_vm1  ;;  %v268_v55 = vld [vmem:[%s5913_s28 + $0x20] sm:$0xff]  ;;  %v269_v56 = vld [vmem:[%s5913_s28 + $0x28] sm:$0xff]  ;;  %v560_v57 = vshrl.u32 %v4729_v50, 16  ;;  %v563_v58 = vshll.u32 %v4729_v50, 16  ;;  %5183 = vmatprep.subr.bf16.mxu0 %v5705_v44  ;;  %v568_v62 = vshrl.u32 %v4730_v53, 16  ;;  %v571_v63 = vshll.u32 %v4730_v53, 16 }
  0x2a   : > { %v1083_v45 = vsel %vm5937_vm2, %v1078_v38, %v1082_v28  ;;  %v1093_v49 = vsel %vm5937_vm2, %v1088_v41, %v1092_v36  ;;  %v5963_v59 = vld [vmem:[%s7172_s3] sm:$0xff]   ;;  %v307_v61 = vmul.f32 %v5920_v25, %v268_v55  ;;  %v376_v1 = vmax.f32 %v344_v54, 0.0  ;;  %vm5975_vm8 = vmor %vm556_vm5, %vm557_vm6  ;;  %v883_v9 = vld [vmem:[#allocation2 + $0xc] sm:$0xf] }
  0x2b   : > { %v4468_v52 = vcombine.low %v1083_v45, %v1093_v49  ;;  %v5970_v0 = vld [vmem:[%s7172_s3 + $0x140] sm:$0xff]   ;;  %v308_v2 = vmul.f32 %v5920_v25, %v269_v56  ;;  %v562_v4 = vrot.slane %v560_v57, 7  ;;  %v377_v5 = vmax.f32 %v345_v60, 0.0  ;;  %4992 = vmatpush3.bf16.msra.mxu1 %v5704_v40  ;;  %vm5982_vm9 = vmand %vm880_vm3, %vm881_vm7  ;;  %v889_v15 = vld [vmem:[#allocation2 + $0x14] sm:$0x1] }
  0x2c   : > { %v346_v6 = vadd.f32 %v5925_v26, %v307_v61  ;;  %v570_v7 = vrot.slane %v568_v62, 7  ;;  %v4731_v10 = vpack.c.bf16 %v376_v1, %v376_v1  ;;  %5184 = vmatpush3.bf16.msra.mxu0 %v5705_v44  ;;  %vm5989_vm10 = vmand %vm887_vm4, %vm556_vm5  ;;  %5025 = vmatprep.subr.bf16.mxu1 %v5963_v59  ;;  %v270_v18 = vld [vmem:[%s5913_s28 + $0x30] sm:$0xff]  ;;  %v271_v23 = vld [vmem:[%s5913_s28 + $0x38] sm:$0xff]  ;;  %vm2065_vm11 = vcmask 1042432  }
  0x2d   : > { %4993 = vmatprep.mubr.bf16.mxu1 %v4468_v52  ;;  %v347_v11 = vadd.f32 %v5925_v26, %v308_v2  ;;  %v565_v12 = vor.u32 %v563_v58, %v562_v4  ;;  %v566_v13 = vrot.slane %v562_v4, 4  ;;  %v4732_v16 = vpack.c.bf16 %v377_v5, %v377_v5  ;;  %5217 = vmatprep.subr.bf16.mxu0 %v5970_v0  ;;  %v892_v33 = vld [vmem:[#allocation2 + $0x18] sm:$0xf]  ;;  %v896_v35 = vld [vmem:[#allocation2 + $0x20] sm:$0x1]  ;;  %v273_v55 = vld [vmem:[%s5913_s28 + $0x48] sm:$0xff] }
  0x2e   : > { %v378_v17 = vmax.f32 %v346_v6, 0.0  ;;  %v573_v19 = vor.u32 %v571_v63, %v570_v7  ;;  %v575_v20 = vrot.slane %v570_v7, 4  ;;  %v577_v21 = vshrl.u32 %v4731_v10, 16  ;;  %v272_v45 = vld [vmem:[%s5913_s28 + $0x40] sm:$0xff]  ;;  %v903_v6 = vld [vmem:[#allocation2 + $0x2c] sm:$0x1] }
  0x2f   : > { %v580_v22 = vshll.u32 %v4731_v10, 16  ;;  %v884_v24 = vsel %vm5982_vm9, %v565_v12, %v883_v9  ;;  %v585_v27 = vshrl.u32 %v4732_v16, 16  ;;  %v588_v28 = vshll.u32 %v4732_v16, 16  ;;  %v899_v52 = vld [vmem:[#allocation2 + $0x24] sm:$0xf]  ;;  %v5812_v34 = vld [vmem:[%s7172_s3 + $0x138] sm:$0xff]  }
  0x30   : > { %v379_v29 = vmax.f32 %v347_v11, 0.0  ;;  %v574_v30 = vsel %vm5975_vm8, %v566_v13, %v573_v19  ;;  %885 = vst [vmem:[#allocation2 + $0xc] sm:$0xf] %v884_v24  ;;  %v890_v31 = vsel %vm5989_vm10, %v575_v20, %v889_v15  ;;  %v579_v32 = vrot.slane %v577_v21, 7  ;;  %v5744_v3 = vld [vmem:[%s7172_s3 + $0xa0] sm:$0xff]  }
  0x31   : > { %v4733_v36 = vpack.c.bf16 %v378_v17, %v378_v17  ;;  %886 = vst [vmem:[#allocation2 + $0x10] sm:$0xf] %v574_v30  ;;  %891 = vst [vmem:[#allocation2 + $0x14] sm:$0x1] %v890_v31  ;;  %v587_v37 = vrot.slane %v585_v27, 7  ;;  %v309_v39 = vmul.f32 %v5920_v25, %v270_v18  ;;  %v310_v40 = vmul.f32 %v5920_v25, %v271_v23 }
  0x32   : > { %v4734_v38 = vpack.c.bf16 %v379_v29, %v379_v29  ;;  %v582_v41 = vor.u32 %v580_v22, %v579_v32  ;;  %v583_v42 = vrot.slane %v579_v32, 4  ;;  %v311_v60 = vmul.f32 %v5920_v25, %v272_v45 }
  0x33   : > { %v594_v43 = vshrl.u32 %v4733_v36, 16  ;;  %v597_v44 = vshll.u32 %v4733_v36, 16  ;;  %v590_v46 = vor.u32 %v588_v28, %v587_v37  ;;  %v592_v47 = vrot.slane %v587_v37, 4 }
  0x34   : > { %v602_v48 = vshrl.u32 %v4734_v38, 16  ;;  %v605_v49 = vshll.u32 %v4734_v38, 16  ;;  %v893_v50 = vsel %vm5982_vm9, %v582_v41, %v892_v33  ;;  %v348_v53 = vadd.f32 %v5925_v26, %v309_v39 }
  0x35   : > { %v596_v51 = vrot.slane %v594_v43, 7  ;;  %v349_v54 = vadd.f32 %v5925_v26, %v310_v40  ;;  %v591_v56 = vsel %vm5975_vm8, %v583_v42, %v590_v46  ;;  %894 = vst [vmem:[#allocation2 + $0x18] sm:$0xf] %v893_v50  ;;  %v897_v57 = vsel %vm5989_vm10, %v592_v47, %v896_v35 }
  0x36   : > { %v604_v58 = vrot.slane %v602_v48, 7  ;;  %895 = vst [vmem:[#allocation2 + $0x1c] sm:$0xf] %v591_v56  ;;  %898 = vst [vmem:[#allocation2 + $0x20] sm:$0x1] %v897_v57  ;;  %v380_v63 = vmax.f32 %v348_v53, 0.0  ;;  %v312_v7 = vmul.f32 %v5920_v25, %v273_v55  ;;  %v6020_v9 = vadd.f32 %v5925_v26, %v311_v60 }
  0x37   : > { %v599_v61 = vor.u32 %v597_v44, %v596_v51  ;;  %v600_v62 = vrot.slane %v596_v51, 4  ;;  %v381_v1 = vmax.f32 %v349_v54, 0.0  ;;  %v6016_v2 = vld [vmem:[#allocation2 + $0xc] sm:$0xf]  ;;  %vm2066_vm12 = vcmask 1046532  }
  0x38   : > { %v607_v4 = vor.u32 %v605_v49, %v604_v58  ;;  %v609_v5 = vrot.slane %v604_v58, 4  ;;  %v6022_v10 = vld [vmem:[#allocation2 + $0x10] sm:$0xf]  ;;  %v6024_v11 = vld [vmem:[#allocation2 + $0x14] sm:$0x1]  ;;  %v1095_v12 = vshrl.u32 %v6016_v2, 16  ;;  %v6030_v16 = vpack.c.bf16 %v380_v63, %v380_v63  ;;  %vm6261_vm13 = vmor %vm2065_vm11, %vm2066_vm12 }
  0x39   : > { %v1098_v13 = vshll.u32 %v6016_v2, 16  ;;  %v900_v15 = vsel %vm5982_vm9, %v599_v61, %v899_v52  ;;  %v1104_v17 = vshll.u32 %v6022_v10, 16  ;;  %v1108_v18 = vshrl.u32 %v6022_v10, 16 }
  0x3a   : > { %v1114_v19 = vshll.u32 %v6024_v11, 16  ;;  %v608_v20 = vsel %vm5975_vm8, %v600_v62, %v607_v4  ;;  %901 = vst [vmem:[#allocation2 + $0x24] sm:$0xf] %v900_v15  ;;  %v1097_v21 = vrot.slane %v1095_v12, 4  ;;  %v904_v23 = vsel %vm5989_vm10, %v609_v5, %v903_v6  ;;  %v5709_v62 = vld [vmem:[%s7172_s3 + $0x8] sm:$0xff]  }
  0x3b   : > { %v1100_v22 = vrot.slane %v1098_v13, 5  ;;  %902 = vst [vmem:[#allocation2 + $0x28] sm:$0xf] %v608_v20  ;;  %v6039_v24 = vpack.c.bf16 %v381_v1, %v381_v1  ;;  %v1106_v27 = vrot.slane %v1104_v17, 5  ;;  %v1110_v28 = vrot.slane %v1108_v18, 4 }
  0x3c   : > { %v1116_v29 = vrot.slane %v1114_v19, 5  ;;  %905 = vst [vmem:[#allocation2 + $0x2c] sm:$0x1] %v904_v23  ;;  %v611_v30 = vshrl.u32 %v6030_v16, 16  ;;  %v6042_v32 = vld [vmem:[#allocation2 + $0x18] sm:$0xf]  ;;  %v6054_v42 = vadd.f32 %v5925_v26, %v312_v7 }
  0x3d   : > { %v1101_v31 = vor.u32 %v1100_v22, %v1097_v21  ;;  %v614_v33 = vshll.u32 %v6030_v16, 16  ;;  %v619_v35 = vshrl.u32 %v6039_v24, 16  ;;  %v622_v36 = vshll.u32 %v6039_v24, 16  ;;  %v6047_v38 = vld [vmem:[#allocation2 + $0x1c] sm:$0xf]  ;;  %v5708_v21 = vld [vmem:[%s7172_s3 + $0x148] sm:$0xff]  }
  0x3e   : > { %v1111_v37 = vor.u32 %v1110_v28, %v1106_v27  ;;  %v6049_v39 = vld [vmem:[#allocation2 + $0x20] sm:$0x1]  ;;  %v1119_v40 = vshrl.u32 %v6042_v32, 16  ;;  %v1122_v41 = vshll.u32 %v6042_v32, 16  ;;  %v1128_v44 = vshll.u32 %v6047_v38, 16 }
  0x3f   : > { %v1102_v43 = vrot.slane %v1101_v31, 4  ;;  %v1132_v45 = vshrl.u32 %v6047_v38, 16  ;;  %v1138_v46 = vshll.u32 %v6049_v39, 16  ;;  %v2087_v50 = vrot.slane %v6049_v39, 5  ;;  %v910_v28 = vld [vmem:[#allocation2 + $0x38] sm:$0x1] }
  0x40   : > { %v1112_v47 = vrot.slane %v1111_v37, 4  ;;  %v1121_v48 = vrot.slane %v1119_v40, 4  ;;  %v1124_v49 = vrot.slane %v1122_v41, 5  ;;  %v1130_v52 = vrot.slane %v1128_v44, 5  ;;  %v5712_v37 = vld [vmem:[%s7172_s3 + $0x10] sm:$0xff]  }
  0x41   : > { %v1107_v51 = vsel %vm5937_vm2, %v1102_v43, %v1106_v27  ;;  %v1134_v53 = vrot.slane %v1132_v45, 4  ;;  %v1140_v54 = vrot.slane %v1138_v46, 5  ;;  %v6062_v55 = vld [vmem:[#allocation2 + $0x24] sm:$0xf]  ;;  %v613_v19 = vrot.slane %v611_v30, 7 }
  0x42   : > { %v1117_v56 = vsel %vm5937_vm2, %v1112_v47, %v1116_v29  ;;  %v1125_v57 = vor.u32 %v1124_v49, %v1121_v48  ;;  %v6066_v58 = vld [vmem:[#allocation2 + $0x28] sm:$0xf]  ;;  %v1143_v60 = vshrl.u32 %v6062_v55, 16  ;;  %v1146_v61 = vshll.u32 %v6062_v55, 16  ;;  %v906_v27 = vld [vmem:[#allocation2 + $0x30] sm:$0xf] }
  0x43   : > { %v4469_v63 = vcombine.low %v1107_v51, %v1117_v56  ;;  %v1135_v1 = vor.u32 %v1134_v53, %v1130_v52  ;;  %v6073_v4 = vld [vmem:[#allocation2 + $0x2c] sm:$0x1]  ;;  %v1152_v5 = vshll.u32 %v6066_v58, 16  ;;  %v1156_v6 = vshrl.u32 %v6066_v58, 16  ;;  %v275_v48 = vld [vmem:[%s5913_s28 + $0x58] sm:$0xff]  ;;  %v276_v51 = vld [vmem:[%s5913_s28 + $0x60] sm:$0xff] }
  0x44   : > { %v1126_v7 = vrot.slane %v1125_v57, 4  ;;  %v1145_v12 = vrot.slane %v1143_v60, 4  ;;  %v1148_v13 = vrot.slane %v1146_v61, 5  ;;  %v1162_v15 = vshll.u32 %v6073_v4, 16  ;;  %v277_v57 = vld [vmem:[%s5913_s28 + $0x68] sm:$0xff]  ;;  %v5715_v60 = vld [vmem:[%s7172_s3 + $0x18] sm:$0xff]  }
  0x45   : > { %4994 = vmatmul.mubr.bf16.vlgmr.msra.gmra.mrb[0].mxu1 %v4469_v63  ;;  %5185 = vmatprep.mubr.bf16.mxu0 %v4469_v63  ;;  %v1136_v16 = vrot.slane %v1135_v1, 4  ;;  %v1154_v17 = vrot.slane %v1152_v5, 5  ;;  %v1158_v18 = vrot.slane %v1156_v6, 4  ;;  %v621_v24 = vrot.slane %v619_v35, 7  ;;  %v278_v61 = vld [vmem:[%s5913_s28 + $0x70] sm:$0xff]  ;;  %v279_v5 = vld [vmem:[%s5913_s28 + $0x78] sm:$0xff] }
  0x46   : > { %5026 = vmatpush3.bf16.msra.mxu1 %v5963_v59  ;;  %v1131_v20 = vsel %vm5937_vm2, %v1126_v7, %v1130_v52  ;;  %v1149_v22 = vor.u32 %v1148_v13, %v1145_v12  ;;  %v1164_v23 = vrot.slane %v1162_v15, 5  ;;  %v616_v59 = vor.u32 %v614_v33, %v613_v19  ;;  %v274_v33 = vld [vmem:[%s5913_s28 + $0x50] sm:$0xff] }
  0x47   : > { %v1141_v29 = vsel %vm5937_vm2, %v1136_v16, %v1140_v54  ;;  %v1159_v30 = vor.u32 %v1158_v18, %v1154_v17  ;;  %5027 = vmatprep.subr.bf16.mxu1 %v5709_v62  ;;  %v617_v31 = vrot.slane %v613_v19, 4  ;;  %v624_v35 = vor.u32 %v622_v36, %v621_v24  ;;  %v6104_v36 = vld [vmem:[%s7172_s3 + $0x150] sm:$0xff]  }
  0x48   : > { %v6089_v40 = vcombine.low %v1131_v20, %v1141_v29  ;;  %v1150_v41 = vrot.slane %v1149_v22, 4  ;;  %v626_v43 = vrot.slane %v621_v24, 4  ;;  %v907_v45 = vsel %vm5982_vm9, %v616_v59, %v906_v27  ;;  %v5711_v27 = vld [vmem:[%s7172_s3 + $0x158] sm:$0xff]  }
  0x49   : > { %v1160_v44 = vrot.slane %v1159_v30, 4  ;;  %v382_v46 = vmax.f32 %v6020_v9, 0.0  ;;  %v383_v47 = vmax.f32 %v6054_v42, 0.0  ;;  %v625_v9 = vsel %vm5975_vm8, %v617_v31, %v624_v35  ;;  %908 = vst [vmem:[#allocation2 + $0x30] sm:$0xf] %v907_v45  ;;  %v5718_v31 = vld [vmem:[%s7172_s3 + $0x20] sm:$0xff]  }
  0x4a   : > { %5186 = vmatmul.mubr.bf16.vlgmr.msra.gmra.mrb[0].mxu0 %v6089_v40  ;;  %4997 = vmatprep.mubr.bf16.mxu1 %v6089_v40  ;;  %v1155_v49 = vsel %vm5937_vm2, %v1150_v41, %v1154_v17  ;;  %v911_v42 = vsel %vm5989_vm10, %v626_v43, %v910_v28  ;;  %v4517_v52 = vrot.slane %v6016_v2, 9  ;;  %909 = vst [vmem:[#allocation2 + $0x34] sm:$0xf] %v625_v9  ;;  %v2077_v63 = vrot.slane %v6022_v10, 5  ;;  %v913_v28 = vld [vmem:[#allocation2 + $0x3c] sm:$0xf] }
  0x4b   : > { %5218 = vmatpush3.bf16.msra.mxu0 %v5970_v0  ;;  %v1165_v53 = vsel %vm5937_vm2, %v1160_v44, %v1164_v23  ;;  %5028 = vmatpush3.bf16.msra.mxu1 %v5709_v62  ;;  %912 = vst [vmem:[#allocation2 + $0x38] sm:$0x1] %v911_v42  ;;  %v4737_v54 = vpack.c.bf16 %v382_v46, %v382_v46  ;;  %v2080_v6 = vrot.slane %v6024_v11, 5  ;;  %v917_v45 = vld [vmem:[#allocation2 + $0x44] sm:$0x1] }
  0x4c   : > { %v4738_v56 = vpack.c.bf16 %v383_v47, %v383_v47  ;;  %5219 = vmatprep.subr.bf16.mxu0 %v5708_v21  ;;  %v6121_v1 = vcombine.low %v1155_v49, %v1165_v53  ;;  %5029 = vmatprep.subr.bf16.mxu1 %v5712_v37  ;;  %v313_v0 = vmul.f32 %v5920_v25, %v274_v33  ;;  %v6134_v19 = vrot.slane %v2077_v63, 4  ;;  %v938_v2 = vld [vmem:[#allocation2 + $0x68] sm:$0x1] }
  0x4d   : > { %v314_v62 = vmul.f32 %v5920_v25, %v275_v48  ;;  %v628_v7 = vshrl.u32 %v4737_v54, 16  ;;  %v631_v12 = vshll.u32 %v4737_v54, 16  ;;  %v315_v18 = vmul.f32 %v5920_v25, %v276_v51 }
  0x4e   : > { %v636_v13 = vshrl.u32 %v4738_v56, 16  ;;  %v639_v15 = vshll.u32 %v4738_v56, 16  ;;  %4998 = vmatmul.mubr.bf16.gmra.mrb[4].mxu1 %v6121_v1  ;;  %5189 = vmatprep.mubr.bf16.mxu0 %v6121_v1  ;;  %v352_v16 = vadd.f32 %v5925_v26, %v313_v0  ;;  %v316_v23 = vmul.f32 %v5920_v25, %v277_v57  ;;  %v5713_v56 = vld [vmem:[%s7172_s3 + $0x160] sm:$0xff]   ;;  %v5720_v57 = vld [vmem:[%s7172_s3 + $0x28] sm:$0xff]  }
  0x4f   : > { %v353_v17 = vadd.f32 %v5925_v26, %v314_v62  ;;  %5220 = vmatpush3.bf16.msra.mxu0 %v5708_v21  ;;  %v630_v20 = vrot.slane %v628_v7, 7  ;;  %5030 = vmatpush3.bf16.msra.mxu1 %v5712_v37  ;;  %v317_v24 = vmul.f32 %v5920_v25, %v278_v61  ;;  %v6143_v59 = vadd.f32 %v5925_v26, %v315_v18 }
  0x50   : > { %v638_v22 = vrot.slane %v636_v13, 7  ;;  %5221 = vmatprep.subr.bf16.mxu0 %v6104_v36  ;;  %v384_v29 = vmax.f32 %v352_v16, 0.0  ;;  %5031 = vmatprep.subr.bf16.mxu1 %v5715_v60  ;;  %v318_v21 = vmul.f32 %v5920_v25, %v279_v5  ;;  %v6149_v37 = vld [vmem:[#allocation2 + $0x30] sm:$0xf] }
  0x51   : > { %v385_v30 = vmax.f32 %v353_v17, 0.0  ;;  %v633_v41 = vor.u32 %v631_v12, %v630_v20  ;;  %v634_v35 = vrot.slane %v630_v20, 4  ;;  %v6151_v46 = vld [vmem:[#allocation2 + $0x34] sm:$0xf]  ;;  %v1167_v33 = vshrl.u32 %v6149_v37, 16 }
  0x52   : > { %v641_v43 = vor.u32 %v639_v15, %v638_v22  ;;  %v643_v44 = vrot.slane %v638_v22, 4  ;;  %v6153_v47 = vld [vmem:[#allocation2 + $0x38] sm:$0x1]  ;;  %v1170_v48 = vshll.u32 %v6149_v37, 16  ;;  %v4739_v49 = vpack.c.bf16 %v384_v29, %v384_v29 }
  0x53   : > { %v4740_v9 = vpack.c.bf16 %v385_v30, %v385_v30  ;;  %v1176_v42 = vshll.u32 %v6151_v46, 16  ;;  %v1180_v51 = vshrl.u32 %v6151_v46, 16  ;;  %v1186_v53 = vshll.u32 %v6153_v47, 16  ;;  %5222 = vmatpush3.bf16.msra.mxu0 %v6104_v36  ;;  %5032 = vmatpush3.bf16.msra.mxu1 %v5715_v60 }
  0x54   : > { %v642_v54 = vsel %vm5975_vm8, %v634_v35, %v641_v43  ;;  %v1169_v61 = vrot.slane %v1167_v33, 4  ;;  %v1172_v0 = vrot.slane %v1170_v48, 5  ;;  %5223 = vmatprep.subr.bf16.mxu0 %v5711_v27  ;;  %v914_v62 = vsel %vm5982_vm9, %v633_v41, %v913_v28  ;;  %5033 = vmatprep.subr.bf16.mxu1 %v5718_v31  ;;  %v920_v41 = vld [vmem:[#allocation2 + $0x48] sm:$0xf] }
  0x55   : > { %916 = vst [vmem:[#allocation2 + $0x40] sm:$0xf] %v642_v54  ;;  %v918_v36 = vsel %vm5989_vm10, %v643_v44, %v917_v45  ;;  %v1178_v5 = vrot.slane %v1176_v42, 5  ;;  %v1182_v7 = vrot.slane %v1180_v51, 4  ;;  %v1188_v12 = vrot.slane %v1186_v53, 5  ;;  %v5714_v35 = vld [vmem:[%s7172_s3 + $0x168] sm:$0xff]  }
  0x56   : > { %915 = vst [vmem:[#allocation2 + $0x3c] sm:$0xf] %v914_v62  ;;  %919 = vst [vmem:[#allocation2 + $0x44] sm:$0x1] %v918_v36  ;;  %v645_v60 = vshrl.u32 %v4739_v49, 16  ;;  %v1173_v13 = vor.u32 %v1172_v0, %v1169_v61  ;;  %v648_v15 = vshll.u32 %v4739_v49, 16  ;;  %v355_v22 = vadd.f32 %v5925_v26, %v316_v23 }
  0x57   : > { %v653_v16 = vshrl.u32 %v4740_v9, 16  ;;  %v656_v17 = vshll.u32 %v4740_v9, 16  ;;  %v1183_v18 = vor.u32 %v1182_v7, %v1178_v5  ;;  %5224 = vmatpush3.bf16.msra.mxu0 %v5711_v27  ;;  %v386_v28 = vmax.f32 %v6143_v59, 0.0  ;;  %5034 = vmatpush3.bf16.msra.mxu1 %v5718_v31  ;;  %v5722_v23 = vld [vmem:[%s7172_s3 + $0x30] sm:$0xff]   ;;  %v5724_v0 = vld [vmem:[%s7172_s3 + $0x38] sm:$0xff]  }
  0x58   : > { %v647_v20 = vrot.slane %v645_v60, 7  ;;  %v1174_v29 = vrot.slane %v1173_v13, 4  ;;  %5225 = vmatprep.subr.bf16.mxu0 %v5713_v56  ;;  %v6179_v43 = vadd.f32 %v5925_v26, %v317_v24  ;;  %v6182_v44 = vadd.f32 %v5925_v26, %v318_v21  ;;  %5035 = vmatprep.subr.bf16.mxu1 %v5720_v57  ;;  %v924_v9 = vld [vmem:[#allocation2 + $0x50] sm:$0x1] }
  0x59   : > { %v655_v30 = vrot.slane %v653_v16, 7  ;;  %v1184_v27 = vrot.slane %v1183_v18, 4  ;;  %v387_v45 = vmax.f32 %v355_v22, 0.0  ;;  %v4741_v24 = vpack.c.bf16 %v386_v28, %v386_v28  ;;  %v5716_v21 = vld [vmem:[%s7172_s3 + $0x170] sm:$0xff]   ;;  %v280_v16 = vld [vmem:[%s5913_s28 + $0x80] sm:$0xff]  ;;  %v5717_v28 = vld [vmem:[%s7172_s3 + $0x178] sm:$0xff]  }
  0x5a   : > { %v650_v59 = vor.u32 %v648_v15, %v647_v20  ;;  %v651_v31 = vrot.slane %v647_v20, 4  ;;  %v1179_v33 = vsel %vm5937_vm2, %v1174_v29, %v1178_v5  ;;  %v388_v61 = vmax.f32 %v6179_v43, 0.0 }
  0x5b   : > { %v658_v48 = vor.u32 %v656_v17, %v655_v30  ;;  %v660_v49 = vrot.slane %v655_v30, 4  ;;  %v1189_v42 = vsel %vm5937_vm2, %v1184_v27, %v1188_v12  ;;  %5226 = vmatpush3.bf16.msra.mxu0 %v5713_v56  ;;  %v4742_v54 = vpack.c.bf16 %v387_v45, %v387_v45  ;;  %5036 = vmatpush3.bf16.msra.mxu1 %v5720_v57  ;;  %v927_v27 = vld [vmem:[#allocation2 + $0x54] sm:$0xf] }
  0x5c   : > { %v6194_v51 = vld [vmem:[#allocation2 + $0x40] sm:$0xf]  ;;  %v921_v53 = vsel %vm5982_vm9, %v650_v59, %v920_v41  ;;  %v6202_v62 = vcombine.low %v1179_v33, %v1189_v42  ;;  %5227 = vmatprep.subr.bf16.mxu0 %v5714_v35  ;;  %5037 = vmatprep.subr.bf16.mxu1 %v5722_v23  ;;  %v662_v20 = vshrl.u32 %v4741_v24, 16  ;;  %v665_v22 = vshll.u32 %v4741_v24, 16 }
  0x5d   : > { %v6204_v36 = vld [vmem:[#allocation2 + $0x3c] sm:$0xf]  ;;  %v6206_v5 = vld [vmem:[#allocation2 + $0x44] sm:$0x1]  ;;  %v1200_v7 = vshll.u32 %v6194_v51, 16  ;;  %v1204_v12 = vshrl.u32 %v6194_v51, 16  ;;  %v659_v56 = vsel %vm5975_vm8, %v651_v31, %v658_v48  ;;  %v925_v15 = vsel %vm5989_vm10, %v660_v49, %v924_v9 }
  0x5e   : > { %7197 = vst [vmem:[#allocation3_spill] sm:$0xff] %v6202_v62  ;;  %922 = vst [vmem:[#allocation2 + $0x48] sm:$0xf] %v921_v53  ;;  %v1191_v57 = vshrl.u32 %v6204_v36, 16  ;;  %v1194_v60 = vshll.u32 %v6204_v36, 16  ;;  %v1210_v13 = vshll.u32 %v6206_v5, 16  ;;  %5190 = vmatmul.mubr.bf16.gmra.mrb[4].mxu0 %v6202_v62  ;;  %5001 = vmatprep.mubr.bf16.mxu1 %v6202_v62  ;;  %v4743_v24 = vpack.c.bf16 %v388_v61, %v388_v61 }
  0x5f   : > { %923 = vst [vmem:[#allocation2 + $0x4c] sm:$0xf] %v659_v56  ;;  %v1202_v17 = vrot.slane %v1200_v7, 5  ;;  %v1206_v18 = vrot.slane %v1204_v12, 4  ;;  %926 = vst [vmem:[#allocation2 + $0x50] sm:$0x1] %v925_v15  ;;  %5228 = vmatpush3.bf16.msra.mxu0 %v5714_v35  ;;  %5038 = vmatpush3.bf16.msra.mxu1 %v5722_v23  ;;  %v319_v42 = vmul.f32 %v5920_v25, %v280_v16 }
  0x60   : > { %v1193_v29 = vrot.slane %v1191_v57, 4  ;;  %v1196_v30 = vrot.slane %v1194_v60, 5  ;;  %v1212_v41 = vrot.slane %v1210_v13, 5  ;;  %v670_v43 = vshrl.u32 %v4742_v54, 16  ;;  %5229 = vmatprep.subr.bf16.mxu0 %v5716_v21  ;;  %5039 = vmatprep.subr.bf16.mxu1 %v5724_v0  ;;  %v5728_v48 = vld [vmem:[%s7172_s3 + $0x80] sm:$0xff]  }
  0x61   : > { %v1207_v59 = vor.u32 %v1206_v18, %v1202_v17  ;;  %v664_v31 = vrot.slane %v662_v20, 7  ;;  %v673_v45 = vshll.u32 %v4742_v54, 16  ;;  %v389_v33 = vmax.f32 %v6182_v44, 0.0  ;;  %v931_v23 = vld [vmem:[#allocation2 + $0x5c] sm:$0x1]  ;;  %v6233_v13 = vld [vmem:[%s7172_s3 + $0x180] sm:$0xff]  }
  0x62   : > { %v1197_v49 = vor.u32 %v1196_v30, %v1193_v29  ;;  %v672_v9 = vrot.slane %v670_v43, 7  ;;  %v679_v60 = vshrl.u32 %v4743_v24, 16 }
  0x63   : > { %v1208_v35 = vrot.slane %v1207_v59, 4  ;;  %v667_v53 = vor.u32 %v665_v22, %v664_v31  ;;  %v668_v7 = vrot.slane %v664_v31, 4  ;;  %v4744_v12 = vpack.c.bf16 %v389_v33, %v389_v33  ;;  %5230 = vmatpush3.bf16.msra.mxu0 %v5716_v21  ;;  %5040 = vmatpush3.bf16.msra.mxu1 %v5724_v0  ;;  %v281_v31 = vld [vmem:[%s5913_s28 + $0x88] sm:$0xff] }
  0x64   : > { %v1198_v56 = vrot.slane %v1197_v49, 4  ;;  %v675_v57 = vor.u32 %v673_v45, %v672_v9  ;;  %v677_v44 = vrot.slane %v672_v9, 4  ;;  %5231 = vmatprep.subr.bf16.mxu0 %v5717_v28  ;;  %5073 = vmatprep.subr.bf16.mxu1 %v5728_v48  ;;  %v681_v48 = vrot.slane %v679_v60, 7 }
  0x65   : > { %v6228_v54 = vld [vmem:[#allocation2 + $0x48] sm:$0xf]  ;;  %v1213_v61 = vsel %vm5937_vm2, %v1208_v35, %v1212_v41  ;;  %v928_v20 = vsel %vm5982_vm9, %v667_v53, %v927_v27  ;;  %v682_v35 = vshll.u32 %v4743_v24, 16  ;;  %v687_v53 = vshrl.u32 %v4744_v12, 16 }
  0x66   : > { %v6237_v15 = vld [vmem:[#allocation2 + $0x4c] sm:$0xf]  ;;  %v1215_v16 = vshrl.u32 %v6228_v54, 16  ;;  %v1218_v18 = vshll.u32 %v6228_v54, 16  ;;  %v1203_v21 = vsel %vm5937_vm2, %v1198_v56, %v1202_v17  ;;  %v6245_v22 = vld [vmem:[#allocation2 + $0x50] sm:$0x1]  ;;  %v676_v30 = vsel %vm5975_vm8, %v668_v7, %v675_v57 }
  0x67   : > { %v1224_v0 = vshll.u32 %v6237_v15, 16  ;;  %v1228_v29 = vshrl.u32 %v6237_v15, 16  ;;  %929 = vst [vmem:[#allocation2 + $0x54] sm:$0xf] %v928_v20  ;;  %v6251_v41 = vcombine.low %v1203_v21, %v1213_v61  ;;  %v1234_v27 = vshll.u32 %v6245_v22, 16  ;;  %5232 = vmatpush3.bf16.msra.mxu0 %v5717_v28 }
  0x68   : > { %v1217_v43 = vrot.slane %v1215_v16, 4  ;;  %v1220_v59 = vrot.slane %v1218_v18, 5  ;;  %930 = vst [vmem:[#allocation2 + $0x58] sm:$0xf] %v676_v30  ;;  %v932_v33 = vsel %vm5989_vm10, %v677_v44, %v931_v23  ;;  %v685_v57 = vrot.slane %v681_v48, 4  ;;  %5265 = vmatprep.subr.bf16.mxu0 %v6233_v13 }
  0x69   : > { %7198 = vst [vmem:[#allocation4_spill] sm:$0xff] %v6251_v41  ;;  %v1226_v45 = vrot.slane %v1224_v0, 5  ;;  %v1230_v17 = vrot.slane %v1228_v29, 4  ;;  %5002 = vmatmul.mubr.bf16.gmra.mrb[8].mxu1 %v6251_v41  ;;  %5193 = vmatprep.mubr.bf16.mxu0 %v6251_v41  ;;  %v1236_v9 = vrot.slane %v1234_v27, 5  ;;  %933 = vst [vmem:[#allocation2 + $0x5c] sm:$0x1] %v932_v33  ;;  %v320_v28 = vmul.f32 %v5920_v25, %v281_v31 }
  0x6a   : > { %v1221_v49 = vor.u32 %v1220_v59, %v1217_v43  ;;  %v690_v23 = vshll.u32 %v4744_v12, 16  ;;  %v934_v44 = vld [vmem:[#allocation2 + $0x60] sm:$0xf]  ;;  %v684_v61 = vor.u32 %v682_v35, %v681_v48  ;;  %v689_v16 = vrot.slane %v687_v53, 7  ;;  %v282_v53 = vld [vmem:[%s5913_s28 + $0x90] sm:$0xff] }
  0x6b   : > { %v1231_v56 = vor.u32 %v1230_v17, %v1226_v45  ;;  %v358_v24 = vadd.f32 %v5925_v26, %v319_v42  ;;  %v359_v20 = vadd.f32 %v5925_v26, %v320_v28  ;;  %v2078_v12 = vsel %vm6261_vm13, %v4517_v52, %v2077_v63  ;;  %v283_v28 = vld [vmem:[%s5913_s28 + $0x98] sm:$0xff]  ;;  %v5797_v14 = vld [vmem:[#allocation2 + $0x4c] sm:$0xf] }
  0x6c   : > { %v1222_v60 = vrot.slane %v1221_v49, 4  ;;  %v2081_v25 = vsel %vm6261_vm13, %v6134_v19, %v2080_v6  ;;  %v692_v0 = vor.u32 %v690_v23, %v689_v16  ;;  %v694_v26 = vrot.slane %v689_v16, 4 }
  0x6d   : > { %v1232_v18 = vrot.slane %v1231_v56, 4  ;;  %v935_v10 = vsel %vm5982_vm9, %v684_v61, %v934_v44  ;;  %v390_v19 = vmax.f32 %v358_v24, 0.0  ;;  %v391_v33 = vmax.f32 %v359_v20, 0.0 }
  0x6e   : > { %v1227_v21 = vsel %vm5937_vm2, %v1222_v60, %v1226_v45  ;;  %v6282_v42 = vld [vmem:[#allocation2 + $0x54] sm:$0xf]  ;;  %936 = vst [vmem:[#allocation2 + $0x60] sm:$0xf] %v935_v10  ;;  %v693_v59 = vsel %vm5975_vm8, %v685_v57, %v692_v0  ;;  %v939_v17 = vsel %vm5989_vm10, %v694_v26, %v938_v2  ;;  %v6306_v23 = vcombine.low %v2078_v12, %v2081_v25  ;;  %v6316_v12 = vld [vmem:[%s7170_s1] ss:$0 sm:$0xff] }
  0x6f   : > { %v1237_v52 = vsel %vm5937_vm2, %v1232_v18, %v1236_v9  ;;  %v6288_v63 = vld [vmem:[#allocation2 + $0x58] sm:$0xf]  ;;  %v1239_v11 = vshrl.u32 %v6282_v42, 16  ;;  %v1242_v6 = vshll.u32 %v6282_v42, 16  ;;  %937 = vst [vmem:[#allocation2 + $0x64] sm:$0xf] %v693_v59  ;;  %v4745_v35 = vpack.c.bf16 %v390_v19, %v390_v19 }
  0x70   : > { %v6292_v29 = vcombine.low %v1227_v21, %v1237_v52  ;;  %v1248_v30 = vshll.u32 %v6288_v63, 16  ;;  %v1252_v43 = vshrl.u32 %v6288_v63, 16  ;;  %v6298_v27 = vld [vmem:[#allocation2 + $0x5c] sm:$0x1]  ;;  %940 = vst [vmem:[#allocation2 + $0x68] sm:$0x1] %v939_v17  ;;  %v4746_v57 = vpack.c.bf16 %v391_v33, %v391_v33 }
  0x71   : > { %v1241_v31 = vrot.slane %v1239_v11, 4  ;;  %v1244_v45 = vrot.slane %v1242_v6, 5  ;;  %v1258_v9 = vshll.u32 %v6298_v27, 16  ;;  %v4518_v44 = vrot.slane %v6042_v32, 9  ;;  %v941_v52 = vld [vmem:[#allocation2 + $0x6c] sm:$0xf] }
  0x72   : > { %7201 = vst [vmem:[#allocation5_spill] sm:$0xff] %v6292_v29  ;;  %5194 = vmatmul.mubr.bf16.gmra.mrb[8].mxu0 %v6292_v29  ;;  %5005 = vmatprep.mubr.bf16.mxu1 %v6292_v29  ;;  %v1250_v48 = vrot.slane %v1248_v30, 5  ;;  %v1254_v49 = vrot.slane %v1252_v43, 4  ;;  %v696_v16 = vshrl.u32 %v4745_v35, 16  ;;  %v699_v24 = vshll.u32 %v4745_v35, 16 }
  0x73   : > { %v1245_v56 = vor.u32 %v1244_v45, %v1241_v31  ;;  %v1260_v61 = vrot.slane %v1258_v9, 5  ;;  %v704_v20 = vshrl.u32 %v4746_v57, 16  ;;  %v707_v21 = vshll.u32 %v4746_v57, 16  ;;  %v945_v30 = vld [vmem:[#allocation2 + $0x74] sm:$0x1] }
  0x74   : > { %v1255_v60 = vor.u32 %v1254_v49, %v1250_v48  ;;  %v2084_v0 = vrot.slane %v6047_v38, 5  ;;  %v698_v2 = vrot.slane %v696_v16, 7  ;;  %v321_v32 = vmul.f32 %v6316_v12, %v282_v53 }
  0x75   : > { %v1246_v18 = vrot.slane %v1245_v56, 4  ;;  %v6311_v10 = vld [vmem:[#allocation2 + $0x60] sm:$0xf]  ;;  %v322_v25 = vmul.f32 %v6316_v12, %v283_v28  ;;  %v706_v19 = vrot.slane %v704_v20, 7 }
  0x76   : > { %v1256_v26 = vrot.slane %v1255_v60, 4  ;;  %v1263_v6 = vshrl.u32 %v6311_v10, 16  ;;  %v1266_v38 = vshll.u32 %v6311_v10, 16  ;;  %v6326_v59 = vld [vmem:[#allocation2 + $0x64] sm:$0xf]  ;;  %v701_v31 = vor.u32 %v699_v24, %v698_v2 }
  0x77   : > { %v1251_v11 = vsel %vm5937_vm2, %v1246_v18, %v1250_v48  ;;  %v702_v45 = vrot.slane %v698_v2, 4  ;;  %v2085_v17 = vsel %vm6261_vm13, %v4518_v44, %v2084_v0  ;;  %v6332_v48 = vld [vmem:[#allocation2 + $0x68] sm:$0x1]  ;;  %v1272_v35 = vshll.u32 %v6326_v59, 16  ;;  %v284_v60 = vld [vmem:[%s5913_s28 + $0xa0] sm:$0xff] }
  0x78   : > { %v1261_v43 = vsel %vm5937_vm2, %v1256_v26, %v1260_v61  ;;  %v1265_v49 = vrot.slane %v1263_v6, 4  ;;  %v1268_v9 = vrot.slane %v1266_v38, 5  ;;  %v1276_v53 = vshrl.u32 %v6326_v59, 16  ;;  %v285_v61 = vld [vmem:[%s5913_s28 + $0xa8] sm:$0xff] }
  0x79   : > { %v6330_v33 = vcombine.low %v1251_v11, %v1261_v43  ;;  %v1282_v56 = vshll.u32 %v6332_v48, 16  ;;  %v709_v57 = vor.u32 %v707_v21, %v706_v19  ;;  %v711_v28 = vrot.slane %v706_v19, 4 }
  0x7a   : > { %v1269_v44 = vor.u32 %v1268_v9, %v1265_v49  ;;  %v1274_v16 = vrot.slane %v1272_v35, 5  ;;  %v942_v24 = vsel %vm5982_vm9, %v701_v31, %v941_v52  ;;  %v2086_v18 = vrot.slane %v2084_v0, 4  ;;  %v6354_v0 = vld [vmem:[%s7171_s2] ss:$0 sm:$0xff] }
  0x7b   : > { %7202 = vst [vmem:[#allocation6_spill] sm:$0xff] %v6330_v33  ;;  %5006 = vmatmul.mubr.bf16.gmra.mrb[12].mxu1 %v6330_v33  ;;  %5197 = vmatprep.mubr.bf16.mxu0 %v6330_v33  ;;  %v1278_v20 = vrot.slane %v1276_v53, 4  ;;  %v1284_v26 = vrot.slane %v1282_v56, 5  ;;  %v710_v2 = vsel %vm5975_vm8, %v702_v45, %v709_v57  ;;  %943 = vst [vmem:[#allocation2 + $0x6c] sm:$0xf] %v942_v24  ;;  %v4519_v49 = vrot.slane %v6062_v55, 9 }
  0x7c   : > { %v946_v21 = vsel %vm5989_vm10, %v711_v28, %v945_v30  ;;  %v1270_v11 = vrot.slane %v1269_v44, 4  ;;  %944 = vst [vmem:[#allocation2 + $0x70] sm:$0xf] %v710_v2  ;;  %v2088_v6 = vsel %vm6261_vm13, %v2086_v18, %v2087_v50  ;;  %v360_v52 = vadd.f32 %v6354_v0, %v321_v32 }
  0x7d   : > { %947 = vst [vmem:[#allocation2 + $0x74] sm:$0x1] %v946_v21  ;;  %v361_v38 = vadd.f32 %v6354_v0, %v322_v25  ;;  %v1279_v19 = vor.u32 %v1278_v20, %v1274_v16  ;;  %v6358_v43 = vcombine.low %v2085_v17, %v2088_v6  ;;  %v323_v30 = vmul.f32 %v6316_v12, %v284_v60 }
  0x7e   : > { %v324_v31 = vmul.f32 %v6316_v12, %v285_v61  ;;  %v1275_v39 = vsel %vm5937_vm2, %v1270_v11, %v1274_v16  ;;  %v392_v50 = vmax.f32 %v360_v52, 0.0  ;;  %v2091_v25 = vrot.slane %v6066_v58, 5  ;;  %v948_v11 = vld [vmem:[#allocation2 + $0x78] sm:$0xf] }
  0x7f   : > { %v393_v45 = vmax.f32 %v361_v38, 0.0  ;;  %v1280_v9 = vrot.slane %v1279_v19, 4  ;;  %v362_v35 = vadd.f32 %v6354_v0, %v323_v30 }
  0x80   : > { %v363_v32 = vadd.f32 %v6354_v0, %v324_v31  ;;  %v4747_v17 = vpack.c.bf16 %v392_v50, %v392_v50  ;;  %v6374_v55 = vsel %vm6261_vm13, %v4519_v49, %v2091_v25 }
  0x81   : > { %v4748_v53 = vpack.c.bf16 %v393_v45, %v393_v45  ;;  %v1285_v28 = vsel %vm5937_vm2, %v1280_v9, %v1284_v26  ;;  %v394_v60 = vmax.f32 %v362_v35, 0.0 }
  0x82   : > { %v395_v61 = vmax.f32 %v363_v32, 0.0  ;;  %v6376_v44 = vcombine.low %v1275_v39, %v1285_v28  ;;  %v6378_v16 = vld [vmem:[#allocation2 + $0x6c] sm:$0xf]  ;;  %v713_v58 = vshrl.u32 %v4747_v17, 16  ;;  %v716_v24 = vshll.u32 %v4747_v17, 16 }
  0x83   : > { %v721_v18 = vshrl.u32 %v4748_v53, 16  ;;  %v6380_v20 = vld [vmem:[#allocation2 + $0x70] sm:$0xf]  ;;  %v1287_v21 = vshrl.u32 %v6378_v16, 16  ;;  %v1290_v26 = vshll.u32 %v6378_v16, 16  ;;  %v4749_v6 = vpack.c.bf16 %v394_v60, %v394_v60 }
  0x84   : > { %7203 = vst [vmem:[#allocation7_spill] sm:$0xff] %v6376_v44  ;;  %v6382_v2 = vld [vmem:[#allocation2 + $0x74] sm:$0x1]  ;;  %v4750_v52 = vpack.c.bf16 %v395_v61, %v395_v61  ;;  %5198 = vmatmul.mubr.bf16.gmra.mrb[12].mxu0 %v6376_v44  ;;  %5009 = vmatprep.mubr.bf16.mxu1 %v6376_v44  ;;  %v1296_v38 = vshll.u32 %v6380_v20, 16  ;;  %v1300_v19 = vshrl.u32 %v6380_v20, 16  ;;  %v715_v31 = vrot.slane %v713_v58, 7 }
  0x85   : > { %v1306_v30 = vshll.u32 %v6382_v2, 16  ;;  %v952_v39 = vld [vmem:[#allocation2 + $0x80] sm:$0x1]  ;;  %v1289_v50 = vrot.slane %v1287_v21, 4  ;;  %v1292_v45 = vrot.slane %v1290_v26, 5  ;;  %5233 = vmatprep.mubr.bf16.mxu0 %v6306_v23  ;;  %v723_v49 = vrot.slane %v721_v18, 7 }
  0x86   : > { %v724_v9 = vshll.u32 %v4748_v53, 16  ;;  %v1298_v35 = vrot.slane %v1296_v38, 5  ;;  %v1302_v32 = vrot.slane %v1300_v19, 4  ;;  %v718_v28 = vor.u32 %v716_v24, %v715_v31  ;;  %v955_v38 = vld [vmem:[#allocation2 + $0x84] sm:$0xf]  ;;  %v5721_v19 = vld [vmem:[%s7172_s3 + $0x188] sm:$0xff]  }
  0x87   : > { %v1308_v17 = vrot.slane %v1306_v30, 5  ;;  %v1293_v60 = vor.u32 %v1292_v45, %v1289_v50  ;;  %v719_v61 = vrot.slane %v715_v31, 4  ;;  %v728_v56 = vrot.slane %v723_v49, 4  ;;  %v286_v30 = vld [vmem:[%s5913_s28 + $0xb0] sm:$0xff]  ;;  %v959_v50 = vld [vmem:[#allocation2 + $0x8c] sm:$0x1] }
  0x88   : > { %v726_v57 = vor.u32 %v724_v9, %v723_v49  ;;  %v1303_v44 = vor.u32 %v1302_v32, %v1298_v35  ;;  %v949_v58 = vsel %vm5982_vm9, %v718_v28, %v948_v11  ;;  %v730_v33 = vshrl.u32 %v4749_v6, 16  ;;  %v287_v9 = vld [vmem:[%s5913_s28 + $0xb8] sm:$0xff] }
  0x89   : > { %v733_v21 = vshll.u32 %v4749_v6, 16  ;;  %v1294_v26 = vrot.slane %v1293_v60, 4  ;;  %950 = vst [vmem:[#allocation2 + $0x78] sm:$0xf] %v949_v58  ;;  %v953_v53 = vsel %vm5989_vm10, %v728_v56, %v952_v39  ;;  %v738_v24 = vshrl.u32 %v4750_v52, 16 }
  0x8a   : > { %v727_v18 = vsel %vm5975_vm8, %v719_v61, %v726_v57  ;;  %v1304_v31 = vrot.slane %v1303_v44, 4  ;;  %954 = vst [vmem:[#allocation2 + $0x80] sm:$0x1] %v953_v53  ;;  %v732_v11 = vrot.slane %v730_v33, 7  ;;  %v741_v6 = vshll.u32 %v4750_v52, 16  ;;  %v5733_v53 = vld [vmem:[%s7172_s3 + $0x1a8] sm:$0xff]  }
  0x8b   : > { %951 = vst [vmem:[#allocation2 + $0x7c] sm:$0xf] %v727_v18  ;;  %v2093_v57 = vrot.slane %v2091_v25, 4  ;;  %v1299_v45 = vsel %vm5937_vm2, %v1294_v26, %v1298_v35  ;;  %v740_v56 = vrot.slane %v738_v24, 7  ;;  %v2098_v39 = vrot.slane %v6151_v46, 5  ;;  %v288_v35 = vld [vmem:[%s5913_s28 + $0xc0] sm:$0xff] }
  0x8c   : > { %v2101_v49 = vrot.slane %v6153_v47, 5  ;;  %v1309_v44 = vsel %vm5937_vm2, %v1304_v31, %v1308_v17  ;;  %5234 = vmatmul.mubr.bf16.vlgmr.msra.gmra.mrb[0].mxu0 %v6358_v43  ;;  %v735_v32 = vor.u32 %v733_v21, %v732_v11  ;;  %v736_v33 = vrot.slane %v732_v11, 4  ;;  %v289_v17 = vld [vmem:[%s5913_s28 + $0xc8] sm:$0xff] }
  0x8d   : > { %v7204_v52 = vrot.slane %v6073_v4, 5  ;;  %v6415_v28 = vcombine.low %v1299_v45, %v1309_v44  ;;  %5266 = vmatpush3.bf16.msra.mxu0 %v6233_v13  ;;  %v743_v46 = vor.u32 %v741_v6, %v740_v56  ;;  %v745_v47 = vrot.slane %v740_v56, 4  ;;  %v5723_v13 = vld [vmem:[%s7172_s3 + $0x190] sm:$0xff]  }
  0x8e   : > { %v956_v61 = vsel %vm5982_vm9, %v735_v32, %v955_v38  ;;  %5267 = vmatprep.subr.bf16.mxu0 %v5721_v19  ;;  %v7206_v4 = vrot.slane %v6149_v37, 9  ;;  %v2100_v21 = vrot.slane %v2098_v39, 4  ;;  %v325_v26 = vmul.f32 %v6316_v12, %v286_v30 }
  0x8f   : > { %v2095_v25 = vsel %vm6261_vm13, %v2093_v57, %v7204_v52  ;;  %7205 = vst [vmem:[#allocation8_spill] sm:$0xff] %v6415_v28  ;;  %5010 = vmatmul.mubr.bf16.gmra.mrb[16].mxu1 %v6415_v28  ;;  %957 = vst [vmem:[#allocation2 + $0x84] sm:$0xf] %v956_v61  ;;  %v960_v18 = vsel %vm5989_vm10, %v745_v47, %v959_v50  ;;  %v326_v37 = vmul.f32 %v6316_v12, %v287_v9 }
  0x90   : > { %v6419_v60 = vcombine.low %v6374_v55, %v2095_v25  ;;  %v2099_v58 = vsel %vm6261_vm13, %v7206_v4, %v2098_v39  ;;  %v744_v55 = vsel %vm5975_vm8, %v736_v33, %v743_v46  ;;  %v6440_v24 = vld [vmem:[#allocation2 + $0x78] sm:$0xf]  ;;  %961 = vst [vmem:[#allocation2 + $0x8c] sm:$0x1] %v960_v18  ;;  %v2102_v38 = vsel %vm6261_vm13, %v2100_v21, %v2101_v49  ;;  %v290_v4 = vld [vmem:[%s5913_s28 + $0xd0] sm:$0xff] }
  0x91   : > { %958 = vst [vmem:[#allocation2 + $0x88] sm:$0xf] %v744_v55  ;;  %v364_v30 = vadd.f32 %v6354_v0, %v325_v26  ;;  %v327_v31 = vmul.f32 %v6316_v12, %v288_v35  ;;  %v328_v11 = vmul.f32 %v6316_v12, %v289_v17  ;;  %v6449_v50 = vld [vmem:[#allocation2 + $0x80] sm:$0x1]  ;;  %v1311_v57 = vshrl.u32 %v6440_v24, 16  ;;  %5268 = vmatpush3.bf16.msra.mxu0 %v5721_v19  ;;  %v5725_v33 = vld [vmem:[%s7172_s3 + $0x198] sm:$0xff]  }
  0x92   : > { %5237 = vmatprep.mubr.bf16.mxu0 %v6419_v60  ;;  %v6447_v6 = vld [vmem:[#allocation2 + $0x7c] sm:$0xf]  ;;  %v1314_v45 = vshll.u32 %v6440_v24, 16  ;;  %v6453_v56 = vcombine.low %v2099_v58, %v2102_v38  ;;  %v365_v39 = vadd.f32 %v6354_v0, %v326_v37  ;;  %v1330_v44 = vshll.u32 %v6449_v50, 16  ;;  %5269 = vmatprep.subr.bf16.mxu0 %v5723_v13 }
  0x93   : > { %v1320_v49 = vshll.u32 %v6447_v6, 16  ;;  %v1324_v9 = vshrl.u32 %v6447_v6, 16  ;;  %v396_v32 = vmax.f32 %v364_v30, 0.0  ;;  %v1313_v52 = vrot.slane %v1311_v57, 4  ;;  %v5729_v57 = vld [vmem:[%s7172_s3 + $0x1a0] sm:$0xff]  }
  0x94   : > { %v1316_v25 = vrot.slane %v1314_v45, 5  ;;  %v397_v35 = vmax.f32 %v365_v39, 0.0  ;;  %v366_v19 = vadd.f32 %v6354_v0, %v327_v31  ;;  %v1332_v17 = vrot.slane %v1330_v44, 5  ;;  %5238 = vmatmul.mubr.bf16.gmra.mrb[4].mxu0 %v6453_v56 }
  0x95   : > { %v1322_v46 = vrot.slane %v1320_v49, 5  ;;  %v1326_v47 = vrot.slane %v1324_v9, 4  ;;  %v4751_v61 = vpack.c.bf16 %v396_v32, %v396_v32  ;;  %v367_v26 = vadd.f32 %v6354_v0, %v328_v11  ;;  %5270 = vmatpush3.bf16.msra.mxu0 %v5723_v13 }
  0x96   : > { %v1317_v58 = vor.u32 %v1316_v25, %v1313_v52  ;;  %v4752_v21 = vpack.c.bf16 %v397_v35, %v397_v35  ;;  %v398_v55 = vmax.f32 %v366_v19, 0.0  ;;  %v6466_v37 = vld [vmem:[#allocation2 + $0x84] sm:$0xf]  ;;  %v2105_v31 = vrot.slane %v6194_v51, 5  ;;  %5271 = vmatprep.subr.bf16.mxu0 %v5725_v33 }
  0x97   : > { %v1327_v18 = vor.u32 %v1326_v47, %v1322_v46  ;;  %v747_v38 = vshrl.u32 %v4751_v61, 16  ;;  %v750_v30 = vshll.u32 %v4751_v61, 16  ;;  %v6474_v49 = vld [vmem:[#allocation2 + $0x8c] sm:$0x1]  ;;  %v1335_v11 = vshrl.u32 %v6466_v37, 16 }
  0x98   : > { %v1318_v45 = vrot.slane %v1317_v58, 4  ;;  %v6472_v39 = vld [vmem:[#allocation2 + $0x88] sm:$0xf]  ;;  %v4753_v13 = vpack.c.bf16 %v398_v55, %v398_v55  ;;  %v6478_v9 = vmul.f32 %v6316_v12, %v290_v4  ;;  %v1338_v32 = vshll.u32 %v6466_v37, 16  ;;  %v962_v61 = vld [vmem:[#allocation2 + $0x90] sm:$0xf] }
  0x99   : > { %v1328_v44 = vrot.slane %v1327_v18, 4  ;;  %v1344_v51 = vshll.u32 %v6472_v39, 16  ;;  %v1348_v52 = vshrl.u32 %v6472_v39, 16  ;;  %v1337_v35 = vrot.slane %v1335_v11, 4  ;;  %5272 = vmatpush3.bf16.msra.mxu0 %v5725_v33 }
  0x9a   : > { %v1323_v25 = vsel %vm5937_vm2, %v1318_v45, %v1322_v46  ;;  %v1354_v19 = vshll.u32 %v6474_v49, 16  ;;  %v749_v47 = vrot.slane %v747_v38, 7  ;;  %v1340_v58 = vrot.slane %v1338_v32, 5  ;;  %5273 = vmatprep.subr.bf16.mxu0 %v5729_v57 }
  0x9b   : > { %v1333_v4 = vsel %vm5937_vm2, %v1328_v44, %v1332_v17  ;;  %v1346_v55 = vrot.slane %v1344_v51, 5  ;;  %v1350_v18 = vrot.slane %v1348_v52, 4  ;;  %v755_v41 = vshrl.u32 %v4752_v21, 16  ;;  %v966_v44 = vld [vmem:[#allocation2 + $0x98] sm:$0x1] }
  0x9c   : > { %v6491_v28 = vcombine.low %v1323_v25, %v1333_v4  ;;  %v1356_v46 = vrot.slane %v1354_v19, 5  ;;  %v752_v45 = vor.u32 %v750_v30, %v749_v47  ;;  %v753_v11 = vrot.slane %v749_v47, 4 }
  0x9d   : > { %v1341_v29 = vor.u32 %v1340_v58, %v1337_v35  ;;  %v1351_v38 = vor.u32 %v1350_v18, %v1346_v55  ;;  %v758_v33 = vshll.u32 %v4752_v21, 16  ;;  %v399_v32 = vmax.f32 %v367_v26, 0.0  ;;  %5274 = vmatpush3.bf16.msra.mxu0 %v5729_v57  ;;  %v5737_v21 = vld [vmem:[%s7172_s3 + $0x1b0] sm:$0xff]  }
  0x9e   : > { %7207 = vst [vmem:[#allocation9_spill] sm:$0xff] %v6491_v28  ;;  %5013 = vmatprep.mubr.bf16.mxu1 %v6491_v28  ;;  %v963_v17 = vsel %vm5982_vm9, %v752_v45, %v962_v61  ;;  %v764_v51 = vshrl.u32 %v4753_v13, 16  ;;  %v767_v52 = vshll.u32 %v4753_v13, 16  ;;  %v757_v4 = vrot.slane %v755_v41, 7  ;;  %5275 = vmatprep.subr.bf16.mxu0 %v5733_v53  ;;  %v969_v61 = vld [vmem:[#allocation2 + $0x9c] sm:$0xf] }
  0x9f   : > { %v1342_v62 = vrot.slane %v1341_v29, 4  ;;  %v1352_v25 = vrot.slane %v1351_v38, 4  ;;  %964 = vst [vmem:[#allocation2 + $0x90] sm:$0xf] %v963_v17  ;;  %v7208_v30 = vrot.slane %v6204_v36, 9  ;;  %v4754_v19 = vpack.c.bf16 %v399_v32, %v399_v32  ;;  %v291_v17 = vld [vmem:[%s5913_s28 + $0xd8] sm:$0xff] }
  0xa0   : > { %v766_v26 = vrot.slane %v764_v51, 7  ;;  %v2107_v47 = vrot.slane %v2105_v31, 4  ;;  %v2108_v57 = vrot.slane %v6206_v5, 5  ;;  %v760_v29 = vor.u32 %v758_v33, %v757_v4  ;;  %v293_v33 = vld [vmem:[%s5913_s28 + $0xe8] sm:$0xff]  ;;  %v5741_v32 = vld [vmem:[%s7172_s3 + $0x1b8] sm:$0xff]  }
  0xa1   : > { %v2106_v35 = vsel %vm6261_vm13, %v7208_v30, %v2105_v31  ;;  %v1347_v41 = vsel %vm5937_vm2, %v1342_v62, %v1346_v55  ;;  %v1357_v36 = vsel %vm5937_vm2, %v1352_v25, %v1356_v46  ;;  %v762_v13 = vrot.slane %v757_v4, 4  ;;  %5276 = vmatpush3.bf16.msra.mxu0 %v5733_v53  ;;  %v292_v46 = vld [vmem:[%s5913_s28 + $0xe0] sm:$0xff] }
  0xa2   : > { %v6508_v58 = vcombine.low %v1347_v41, %v1357_v36  ;;  %v769_v18 = vor.u32 %v767_v52, %v766_v26  ;;  %v770_v45 = vrot.slane %v766_v26, 4  ;;  %v772_v38 = vshrl.u32 %v4754_v19, 16  ;;  %5277 = vmatprep.subr.bf16.mxu0 %v5737_v21  ;;  %v973_v52 = vld [vmem:[#allocation2 + $0xa4] sm:$0x1] }
  0xa3   : > { %v761_v5 = vsel %vm5975_vm8, %v753_v11, %v760_v29  ;;  %v967_v62 = vsel %vm5989_vm10, %v762_v13, %v966_v44  ;;  %v775_v31 = vshll.u32 %v4754_v19, 16  ;;  %v2109_v55 = vsel %vm6261_vm13, %v2107_v47, %v2108_v57 }
  0xa4   : > { %7209 = vst [vmem:[#allocation10_spill] sm:$0xff] %v6508_v58  ;;  %5014 = vmatmul.mubr.bf16.gmra.mrb[20].mxu1 %v6508_v58  ;;  %965 = vst [vmem:[#allocation2 + $0x94] sm:$0xf] %v761_v5  ;;  %v774_v53 = vrot.slane %v772_v38, 7  ;;  %v970_v11 = vsel %vm5982_vm9, %v769_v18, %v969_v61  ;;  %v6525_v44 = vcombine.low %v2106_v35, %v2109_v55  ;;  %v4522_v51 = vrot.slane %v6228_v54, 9 }
  0xa5   : > { %968 = vst [vmem:[#allocation2 + $0x98] sm:$0x1] %v967_v62  ;;  %971 = vst [vmem:[#allocation2 + $0x9c] sm:$0xf] %v970_v11  ;;  %v2112_v25 = vrot.slane %v6237_v15, 5  ;;  %v2115_v4 = vrot.slane %v6245_v22, 5  ;;  %v330_v30 = vmul.f32 %v6316_v12, %v291_v17  ;;  %v368_v19 = vadd.f32 %v6354_v0, %v6478_v9  ;;  %5278 = vmatpush3.bf16.msra.mxu0 %v5737_v21 }
  0xa6   : > { %v6533_v26 = vld [vmem:[#allocation2 + $0x90] sm:$0xf]  ;;  %v777_v47 = vor.u32 %v775_v31, %v774_v53  ;;  %v779_v57 = vrot.slane %v774_v53, 4  ;;  %5241 = vmatprep.mubr.bf16.mxu0 %v6525_v44  ;;  %v331_v35 = vmul.f32 %v6316_v12, %v292_v46  ;;  %v332_v54 = vmul.f32 %v6316_v12, %v293_v33  ;;  %5279 = vmatprep.subr.bf16.mxu0 %v5741_v32  ;;  %v6545_v9 = vld [vmem:[%s7172_s3 + $0x1c0] sm:$0xff]  }
  0xa7   : > { %v1359_v15 = vshrl.u32 %v6533_v26, 16  ;;  %v1362_v22 = vshll.u32 %v6533_v26, 16  ;;  %v2113_v41 = vsel %vm6261_vm13, %v4522_v51, %v2112_v25  ;;  %v2114_v36 = vrot.slane %v2112_v25, 4  ;;  %v980_v58 = vld [vmem:[#allocation2 + $0xb0] sm:$0x1] }
  0xa8   : > { %v778_v29 = vsel %vm5975_vm8, %v770_v45, %v777_v47  ;;  %v974_v12 = vsel %vm5989_vm10, %v779_v57, %v973_v52  ;;  %v369_v21 = vadd.f32 %v6354_v0, %v330_v30  ;;  %v400_v13 = vmax.f32 %v368_v19, 0.0 }
  0xa9   : > { %v1361_v61 = vrot.slane %v1359_v15, 4  ;;  %v1364_v18 = vrot.slane %v1362_v22, 5  ;;  %972 = vst [vmem:[#allocation2 + $0xa0] sm:$0xf] %v778_v29  ;;  %975 = vst [vmem:[#allocation2 + $0xa4] sm:$0x1] %v974_v12  ;;  %v2116_v38 = vsel %vm6261_vm13, %v2114_v36, %v2115_v4  ;;  %v370_v17 = vadd.f32 %v6354_v0, %v331_v35  ;;  %5280 = vmatpush3.bf16.msra.mxu0 %v5741_v32 }
  0xaa   : > { %v6555_v5 = vcombine.low %v2113_v41, %v2116_v38  ;;  %v401_v62 = vmax.f32 %v369_v21, 0.0  ;;  %v4755_v31 = vpack.c.bf16 %v400_v13, %v400_v13  ;;  %v371_v33 = vadd.f32 %v6354_v0, %v332_v54  ;;  %5313 = vmatprep.subr.bf16.mxu0 %v6545_v9 }
  0xab   : > { %v6557_v45 = vld [vmem:[#allocation2 + $0x94] sm:$0xf]  ;;  %v1365_v46 = vor.u32 %v1364_v18, %v1361_v61  ;;  %v402_v53 = vmax.f32 %v370_v17, 0.0 }
  0xac   : > { %v6559_v55 = vld [vmem:[#allocation2 + $0x98] sm:$0x1]  ;;  %v1368_v51 = vshll.u32 %v6557_v45, 16  ;;  %v1372_v52 = vshrl.u32 %v6557_v45, 16  ;;  %v6567_v4 = vld [vmem:[#allocation2 + $0x9c] sm:$0xf]  ;;  %5242 = vmatmul.mubr.bf16.gmra.mrb[8].mxu0 %v6555_v5  ;;  %v4756_v32 = vpack.c.bf16 %v401_v62, %v401_v62 }
  0xad   : > { %v1378_v25 = vshll.u32 %v6559_v55, 16  ;;  %v1366_v30 = vrot.slane %v1365_v46, 4  ;;  %v1383_v19 = vshrl.u32 %v6567_v4, 16  ;;  %v1386_v47 = vshll.u32 %v6567_v4, 16 }
  0xae   : > { %v781_v57 = vshrl.u32 %v4755_v31, 16  ;;  %v1370_v35 = vrot.slane %v1368_v51, 5  ;;  %v1374_v54 = vrot.slane %v1372_v52, 4  ;;  %v784_v22 = vshll.u32 %v4755_v31, 16  ;;  %v976_v52 = vld [vmem:[#allocation2 + $0xa8] sm:$0xf] }
  0xaf   : > { %v1380_v15 = vrot.slane %v1378_v25, 5  ;;  %v1385_v41 = vrot.slane %v1383_v19, 4  ;;  %v1388_v36 = vrot.slane %v1386_v47, 5  ;;  %v789_v12 = vshrl.u32 %v4756_v32, 16 }
  0xb0   : > { %v783_v29 = vrot.slane %v781_v57, 7  ;;  %v1371_v21 = vsel %vm5937_vm2, %v1366_v30, %v1370_v35  ;;  %v1375_v13 = vor.u32 %v1374_v54, %v1370_v35  ;;  %v6574_v61 = vld [vmem:[#allocation2 + $0xa0] sm:$0xf]  ;;  %v6576_v18 = vld [vmem:[#allocation2 + $0xa4] sm:$0x1]  ;;  %v792_v38 = vshll.u32 %v4756_v32, 16 }
  0xb1   : > { %v403_v17 = vmax.f32 %v371_v33, 0.0  ;;  %v1389_v62 = vor.u32 %v1388_v36, %v1385_v41  ;;  %v1392_v46 = vshll.u32 %v6574_v61, 16  ;;  %v1396_v51 = vshrl.u32 %v6574_v61, 16 }
  0xb2   : > { %v1402_v31 = vshll.u32 %v6576_v18, 16  ;;  %v1376_v25 = vrot.slane %v1375_v13, 4  ;;  %v786_v19 = vor.u32 %v784_v22, %v783_v29  ;;  %v787_v47 = vrot.slane %v783_v29, 4 }
  0xb3   : > { %v791_v57 = vrot.slane %v789_v12, 7  ;;  %v1390_v30 = vrot.slane %v1389_v62, 4  ;;  %v1394_v35 = vrot.slane %v1392_v46, 5  ;;  %v1398_v54 = vrot.slane %v1396_v51, 4 }
  0xb4   : > { %v1404_v11 = vrot.slane %v1402_v31, 5  ;;  %v1381_v33 = vsel %vm5937_vm2, %v1376_v25, %v1380_v15  ;;  %v977_v36 = vsel %vm5982_vm9, %v786_v19, %v976_v52  ;;  %v4757_v12 = vpack.c.bf16 %v402_v53, %v402_v53 }
  0xb5   : > { %v794_v32 = vor.u32 %v792_v38, %v791_v57  ;;  %v796_v41 = vrot.slane %v791_v57, 4  ;;  %v6585_v28 = vcombine.low %v1371_v21, %v1381_v33  ;;  %v1395_v22 = vsel %vm5937_vm2, %v1390_v30, %v1394_v35  ;;  %978 = vst [vmem:[#allocation2 + $0xa8] sm:$0xf] %v977_v36 }
  0xb6   : > { %v1399_v29 = vor.u32 %v1398_v54, %v1394_v35  ;;  %v4758_v15 = vpack.c.bf16 %v403_v17, %v403_v17  ;;  %v2119_v38 = vrot.slane %v6288_v63, 5  ;;  %v798_v21 = vshrl.u32 %v4757_v12, 16 }
  0xb7   : > { %v795_v13 = vsel %vm5975_vm8, %v787_v47, %v794_v32  ;;  %v981_v62 = vsel %vm5989_vm10, %v796_v41, %v980_v58  ;;  %5017 = vmatprep.mubr.bf16.mxu1 %v6585_v28  ;;  %v801_v51 = vshll.u32 %v4757_v12, 16  ;;  %v2122_v31 = vrot.slane %v6298_v27, 5  ;;  %v983_v27 = vld [vmem:[#allocation2 + $0xb4] sm:$0xf]  ;;  %v987_v41 = vld [vmem:[#allocation2 + $0xbc] sm:$0x1] }
  0xb8   : > { %v1400_v46 = vrot.slane %v1399_v29, 4  ;;  %979 = vst [vmem:[#allocation2 + $0xac] sm:$0xf] %v795_v13  ;;  %982 = vst [vmem:[#allocation2 + $0xb0] sm:$0x1] %v981_v62  ;;  %v806_v52 = vshrl.u32 %v4758_v15, 16 }
  0xb9   : > { %v809_v53 = vshll.u32 %v4758_v15, 16  ;;  %v7210_v25 = vrot.slane %v6282_v42, 9  ;;  %v2121_v58 = vrot.slane %v2119_v38, 4  ;;  %v800_v17 = vrot.slane %v798_v21, 7 }
  0xba   : > { %v1405_v63 = vsel %vm5937_vm2, %v1400_v46, %v1404_v11  ;;  %v4524_v47 = vrot.slane %v6311_v10, 9  ;;  %v2126_v57 = vrot.slane %v6326_v59, 5  ;;  %v808_v35 = vrot.slane %v806_v52, 7 }
  0xbb   : > { %v2120_v19 = vsel %vm6261_vm13, %v7210_v25, %v2119_v38  ;;  %v6604_v30 = vcombine.low %v1395_v22, %v1405_v63  ;;  %v2123_v54 = vsel %vm6261_vm13, %v2121_v58, %v2122_v31  ;;  %v2129_v42 = vrot.slane %v6332_v48, 5 }
  0xbc   : > { %v803_v33 = vor.u32 %v801_v51, %v800_v17  ;;  %v804_v32 = vrot.slane %v800_v17, 4  ;;  %v6609_v36 = vcombine.low %v2120_v19, %v2123_v54  ;;  %v6612_v11 = vld [vmem:[#allocation2 + $0xa8] sm:$0xf]  ;;  %v811_v10 = vor.u32 %v809_v53, %v808_v35 }
  0xbd   : > { %5018 = vmatmul.mubr.bf16.gmra.mrb[24].mxu1 %v6604_v30  ;;  %v813_v59 = vrot.slane %v808_v35, 4  ;;  %v2127_v22 = vsel %vm6261_vm13, %v4524_v47, %v2126_v57  ;;  %v2128_v29 = vrot.slane %v2126_v57, 4  ;;  %v1407_v12 = vshrl.u32 %v6612_v11, 16 }
  0xbe   : > { %v1410_v13 = vshll.u32 %v6612_v11, 16  ;;  %v984_v48 = vsel %vm5982_vm9, %v803_v33, %v983_v27  ;;  %5245 = vmatprep.mubr.bf16.mxu0 %v6609_v36  ;;  %v4525_v62 = vrot.slane %v6378_v16, 9  ;;  %v812_v46 = vsel %vm5975_vm8, %v804_v32, %v811_v10 }
  0xbf   : > { %v6622_v15 = vld [vmem:[#allocation2 + $0xac] sm:$0xf]  ;;  %v6624_v38 = vld [vmem:[#allocation2 + $0xb0] sm:$0x1]  ;;  %985 = vst [vmem:[#allocation2 + $0xb4] sm:$0xf] %v984_v48  ;;  %v988_v21 = vsel %vm5989_vm10, %v813_v59, %v987_v41  ;;  %v2130_v51 = vsel %vm6261_vm13, %v2128_v29, %v2129_v42 }
  0xc0   : > { %v2133_v31 = vrot.slane %v6380_v20, 5  ;;  %v1409_v52 = vrot.slane %v1407_v12, 4  ;;  %v1412_v53 = vrot.slane %v1410_v13, 5  ;;  %v1416_v16 = vshll.u32 %v6622_v15, 16  ;;  %986 = vst [vmem:[#allocation2 + $0xb8] sm:$0xf] %v812_v46 }
  0xc1   : > { %v1420_v25 = vshrl.u32 %v6622_v15, 16  ;;  %989 = vst [vmem:[#allocation2 + $0xbc] sm:$0x1] %v988_v21  ;;  %v1426_v19 = vshll.u32 %v6624_v38, 16  ;;  %v6636_v58 = vcombine.low %v2127_v22, %v2130_v51  ;;  %v2136_v20 = vrot.slane %v6382_v2, 5 }
  0xc2   : > { %v2134_v63 = vsel %vm6261_vm13, %v4525_v62, %v2133_v31  ;;  %v2135_v17 = vrot.slane %v2133_v31, 4  ;;  %v1413_v47 = vor.u32 %v1412_v53, %v1409_v52  ;;  %v1418_v57 = vrot.slane %v1416_v16, 5 }
  0xc3   : > { %v1422_v35 = vrot.slane %v1420_v25, 4  ;;  %5246 = vmatmul.mubr.bf16.gmra.mrb[12].mxu0 %v6636_v58  ;;  %v4526_v27 = vrot.slane %v6440_v24, 9  ;;  %v2140_v54 = vrot.slane %v6447_v6, 5  ;;  %v2143_v42 = vrot.slane %v6449_v50, 5 }
  0xc4   : > { %v1414_v33 = vrot.slane %v1413_v47, 4  ;;  %v1428_v41 = vrot.slane %v1426_v19, 5  ;;  %v2137_v10 = vsel %vm6261_vm13, %v2135_v17, %v2136_v20  ;;  %v4527_v50 = vrot.slane %v6466_v37, 9  ;;  %v6675_v20 = vld [vmem:[#allocation2] sm:$0xf] }
  0xc5   : > { %v1423_v32 = vor.u32 %v1422_v35, %v1418_v57  ;;  %v6647_v59 = vcombine.low %v2134_v63, %v2137_v10  ;;  %v2141_v22 = vsel %vm6261_vm13, %v4526_v27, %v2140_v54  ;;  %v2142_v2 = vrot.slane %v2140_v54, 4  ;;  %v6677_v27 = vld [vmem:[#allocation2 + $0x4] sm:$0xf] }
  0xc6   : > { %v1419_v29 = vsel %vm5937_vm2, %v1414_v33, %v1418_v57  ;;  %v6653_v13 = vld [vmem:[#allocation2 + $0xb4] sm:$0xf]  ;;  %v2147_v48 = vrot.slane %v6472_v39, 5  ;;  %v4492_v54 = vcombine.low %v6675_v20, %v6677_v27  ;;  %v4528_v10 = vrot.slane %v6533_v26, 9 }
  0xc7   : > { %v1424_v12 = vrot.slane %v1423_v32, 4  ;;  %v6657_v62 = vld [vmem:[#allocation2 + $0xb8] sm:$0xf]  ;;  %v1431_v21 = vshrl.u32 %v6653_v13, 16  ;;  %v1434_v51 = vshll.u32 %v6653_v13, 16  ;;  %5249 = vmatprep.mubr.bf16.mxu0 %v6647_v59  ;;  %v2144_v31 = vsel %vm6261_vm13, %v2142_v2, %v2143_v42 }
  0xc8   : > { %v6659_v46 = vld [vmem:[#allocation2 + $0xbc] sm:$0x1]  ;;  %v1440_v53 = vshll.u32 %v6657_v62, 16  ;;  %v1444_v16 = vshrl.u32 %v6657_v62, 16  ;;  %v6673_v47 = vcombine.low %v2141_v22, %v2144_v31  ;;  %v2148_v42 = vsel %vm6261_vm13, %v4527_v50, %v2147_v48 }
  0xc9   : > { %v1429_v52 = vsel %vm5937_vm2, %v1424_v12, %v1428_v41  ;;  %v1450_v25 = vshll.u32 %v6659_v46, 16  ;;  %v1433_v63 = vrot.slane %v1431_v21, 4  ;;  %v1436_v17 = vrot.slane %v1434_v51, 5 }
  0xca   : > { %v6671_v19 = vcombine.low %v1419_v29, %v1429_v52  ;;  %v1442_v57 = vrot.slane %v1440_v53, 5  ;;  %v1446_v35 = vrot.slane %v1444_v16, 4  ;;  %v2149_v32 = vrot.slane %v2147_v48, 4 }
  0xcb   : > { %v1437_v33 = vor.u32 %v1436_v17, %v1433_v63  ;;  %5250 = vmatmul.mubr.bf16.gmra.mrb[16].mxu0 %v6673_v47  ;;  %v2150_v41 = vrot.slane %v6474_v49, 5  ;;  %v1452_v2 = vrot.slane %v1450_v25, 5  ;;  %v2154_v29 = vrot.slane %v6557_v45, 5 }
  0xcc   : > { %5021 = vmatprep.mubr.bf16.mxu1 %v6671_v19  ;;  %v1447_v22 = vor.u32 %v1446_v35, %v1442_v57  ;;  %v2157_v12 = vrot.slane %v6559_v55, 5  ;;  %v4529_v51 = vrot.slane %v6567_v4, 9  ;;  %v2161_v31 = vrot.slane %v6574_v61, 5 }
  0xcd   : > { %v1438_v21 = vrot.slane %v1437_v33, 4  ;;  %v2151_v50 = vsel %vm6261_vm13, %v2149_v32, %v2150_v41  ;;  %v2155_v49 = vsel %vm6261_vm13, %v4528_v10, %v2154_v29  ;;  %v2156_v53 = vrot.slane %v2154_v29, 4  ;;  %v294_v10 = vld [vmem:[%s5913_s28 + $0xf0] sm:$0xff] }
  0xce   : > { %v1448_v52 = vrot.slane %v1447_v22, 4  ;;  %v6693_v48 = vcombine.low %v2148_v42, %v2151_v50  ;;  %v2162_v16 = vsel %vm6261_vm13, %v4529_v51, %v2161_v31  ;;  %v2163_v25 = vrot.slane %v2161_v31, 4  ;;  %v295_v22 = vld [vmem:[%s5913_s28 + $0xf8] sm:$0xff]  ;;  %v5784_v31 = vld [vmem:[%s7170_s1] ss:$0 sm:$0xff]  ;;  %s7089_s28 = scalar_lea.vmem %s7174_s5, %s4727_s17  ;;  %s4417_s17 = sshll.u32 %s7222_s22, 1 }
  0xcf   : > { %v1443_v55 = vsel %vm5937_vm2, %v1438_v21, %v1442_v57  ;;  %v2164_v63 = vrot.slane %v6576_v18, 5  ;;  %v2158_v35 = vsel %vm6261_vm13, %v2156_v53, %v2157_v12  ;;  %v4530_v42 = vrot.slane %v6612_v11, 9  ;;  %v5785_v53 = vld [vmem:[#allocation2 + $0xc] sm:$0xf]  ;;  %s262_s15 = scalar_lea.vmem %s7175_s6, %s4417_s17 }
  0xd0   : > { %v1453_v17 = vsel %vm5937_vm2, %v1448_v52, %v1452_v2  ;;  %5253 = vmatprep.mubr.bf16.mxu0 %v6693_v48  ;;  %v2168_v33 = vrot.slane %v6622_v15, 5  ;;  %v6711_v57 = vcombine.low %v2155_v49, %v2158_v35  ;;  %v2171_v18 = vrot.slane %v6624_v38, 5 }
  0xd1   : > { %v6709_v32 = vcombine.low %v1443_v55, %v1453_v17  ;;  %v2165_v41 = vsel %vm6261_vm13, %v2163_v25, %v2164_v63  ;;  %v4531_v21 = vrot.slane %v6653_v13, 9  ;;  %v2175_v50 = vrot.slane %v6657_v62, 5  ;;  %v5786_v55 = vld [vmem:[#allocation2 + $0x10] sm:$0xf] }
  0xd2   : > { %v6718_v2 = vcombine.low %v2162_v16, %v2165_v41  ;;  %v2170_v29 = vrot.slane %v2168_v33, 4  ;;  %v2169_v12 = vsel %vm6261_vm13, %v4530_v42, %v2168_v33  ;;  %v2178_v51 = vrot.slane %v6659_v46, 5 }
  0xd3   : > { %7211 = vst [vmem:[#allocation11_spill] sm:$0xff] %v6709_v32  ;;  %5022 = vmatmul.mubr.bf16.gmra.mrb[28].mxu1 %v6709_v32  ;;  %5254 = vmatmul.mubr.bf16.gmra.mrb[20].mxu0 %v6711_v57  ;;  %v333_v52 = vmul.f32 %v5784_v31, %v294_v10  ;;  %v334_v49 = vmul.f32 %v5784_v31, %v295_v22  ;;  %v2177_v25 = vrot.slane %v2175_v50, 4  ;;  %v5788_v10 = vld [vmem:[#allocation2 + $0x1c] sm:$0xf]  ;;  %v5791_v31 = vld [vmem:[#allocation2 + $0x28] sm:$0xf] }
  0xd4   : > { %5041 = vmatprep.mubr.bf16.mxu1 %v4492_v54  ;;  %5257 = vmatprep.mubr.bf16.mxu0 %v6718_v2  ;;  %v2172_v38 = vsel %vm6261_vm13, %v2170_v29, %v2171_v18  ;;  %v6733_v16 = vcombine.low %v5785_v53, %v5786_v55  ;;  %v2176_v46 = vsel %vm6261_vm13, %v4531_v21, %v2175_v50  ;;  %v5787_v18 = vld [vmem:[#allocation2 + $0x18] sm:$0xf]  ;;  %v5793_v53 = vld [vmem:[#allocation2 + $0x34] sm:$0xf] }
  0xd5   : > { %v6735_v63 = vcombine.low %v2169_v12, %v2172_v38  ;;  %v372_v54 = vadd.f32 %v6354_v0, %v333_v52  ;;  %v373_v17 = vadd.f32 %v6354_v0, %v334_v49  ;;  %v2179_v35 = vsel %vm6261_vm13, %v2177_v25, %v2178_v51  ;;  %v5790_v38 = vld [vmem:[#allocation2 + $0x24] sm:$0xf]  ;;  %v5792_v49 = vld [vmem:[#allocation2 + $0x30] sm:$0xf]  ;;  %v990_v25 = vld [vmem:[#allocation2 + $0xc0] sm:$0xf] }
  0xd6   : > { %v6745_v42 = vcombine.low %v6466_v37, %v6472_v39  ;;  %v6749_v33 = vcombine.low %v6533_v26, %v6557_v45  ;;  %v6753_v41 = vcombine.low %v6567_v4, %v6574_v61  ;;  %v6755_v22 = vcombine.low %v5787_v18, %v5788_v10  ;;  %v5732_v37 = vld [vmem:[%s7172_s3 + $0x88] sm:$0xff]   ;;  %v5789_v61 = vld [vmem:[%s7172_s3 + $0x80] sm:$0xff]   ;;  %v5740_v10 = vld [vmem:[%s7172_s3 + $0x98] sm:$0xff]  }
  0xd7   : > { %v404_v0 = vmax.f32 %v372_v54, 0.0  ;;  %v405_v29 = vmax.f32 %v373_v17, 0.0  ;;  %v6759_v12 = vcombine.low %v6612_v11, %v6622_v15  ;;  %v6764_v39 = vcombine.low %v2176_v46, %v2179_v35  ;;  %v994_v46 = vld [vmem:[#allocation2 + $0xc8] sm:$0x1] }
  0xd8   : > { %v6768_v26 = vcombine.low %v6653_v13, %v6657_v62  ;;  %v5736_v13 = vld [vmem:[%s7172_s3 + $0x90] sm:$0xff]   ;;  %v6780_v52 = vcombine.low %v5790_v38, %v5791_v31  ;;  %v6782_v55 = vcombine.low %v5792_v49, %v5793_v53 }
  0xd9   : > { %v4759_v45 = vpack.c.bf16 %v404_v0, %v404_v0  ;;  %v4760_v4 = vpack.c.bf16 %v405_v29, %v405_v29 }
  0xdb   : > { %5042 = vmatmul.mubr.bf16.vlgmr.msra.gmra.mrb[0].mxu1 %v6733_v16  ;;  %5258 = vmatmul.mubr.bf16.gmra.mrb[24].mxu0 %v6735_v63  ;;  %v815_v11 = vshrl.u32 %v4759_v45, 16  ;;  %v818_v15 = vshll.u32 %v4759_v45, 16  ;;  %v823_v21 = vshrl.u32 %v4760_v4, 16  ;;  %v826_v50 = vshll.u32 %v4760_v4, 16  ;;  %v5795_v4 = vld [vmem:[#allocation2 + $0x3c] sm:$0xf] }
  0xdc   : > { %5074 = vmatpush3.bf16.msra.mxu1 %v5789_v61  ;;  %5045 = vmatprep.mubr.bf16.mxu1 %v6755_v22  ;;  %v5796_v61 = vld [vmem:[#allocation2 + $0x48] sm:$0xf] }
  0xdd   : > { %5075 = vmatprep.subr.bf16.mxu1 %v5732_v37  ;;  %5261 = vmatprep.mubr.bf16.mxu0 %v6764_v39  ;;  %v817_v62 = vrot.slane %v815_v11, 7  ;;  %v825_v51 = vrot.slane %v823_v21, 7  ;;  %v6800_v11 = vcombine.low %v5796_v61, %v5797_v14  ;;  %v5800_v61 = vld [vmem:[#allocation2 + $0x60] sm:$0xf]  ;;  %v5801_v14 = vld [vmem:[#allocation2 + $0x64] sm:$0xf] }
  0xdf   : > { %v820_v54 = vor.u32 %v818_v15, %v817_v62  ;;  %v821_v17 = vrot.slane %v817_v62, 4  ;;  %v828_v35 = vor.u32 %v826_v50, %v825_v51  ;;  %v830_v18 = vrot.slane %v825_v51, 4  ;;  %v5748_v15 = vld [vmem:[%s7172_s3 + $0xa8] sm:$0xff]  }
  0xe0   : > { %5076 = vmatpush3.bf16.msra.mxu1 %v5732_v37  ;;  %v5794_v37 = vld [vmem:[#allocation2 + $0x40] sm:$0xf] }
  0xe1   : > { %5077 = vmatprep.subr.bf16.mxu1 %v5736_v13  ;;  %v829_v0 = vsel %vm5975_vm8, %v821_v17, %v828_v35  ;;  %v991_v29 = vsel %vm5982_vm9, %v820_v54, %v990_v25  ;;  %v995_v45 = vsel %vm5989_vm10, %v830_v18, %v994_v46  ;;  %v6798_v8 = vcombine.low %v5795_v4, %v5794_v37  ;;  %v5752_v17 = vld [vmem:[%s7172_s3 + $0xb0] sm:$0xff]  }
  0xe2   : > { %992 = vst [vmem:[#allocation2 + $0xc0] sm:$0xf] %v991_v29  ;;  %993 = vst [vmem:[#allocation2 + $0xc4] sm:$0xf] %v829_v0 }
  0xe3   : > { %5046 = vmatmul.mubr.bf16.gmra.mrb[4].mxu1 %v6780_v52  ;;  %996 = vst [vmem:[#allocation2 + $0xc8] sm:$0x1] %v995_v45  ;;  %v5798_v45 = vld [vmem:[#allocation2 + $0x54] sm:$0xf] }
  0xe4   : > { %5049 = vmatprep.mubr.bf16.mxu1 %v6782_v55  ;;  %5078 = vmatpush3.bf16.msra.mxu1 %v5736_v13 }
  0xe5   : > { %5079 = vmatprep.subr.bf16.mxu1 %v5740_v10 }
  0xe8   : > { %5080 = vmatpush3.bf16.msra.mxu1 %v5740_v10 }
  0xe9   : > { %5081 = vmatprep.subr.bf16.mxu1 %v5744_v3  ;;  %v6805_v21 = vld [vmem:[#allocation2 + $0xc0] sm:$0xf]  ;;  %v6807_v50 = vld [vmem:[#allocation2 + $0xc4] sm:$0xf] }
  0xea   : > { %v1047_v13 = vld [vmem:[#allocation2 + $0xc8] sm:$0x1]  ;;  %v4622_v62 = vrot.slane %v6805_v21, 9  ;;  %v3055_v51 = vrot.slane %v6807_v50, 5  ;;  %v2767_v31 = vshrl.u32 %v6805_v21, 16  ;;  %v2770_v49 = vshll.u32 %v6805_v21, 16 }
  0xeb   : > { %5050 = vmatmul.mubr.bf16.gmra.mrb[8].mxu1 %v6798_v8  ;;  %v3058_v38 = vrot.slane %v1047_v13, 5  ;;  %v2776_v53 = vshll.u32 %v6807_v50, 16  ;;  %v2780_v25 = vshrl.u32 %v6807_v50, 16  ;;  %v2786_v35 = vshll.u32 %v1047_v13, 16 }
  0xec   : > { %5053 = vmatprep.mubr.bf16.mxu1 %v6800_v11  ;;  %5082 = vmatpush3.bf16.msra.mxu1 %v5744_v3  ;;  %v3056_v46 = vsel %vm6261_vm13, %v4622_v62, %v3055_v51  ;;  %v3057_v54 = vrot.slane %v3055_v51, 4  ;;  %v2769_v18 = vrot.slane %v2767_v31, 4  ;;  %v2772_v10 = vrot.slane %v2770_v49, 5  ;;  %v5799_v3 = vld [vmem:[#allocation2 + $0x58] sm:$0xf] }
  0xed   : > { %5083 = vmatprep.subr.bf16.mxu1 %v5748_v15  ;;  %v2778_v0 = vrot.slane %v2776_v53, 5  ;;  %v2782_v29 = vrot.slane %v2780_v25, 4  ;;  %v6822_v37 = vcombine.low %v5798_v45, %v5799_v3  ;;  %v6826_v62 = vcombine.low %v5800_v61, %v5801_v14  ;;  %v5756_v49 = vld [vmem:[%s7172_s3 + $0xb8] sm:$0xff]   ;;  %v5761_v61 = vld [vmem:[%s7172_s3 + $0x1e8] sm:$0xff]   ;;  %v5763_v14 = vld [vmem:[%s7172_s3 + $0x1f0] sm:$0xff]  }
  0xee   : > { %v3059_v4 = vsel %vm6261_vm13, %v3057_v54, %v3058_v38  ;;  %v2773_v32 = vor.u32 %v2772_v10, %v2769_v18  ;;  %v2788_v31 = vrot.slane %v2786_v35, 5  ;;  %v5802_v54 = vld [vmem:[#allocation2 + $0x6c] sm:$0xf]  ;;  %v5803_v35 = vld [vmem:[#allocation2 + $0x70] sm:$0xf]  ;;  %v4516_v3 = vrot.slane %v6675_v20, 9 }
  0xef   : > { %v6828_v51 = vcombine.low %v3056_v46, %v3059_v4  ;;  %v2783_v13 = vor.u32 %v2782_v29, %v2778_v0  ;;  %v5758_v46 = vld [vmem:[%s7172_s3 + $0xc0] sm:$0xff]   ;;  %v6846_v18 = vcombine.low %v5802_v54, %v5803_v35  ;;  %v5749_v10 = vld [vmem:[%s7172_s3 + $0x1c8] sm:$0xff]   ;;  %v6930_v35 = vld [vmem:[#allocation2 + $0xd0] sm:$0xf] }
  0xf0   : > { %5084 = vmatpush3.bf16.msra.mxu1 %v5748_v15  ;;  %v2774_v53 = vrot.slane %v2773_v32, 4  ;;  %v5804_v29 = vld [vmem:[#allocation2 + $0x8] sm:$0x1]  ;;  %v6928_v54 = vld [vmem:[#allocation2 + $0xcc] sm:$0xf] }
  0xf1   : > { %5085 = vmatprep.subr.bf16.mxu1 %v5752_v17  ;;  %5262 = vmatmul.mubr.bf16.gmra.mrb[28].mxu0 %v6828_v51  ;;  %v2784_v25 = vrot.slane %v2783_v13, 4  ;;  %v2073_v45 = vrot.slane %v5804_v29, 5  ;;  %v7213_v29 = vld [vmem:[#allocation4_spill] sm:$0xff] }
  0xf2   : > { %5281 = vmatprep.mubr.bf16.mxu0 %v6755_v22  ;;  %v2779_v15 = vsel %vm5937_vm2, %v2774_v53, %v2778_v0  ;;  %v5759_v0 = vld [vmem:[%s7172_s3 + $0x1e0] sm:$0xff]   ;;  %v5760_v53 = vld [vmem:[%s7172_s3 + $0xc8] sm:$0xff]  }
  0xf3   : > { %5054 = vmatmul.mubr.bf16.gmra.mrb[12].mxu1 %v6822_v37  ;;  %v2789_v38 = vsel %vm5937_vm2, %v2784_v25, %v2788_v31  ;;  %v5766_v31 = vld [vmem:[%s7172_s3 + $0x1f8] sm:$0xff]   ;;  %v5762_v25 = vld [vmem:[%s7172_s3 + $0xd0] sm:$0xff]  }
  0xf4   : > { %5057 = vmatprep.mubr.bf16.mxu1 %v6826_v62  ;;  %5086 = vmatpush3.bf16.msra.mxu1 %v5752_v17  ;;  %v6844_v32 = vcombine.low %v2779_v15, %v2789_v38  ;;  %v6850_v17 = vcombine.low %v6440_v24, %v6447_v6  ;;  %v5753_v24 = vld [vmem:[%s7172_s3 + $0x1d0] sm:$0xff]   ;;  %v5757_v6 = vld [vmem:[%s7172_s3 + $0x1d8] sm:$0xff]   ;;  %v6920_v38 = vcombine.low %v6805_v21, %v6807_v50 }
  0xf5   : > { %5087 = vmatprep.subr.bf16.mxu1 %v5756_v49  ;;  %v5764_v15 = vld [vmem:[%s7172_s3 + $0xd8] sm:$0xff]   ;;  %v5772_v21 = vld [vmem:[%s7172_s3 + $0xf0] sm:$0xff]   ;;  %v4664_v50 = vcombine.low %v6928_v54, %v6930_v35 }
  0xf8   : > { %5088 = vmatpush3.bf16.msra.mxu1 %v5756_v49  ;;  %v5769_v49 = vld [vmem:[%s7172_s3 + $0x200] sm:$0xff]  }
  0xf9   : > { %5121 = vmatprep.subr.bf16.mxu1 %v5758_v46  ;;  %5282 = vmatmul.mubr.bf16.vlgmr.msra.gmra.mrb[0].mxu0 %v6780_v52 }
  0xfa   : > { %5314 = vmatpush3.bf16.msra.mxu0 %v6545_v9  ;;  %5285 = vmatprep.mubr.bf16.mxu0 %v6782_v55  ;;  %v2070_v9 = vrot.slane %v6677_v27, 5 }
  0xfb   : > { %5058 = vmatmul.mubr.bf16.gmra.mrb[16].mxu1 %v6846_v18  ;;  %5315 = vmatprep.subr.bf16.mxu0 %v5749_v10 }
  0xfc   : > { %5061 = vmatprep.mubr.bf16.mxu1 %v6850_v17  ;;  %v2072_v4 = vrot.slane %v2070_v9, 4  ;;  %v2071_v27 = vsel %vm6261_vm13, %v4516_v3, %v2070_v9  ;;  %v5773_v9 = vld [vmem:[%s7172_s3 + $0x210] sm:$0xff]   ;;  %v5777_v3 = vld [vmem:[%s7172_s3 + $0x228] sm:$0xff]  }
  0xfe   : > { %5316 = vmatpush3.bf16.msra.mxu0 %v5749_v10  ;;  %v2074_v20 = vsel %vm6261_vm13, %v2072_v4, %v2073_v45  ;;  %v5774_v10 = vld [vmem:[%s7172_s3 + $0xf8] sm:$0xff]   ;;  %v5776_v45 = vld [vmem:[%s7172_s3 + $0x220] sm:$0xff]   ;;  %v7215_v4 = vld [vmem:[#allocation6_spill] sm:$0xff] }
  0xff   : > { %5317 = vmatprep.subr.bf16.mxu0 %v5753_v24  ;;  %v4548_v13 = vcombine.low %v2071_v27, %v2074_v20  ;;  %v5778_v27 = vld [vmem:[%s7172_s3 + $0x230] sm:$0xff]   ;;  %v5779_v20 = vld [vmem:[%s7172_s3 + $0x238] sm:$0xff]  }
 0x101   : > { %5286 = vmatmul.mubr.bf16.gmra.mrb[4].mxu0 %v6798_v8 }
 0x102   : > { %5289 = vmatprep.mubr.bf16.mxu0 %v6800_v11  ;;  %5318 = vmatpush3.bf16.msra.mxu0 %v5753_v24  ;;  %v5771_v24 = vld [vmem:[%s7172_s3 + $0x208] sm:$0xff]  }
 0x103   : > { %5062 = vmatmul.mubr.bf16.gmra.mrb[20].mxu1 %v6745_v42  ;;  %5319 = vmatprep.subr.bf16.mxu0 %v5757_v6 }
 0x104   : > { %5065 = vmatprep.mubr.bf16.mxu1 %v6749_v33 }
 0x106   : > { %5320 = vmatpush3.bf16.msra.mxu0 %v5757_v6  ;;  %v5805_v6 = vld [vmem:[%s7172_s3 + $0x100] sm:$0xff]  }
 0x107   : > { %5321 = vmatprep.subr.bf16.mxu0 %v5759_v0 }
 0x109   : > { %5290 = vmatmul.mubr.bf16.gmra.mrb[8].mxu0 %v6822_v37 }
 0x10a   : > { %5293 = vmatprep.mubr.bf16.mxu0 %v6826_v62  ;;  %5322 = vmatpush3.bf16.msra.mxu0 %v5759_v0  ;;  %v5775_v0 = vld [vmem:[%s7172_s3 + $0x218] sm:$0xff]  }
 0x10b   : > { %5066 = vmatmul.mubr.bf16.gmra.mrb[24].mxu1 %v6753_v41  ;;  %5323 = vmatprep.subr.bf16.mxu0 %v5761_v61 }
 0x10c   : > { %5069 = vmatprep.mubr.bf16.mxu1 %v6759_v12 }
 0x10e   : > { %5324 = vmatpush3.bf16.msra.mxu0 %v5761_v61  ;;  %v7216_v61 = vld [vmem:[#allocation7_spill] sm:$0xff] }
 0x10f   : > { %5325 = vmatprep.subr.bf16.mxu0 %v5763_v14 }
 0x111   : > { %5294 = vmatmul.mubr.bf16.gmra.mrb[12].mxu0 %v6846_v18 }
 0x112   : > { %5297 = vmatprep.mubr.bf16.mxu0 %v6850_v17  ;;  %5326 = vmatpush3.bf16.msra.mxu0 %v5763_v14  ;;  %v7217_v14 = vld [vmem:[#allocation8_spill] sm:$0xff] }
 0x113   : > { %5070 = vmatmul.mubr.bf16.gmra.mrb[28].mxu1 %v6768_v26  ;;  %5327 = vmatprep.subr.bf16.mxu0 %v5766_v31 }
 0x114   : > { %5089 = vmatprep.mubr.bf16.mxu1 %v4548_v13  ;;  %v7218_v13 = vld [vmem:[#allocation9_spill] sm:$0xff] }
 0x116   : > { %5328 = vmatpush3.bf16.msra.mxu0 %v5766_v31  ;;  %v7219_v31 = vld [vmem:[#allocation10_spill] sm:$0xff] }
 0x117   : > { %5361 = vmatprep.subr.bf16.mxu0 %v5769_v49 }
 0x119   : > { %5298 = vmatmul.mubr.bf16.gmra.mrb[16].mxu0 %v6745_v42 }
 0x11a   : > { %5301 = vmatprep.mubr.bf16.mxu0 %v6749_v33 }
 0x11b   : > { %5090 = vmatmul.mubr.bf16.vlgmr.msra.gmra.mrb[0].mxu1 %v6306_v23  ;;  %v5768_v23 = vld [vmem:[%s7172_s3 + $0xe0] sm:$0xff]  }
 0x11c   : > { %5122 = vmatpush3.bf16.msra.mxu1 %v5758_v46  ;;  %5093 = vmatprep.mubr.bf16.mxu1 %v6358_v43  ;;  %v5770_v46 = vld [vmem:[%s7172_s3 + $0xe8] sm:$0xff]  }
 0x11d   : > { %5123 = vmatprep.subr.bf16.mxu1 %v5760_v53 }
 0x120   : > { %5124 = vmatpush3.bf16.msra.mxu1 %v5760_v53  ;;  %v3590_v53 = vshll.u32 %v6928_v54, 16 }
 0x121   : > { %5125 = vmatprep.subr.bf16.mxu1 %v5762_v25  ;;  %5302 = vmatmul.mubr.bf16.gmra.mrb[20].mxu0 %v6753_v41 }
 0x122   : > { %5305 = vmatprep.mubr.bf16.mxu0 %v6759_v12 }
 0x123   : > { %5094 = vmatmul.mubr.bf16.gmra.mrb[4].mxu1 %v6419_v60 }
 0x124   : > { %5097 = vmatprep.mubr.bf16.mxu1 %v6453_v56  ;;  %5126 = vmatpush3.bf16.msra.mxu1 %v5762_v25  ;;  %v3600_v25 = vshrl.u32 %v6930_v35, 16 }
 0x125   : > { %5127 = vmatprep.subr.bf16.mxu1 %v5764_v15 }
 0x128   : > { %5128 = vmatpush3.bf16.msra.mxu1 %v5764_v15  ;;  %v3596_v15 = vshll.u32 %v6930_v35, 16 }
 0x129   : > { %5129 = vmatprep.subr.bf16.mxu1 %v5768_v23  ;;  %5306 = vmatmul.mubr.bf16.gmra.mrb[24].mxu0 %v6768_v26 }
 0x12a   : > { %5309 = vmatprep.mubr.bf16.mxu0 %v6920_v38 }
 0x12b   : > { %5098 = vmatmul.mubr.bf16.gmra.mrb[8].mxu1 %v6525_v44 }
 0x12c   : > { %5101 = vmatprep.mubr.bf16.mxu1 %v6555_v5  ;;  %5130 = vmatpush3.bf16.msra.mxu1 %v5768_v23 }
 0x12d   : > { %5131 = vmatprep.subr.bf16.mxu1 %v5770_v46 }
 0x130   : > { %5132 = vmatpush3.bf16.msra.mxu1 %v5770_v46  ;;  %v3592_v46 = vrot.slane %v3590_v53, 5 }
 0x131   : > { %5133 = vmatprep.subr.bf16.mxu1 %v5772_v21  ;;  %5310 = vmatmul.mubr.bf16.gmra.mrb[28].mxu0 %v4664_v50  ;;  %v3602_v50 = vrot.slane %v3600_v25, 4 }
 0x132   : > { %5329 = vmatprep.mubr.bf16.mxu0 %v6089_v40  ;;  %v7212_v40 = vld [vmem:[#allocation3_spill] sm:$0xff] }
 0x133   : > { %5102 = vmatmul.mubr.bf16.gmra.mrb[12].mxu1 %v6609_v36 }
 0x134   : > { %5105 = vmatprep.mubr.bf16.mxu1 %v6636_v58  ;;  %5134 = vmatpush3.bf16.msra.mxu1 %v5772_v21  ;;  %v3598_v21 = vrot.slane %v3596_v15, 5 }
 0x135   : > { %5135 = vmatprep.subr.bf16.mxu1 %v5774_v10 }
 0x138   : > { %5136 = vmatpush3.bf16.msra.mxu1 %v5774_v10  ;;  %v6995_v10 = vld [vmem:[#allocation2 + $0xd4] sm:$0x1] }
 0x139   : > { %5409 = vmatprep.subr.bf16.mxu1 %v5805_v6  ;;  %5330 = vmatmul.mubr.bf16.vlgmr.msra.gmra.mrb[0].mxu0 %v6121_v1  ;;  %v7214_v1 = vld [vmem:[#allocation5_spill] sm:$0xff] }
 0x13a   : > { %5362 = vmatpush3.bf16.msra.mxu0 %v5769_v49  ;;  %5333 = vmatprep.mubr.bf16.mxu0 %v7212_v40  ;;  %v3587_v49 = vshrl.u32 %v6928_v54, 16  ;;  %v5808_v40 = vld [vmem:[%s7172_s3 + $0x118] sm:$0xff]  }
 0x13b   : > { %5106 = vmatmul.mubr.bf16.gmra.mrb[16].mxu1 %v6647_v59  ;;  %5363 = vmatprep.subr.bf16.mxu0 %v5771_v24 }
 0x13c   : > { %5109 = vmatprep.mubr.bf16.mxu1 %v6673_v47  ;;  %v3589_v23 = vrot.slane %v3587_v49, 4 }
 0x13e   : > { %5364 = vmatpush3.bf16.msra.mxu0 %v5771_v24  ;;  %v3603_v24 = vor.u32 %v3602_v50, %v3598_v21 }
 0x13f   : > { %5365 = vmatprep.subr.bf16.mxu0 %v5773_v9 }
 0x141   : > { %5334 = vmatmul.mubr.bf16.gmra.mrb[4].mxu0 %v7213_v29 }
 0x142   : > { %5337 = vmatprep.mubr.bf16.mxu0 %v7214_v1  ;;  %5366 = vmatpush3.bf16.msra.mxu0 %v5773_v9  ;;  %v7220_v1 = vld [vmem:[#allocation11_spill] sm:$0xff] }
 0x143   : > { %5110 = vmatmul.mubr.bf16.gmra.mrb[20].mxu1 %v6693_v48  ;;  %5367 = vmatprep.subr.bf16.mxu0 %v5775_v0 }
 0x144   : > { %5113 = vmatprep.mubr.bf16.mxu1 %v6711_v57 }
 0x146   : > { %5368 = vmatpush3.bf16.msra.mxu0 %v5775_v0  ;;  %v3604_v0 = vrot.slane %v3603_v24, 4 }
 0x147   : > { %5369 = vmatprep.subr.bf16.mxu0 %v5776_v45 }
 0x149   : > { %5338 = vmatmul.mubr.bf16.gmra.mrb[8].mxu0 %v7215_v4 }
 0x14a   : > { %5341 = vmatprep.mubr.bf16.mxu0 %v7216_v61  ;;  %5370 = vmatpush3.bf16.msra.mxu0 %v5776_v45 }
 0x14b   : > { %5114 = vmatmul.mubr.bf16.gmra.mrb[24].mxu1 %v6718_v2  ;;  %5371 = vmatprep.subr.bf16.mxu0 %v5777_v3 }
 0x14c   : > { %5117 = vmatprep.mubr.bf16.mxu1 %v6735_v63 }
 0x14e   : > { %5372 = vmatpush3.bf16.msra.mxu0 %v5777_v3  ;;  %v5810_v3 = vld [vmem:[%s7172_s3 + $0x128] sm:$0xff]  }
 0x14f   : > { %5373 = vmatprep.subr.bf16.mxu0 %v5778_v27 }
 0x151   : > { %5342 = vmatmul.mubr.bf16.gmra.mrb[12].mxu0 %v7217_v14 }
 0x152   : > { %5345 = vmatprep.mubr.bf16.mxu0 %v7218_v13  ;;  %5374 = vmatpush3.bf16.msra.mxu0 %v5778_v27 }
 0x153   : > { %5118 = vmatmul.mubr.bf16.gmra.mrb[28].mxu1 %v6764_v39  ;;  %5375 = vmatprep.subr.bf16.mxu0 %v5779_v20 }
 0x154   : > { %5137 = vmatprep.mubr.bf16.mxu1 %v6733_v16  ;;  %v5806_v16 = vld [vmem:[%s7172_s3 + $0x108] sm:$0xff]  }
 0x156   : > { %5376 = vmatpush3.bf16.msra.mxu0 %v5779_v20 }
 0x159   : > { %5346 = vmatmul.mubr.bf16.gmra.mrb[16].mxu0 %v7219_v31 }
 0x15a   : > { %5349 = vmatprep.mubr.bf16.mxu0 %v6585_v28 }
 0x15b   : > { %5138 = vmatmul.mubr.bf16.vlgmr.msra.gmra.mrb[0].mxu1 %v6755_v22  ;;  %v5807_v22 = vld [vmem:[%s7172_s3 + $0x110] sm:$0xff]  }
 0x15c   : > { %5417 = vmatpush3.bf16.msra.mxu1 %v5805_v6  ;;  %5141 = vmatprep.mubr.bf16.mxu1 %v6780_v52  ;;  %v3593_v52 = vor.u32 %v3592_v46, %v3589_v23  ;;  %v3606_v6 = vshll.u32 %v6995_v10, 16 }
 0x15d   : > { %5410 = vmatprep.subr.bf16.mxu1 %v5806_v16 }
 0x15e   : > { %v3594_v9 = vrot.slane %v3593_v52, 4  ;;  %v3608_v29 = vrot.slane %v3606_v6, 5 }
 0x160   : > { %5418 = vmatpush3.bf16.msra.mxu1 %v5806_v16  ;;  %v3609_v45 = vsel %vm5937_vm2, %v3604_v0, %v3608_v29 }
 0x161   : > { %5411 = vmatprep.subr.bf16.mxu1 %v5807_v22  ;;  %5350 = vmatmul.mubr.bf16.gmra.mrb[20].mxu0 %v6604_v30 }
 0x162   : > { %5353 = vmatprep.mubr.bf16.mxu0 %v6671_v19 }
 0x163   : > { %5142 = vmatmul.mubr.bf16.gmra.mrb[4].mxu1 %v6782_v55  ;;  %v5809_v55 = vld [vmem:[%s7172_s3 + $0x120] sm:$0xff]  }
 0x164   : > { %5145 = vmatprep.mubr.bf16.mxu1 %v6798_v8  ;;  %5419 = vmatpush3.bf16.msra.mxu1 %v5807_v22  ;;  %v3599_v8 = vsel %vm5937_vm2, %v3594_v9, %v3598_v21 }
 0x165   : > { %5412 = vmatprep.subr.bf16.mxu1 %v5808_v40  ;;  %v4689_v4 = vcombine.low %v3599_v8, %v3609_v45 }
 0x168   : > { %5420 = vmatpush3.bf16.msra.mxu1 %v5808_v40 }
 0x169   : > { %5413 = vmatprep.subr.bf16.mxu1 %v5809_v55  ;;  %5354 = vmatmul.mubr.bf16.gmra.mrb[24].mxu0 %v7220_v1 }
 0x16a   : > { %5357 = vmatprep.mubr.bf16.mxu0 %v6844_v32 }
 0x16b   : > { %5146 = vmatmul.mubr.bf16.gmra.mrb[8].mxu1 %v6800_v11  ;;  %v5811_v11 = vld [vmem:[%s7172_s3 + $0x130] sm:$0xff]  }
 0x16c   : > { %5149 = vmatprep.mubr.bf16.mxu1 %v6822_v37  ;;  %5421 = vmatpush3.bf16.msra.mxu1 %v5809_v55 }
 0x16d   : > { %5414 = vmatprep.subr.bf16.mxu1 %v5810_v3 }
 0x170   : > { %5422 = vmatpush3.bf16.msra.mxu1 %v5810_v3 }
 0x171   : > { %5415 = vmatprep.subr.bf16.mxu1 %v5811_v11  ;;  %5358 = vmatmul.mubr.bf16.gmra.mrb[28].mxu0 %v4689_v4 }
 0x172   : > { %5377 = vmatprep.mubr.bf16.mxu0 %v6358_v43  ;;  %v3875_v43 = vrot.slane %v6930_v35, 5 }
 0x173   : > { %5150 = vmatmul.mubr.bf16.gmra.mrb[12].mxu1 %v6826_v62  ;;  %v7082_v62 = vld [vmem:[%s7173_s4] ss:$0 sm:$0xff] }
 0x174   : > { %5153 = vmatprep.mubr.bf16.mxu1 %v6846_v18  ;;  %5423 = vmatpush3.bf16.msra.mxu1 %v5811_v11 }
 0x175   : > { %5416 = vmatprep.subr.bf16.mxu1 %v5812_v34 }
 0x178   : > { %5424 = vmatpush3.bf16.msra.mxu1 %v5812_v34 }
 0x179   : > { %5378 = vmatmul.mubr.bf16.vlgmr.msra.gmra.mrb[0].mxu0 %v6419_v60  ;;  %v4698_v60 = vrot.slane %v6928_v54, 9 }
 0x17a   : > { %5381 = vmatprep.mubr.bf16.mxu0 %v6453_v56  ;;  %v3877_v56 = vrot.slane %v3875_v43, 4 }
 0x17b   : > { %5154 = vmatmul.mubr.bf16.gmra.mrb[16].mxu1 %v6850_v17 }
 0x17c   : > { %5157 = vmatprep.mubr.bf16.mxu1 %v6745_v42 }
 0x181   : > { %5382 = vmatmul.mubr.bf16.gmra.mrb[4].mxu0 %v6525_v44  ;;  %v3878_v44 = vrot.slane %v6995_v10, 5 }
 0x182   : > { %5385 = vmatprep.mubr.bf16.mxu0 %v6555_v5 }
 0x183   : > { %5158 = vmatmul.mubr.bf16.gmra.mrb[20].mxu1 %v6749_v33  ;;  %v3879_v5 = vsel %vm6261_vm13, %v3877_v56, %v3878_v44 }
 0x184   : > { %5161 = vmatprep.mubr.bf16.mxu1 %v6753_v41 }
 0x189   : > { %5386 = vmatmul.mubr.bf16.gmra.mrb[8].mxu0 %v6609_v36 }
 0x18a   : > { %5389 = vmatprep.mubr.bf16.mxu0 %v6636_v58 }
 0x18b   : > { %5162 = vmatmul.mubr.bf16.gmra.mrb[24].mxu1 %v6759_v12 }
 0x18c   : > { %5165 = vmatprep.mubr.bf16.mxu1 %v6768_v26 }
 0x191   : > { %5390 = vmatmul.mubr.bf16.gmra.mrb[12].mxu0 %v6647_v59 }
 0x192   : > { %5393 = vmatprep.mubr.bf16.mxu0 %v6673_v47 }
 0x193   : > { %5166 = vmatmul.mubr.bf16.gmra.mrb[28].mxu1 %v6920_v38 }
 0x194   : > { %5201 = vmatprep.mubr.bf16.mxu1 %v7217_v14 }
 0x199   : > { %5394 = vmatmul.mubr.bf16.gmra.mrb[16].mxu0 %v6693_v48 }
 0x19a   : > { %5397 = vmatprep.mubr.bf16.mxu0 %v6711_v57 }
 0x19b   : > { %5202 = vmatmul.mubr.bf16.vlgmr.msra.gmra.mrb[16].mxu1 %v7218_v13 }
 0x19c   : > { %5205 = vmatprep.mubr.bf16.mxu1 %v7219_v31 }
 0x1a1   : > { %5398 = vmatmul.mubr.bf16.gmra.mrb[20].mxu0 %v6718_v2 }
 0x1a2   : > { %5401 = vmatprep.mubr.bf16.mxu0 %v6735_v63 }
 0x1a3   : > { %5206 = vmatmul.mubr.bf16.gmra.mrb[20].mxu1 %v6585_v28  ;;  %v3876_v28 = vsel %vm6261_vm13, %v4698_v60, %v3875_v43 }
 0x1a4   : > { %5209 = vmatprep.mubr.bf16.mxu1 %v6604_v30  ;;  %v4715_v30 = vcombine.low %v3876_v28, %v3879_v5 }
 0x1a9   : > { %5402 = vmatmul.mubr.bf16.gmra.mrb[24].mxu0 %v6764_v39 }
 0x1aa   : > { %5405 = vmatprep.mubr.bf16.mxu0 %v6828_v51 }
 0x1ab   : > { %5210 = vmatmul.mubr.bf16.gmra.mrb[24].mxu1 %v6671_v19 }
 0x1ac   : > { %5213 = vmatprep.mubr.bf16.mxu1 %v7220_v1 }
 0x1b1   : > { %5406 = vmatmul.mubr.bf16.gmra.mrb[28].mxu0 %v4715_v30 }
 0x1b3   : > { %5214 = vmatmul.mubr.bf16.gmra.mrb[28].mxu1 %v6844_v32 }
 0x22e   : > { %v5139_v36 = vpop.f32.mrb[0].mxu1 }
 0x22f   : > { %v2607_v58 = vpop.f32.mrb[1].mxu1 }
 0x230   : > { %v5140_v59 = vpop.f32.mrb[2].mxu1 }
 0x231   : > { %v2610_v47 = vpop.f32.mrb[3].mxu1 }
 0x236   : > { %v5143_v48 = vpop.f32.mrb[4].mxu1 }
 0x237   : > { %v2623_v19 = vpop.f32.mrb[5].mxu1 }
 0x238   : > { %v5144_v57 = vpop.f32.mrb[6].mxu1 }
 0x239   : > { %v2626_v2 = vpop.f32.mrb[7].mxu1 }
 0x23e   : > { %v5147_v63 = vpop.f32.mrb[8].mxu1 }
 0x23f   : > { %v2639_v42 = vpop.f32.mrb[9].mxu1 }
 0x240   : > { %v7067_v33 = vpop.f32.mrb[10].mxu1 }
 0x241   : > { %v7069_v7 = vpop.f32.mrb[11].mxu1 }
 0x246   : > { %v7071_v41 = vpop.f32.mrb[12].mxu1 }
 0x247   : > { %v7073_v12 = vpop.f32.mrb[13].mxu1 }
 0x248   : > { %v7075_v39 = vpop.f32.mrb[14].mxu1 }
 0x249   : > { %v7077_v26 = vpop.f32.mrb[15].mxu1 }
 0x24c   : > { %v5379_v37 = vpop.f32.mrb[0].mxu0 }
 0x24d   : > { %v5425_v51 = vadd.f32 %v5379_v37, %v5139_v36  ;;  %v3983_v32 = vpop.f32.mrb[1].mxu0 }
 0x24e   : > { %v5426_v18 = vadd.f32 %v3983_v32, %v2607_v58  ;;  %v5380_v17 = vpop.f32.mrb[2].mxu0 }
 0x24f   : > { %v4151_v38 = vadd.f32 %v5425_v51, %v7082_v62  ;;  %v5427_v54 = vadd.f32 %v5380_v17, %v5140_v59  ;;  %v3986_v35 = vpop.f32.mrb[3].mxu0 }
 0x250   : > { %v4149_v61 = vadd.f32 %v5426_v18, %v7082_v62  ;;  %v5428_v27 = vadd.f32 %v3986_v35, %v2610_v47 }
 0x251   : > { %4183 = vst [vmem:[%s7089_s28 + $0x10] sm:$0xff] %v4151_v38  ;;  %v4152_v20 = vadd.f32 %v5427_v54, %v7082_v62  ;;  %v4252_v16 = vmul.f32 %v4151_v38, %v4151_v38 }
 0x252   : > { %4181 = vst [vmem:[%s7089_s28] sm:$0xff] %v4149_v61  ;;  %v4150_v14 = vadd.f32 %v5428_v27, %v7082_v62  ;;  %v4250_v13 = vmul.f32 %v4149_v61, %v4149_v61 }
 0x253   : > { %4184 = vst [vmem:[%s7089_s28 + $0x18] sm:$0xff] %v4152_v20  ;;  %v4253_v10 = vmul.f32 %v4152_v20, %v4152_v20 }
 0x254   : > { %4182 = vst [vmem:[%s7089_s28 + $0x8] sm:$0xff] %v4150_v14  ;;  %v4213_v31 = vadd.f32 %v4150_v14, %v4149_v61  ;;  %v4251_v49 = vmul.f32 %v4150_v14, %v4150_v14  ;;  %v5383_v53 = vpop.f32.mrb[4].mxu0 }
 0x255   : > { %v5429_v25 = vadd.f32 %v5383_v53, %v5143_v48  ;;  %v3999_v15 = vpop.f32.mrb[5].mxu0 }
 0x256   : > { %v4214_v23 = vadd.f32 %v4213_v31, %v4151_v38  ;;  %v4282_v46 = vadd.f32 %v4251_v49, %v4250_v13  ;;  %v5430_v21 = vadd.f32 %v3999_v15, %v2623_v19  ;;  %v5384_v50 = vpop.f32.mrb[6].mxu0 }
 0x257   : > { %v4155_v22 = vadd.f32 %v5429_v25, %v7082_v62  ;;  %v5431_v52 = vadd.f32 %v5384_v50, %v5144_v57  ;;  %v4002_v24 = vpop.f32.mrb[7].mxu0 }
 0x258   : > { %v4283_v6 = vadd.f32 %v4282_v46, %v4252_v16  ;;  %v4153_v40 = vadd.f32 %v5430_v21, %v7082_v62  ;;  %v4215_v9 = vadd.f32 %v4214_v23, %v4152_v20  ;;  %v5432_v0 = vadd.f32 %v4002_v24, %v2626_v2 }
 0x259   : > { %4187 = vst [vmem:[%s7089_s28 + $0x30] sm:$0xff] %v4155_v22  ;;  %v4156_v29 = vadd.f32 %v5431_v52, %v7082_v62  ;;  %v4256_v56 = vmul.f32 %v4155_v22, %v4155_v22 }
 0x25a   : > { %4185 = vst [vmem:[%s7089_s28 + $0x20] sm:$0xff] %v4153_v40  ;;  %v4216_v55 = vadd.f32 %v4215_v9, %v4153_v40  ;;  %v4254_v1 = vmul.f32 %v4153_v40, %v4153_v40  ;;  %v4284_v8 = vadd.f32 %v4283_v6, %v4253_v10  ;;  %v4154_v45 = vadd.f32 %v5432_v0, %v7082_v62 }
 0x25b   : > { %4188 = vst [vmem:[%s7089_s28 + $0x38] sm:$0xff] %v4156_v29  ;;  %v4257_v36 = vmul.f32 %v4156_v29, %v4156_v29 }
 0x25c   : > { %v4285_v3 = vadd.f32 %v4284_v8, %v4254_v1  ;;  %4186 = vst [vmem:[%s7089_s28 + $0x28] sm:$0xff] %v4154_v45  ;;  %v4217_v4 = vadd.f32 %v4216_v55, %v4154_v45  ;;  %v4255_v11 = vmul.f32 %v4154_v45, %v4154_v45  ;;  %v5387_v34 = vpop.f32.mrb[8].mxu0 }
 0x25d   : > { %v5433_v43 = vadd.f32 %v5387_v34, %v5147_v63  ;;  %v4015_v60 = vpop.f32.mrb[9].mxu0 }
 0x25e   : > { %v4218_v44 = vadd.f32 %v4217_v4, %v4155_v22  ;;  %v4286_v28 = vadd.f32 %v4285_v3, %v4255_v11  ;;  %v5434_v5 = vadd.f32 %v4015_v60, %v2639_v42  ;;  %v5388_v30 = vpop.f32.mrb[10].mxu0 }
 0x25f   : > { %v4159_v58 = vadd.f32 %v5433_v43, %v7082_v62  ;;  %v5435_v59 = vadd.f32 %v5388_v30, %v7067_v33  ;;  %v4018_v47 = vpop.f32.mrb[11].mxu0 }
 0x260   : > { %v4287_v48 = vadd.f32 %v4286_v28, %v4256_v56  ;;  %v4157_v19 = vadd.f32 %v5434_v5, %v7082_v62  ;;  %v4219_v57 = vadd.f32 %v4218_v44, %v4156_v29  ;;  %v5436_v2 = vadd.f32 %v4018_v47, %v7069_v7 }
 0x261   : > { %4191 = vst [vmem:[%s7089_s28 + $0x50] sm:$0xff] %v4159_v58  ;;  %v4160_v63 = vadd.f32 %v5435_v59, %v7082_v62  ;;  %v4260_v7 = vmul.f32 %v4159_v58, %v4159_v58 }
 0x262   : > { %4189 = vst [vmem:[%s7089_s28 + $0x40] sm:$0xff] %v4157_v19  ;;  %v4220_v42 = vadd.f32 %v4219_v57, %v4157_v19  ;;  %v4258_v37 = vmul.f32 %v4157_v19, %v4157_v19  ;;  %v4288_v51 = vadd.f32 %v4287_v48, %v4257_v36  ;;  %v4158_v32 = vadd.f32 %v5436_v2, %v7082_v62 }
 0x263   : > { %4192 = vst [vmem:[%s7089_s28 + $0x58] sm:$0xff] %v4160_v63  ;;  %v4261_v13 = vmul.f32 %v4160_v63, %v4160_v63 }
 0x264   : > { %v4289_v18 = vadd.f32 %v4288_v51, %v4258_v37  ;;  %4190 = vst [vmem:[%s7089_s28 + $0x48] sm:$0xff] %v4158_v32  ;;  %v4221_v33 = vadd.f32 %v4220_v42, %v4158_v32  ;;  %v4259_v17 = vmul.f32 %v4158_v32, %v4158_v32  ;;  %v5391_v38 = vpop.f32.mrb[12].mxu0 }
 0x265   : > { %v5437_v54 = vadd.f32 %v5391_v38, %v7071_v41  ;;  %v4031_v35 = vpop.f32.mrb[13].mxu0 }
 0x266   : > { %v4222_v61 = vadd.f32 %v4221_v33, %v4159_v58  ;;  %v4290_v27 = vadd.f32 %v4289_v18, %v4259_v17  ;;  %v5438_v20 = vadd.f32 %v4031_v35, %v7073_v12  ;;  %v5392_v14 = vpop.f32.mrb[14].mxu0 }
 0x267   : > { %v4163_v31 = vadd.f32 %v5437_v54, %v7082_v62  ;;  %v5439_v49 = vadd.f32 %v5392_v14, %v7075_v39  ;;  %v4034_v53 = vpop.f32.mrb[15].mxu0 }
 0x268   : > { %v4291_v25 = vadd.f32 %v4290_v27, %v4260_v7  ;;  %v4161_v15 = vadd.f32 %v5438_v20, %v7082_v62  ;;  %v4223_v41 = vadd.f32 %v4222_v61, %v4160_v63  ;;  %v5440_v16 = vadd.f32 %v4034_v53, %v7077_v26 }
 0x269   : > { %4195 = vst [vmem:[%s7089_s28 + $0x70] sm:$0xff] %v4163_v31  ;;  %v4164_v23 = vadd.f32 %v5439_v49, %v7082_v62  ;;  %v4264_v40 = vmul.f32 %v4163_v31, %v4163_v31 }
 0x26a   : > { %4193 = vst [vmem:[%s7089_s28 + $0x60] sm:$0xff] %v4161_v15  ;;  %v4224_v12 = vadd.f32 %v4223_v41, %v4161_v15  ;;  %v4262_v46 = vmul.f32 %v4161_v15, %v4161_v15  ;;  %v4292_v21 = vadd.f32 %v4291_v25, %v4261_v13  ;;  %v4162_v50 = vadd.f32 %v5440_v16, %v7082_v62 }
 0x26b   : > { %4196 = vst [vmem:[%s7089_s28 + $0x78] sm:$0xff] %v4164_v23  ;;  %v4265_v1 = vmul.f32 %v4164_v23, %v4164_v23 }
 0x26c   : > { %v4293_v10 = vadd.f32 %v4292_v21, %v4262_v46  ;;  %4194 = vst [vmem:[%s7089_s28 + $0x68] sm:$0xff] %v4162_v50  ;;  %v4225_v39 = vadd.f32 %v4224_v12, %v4162_v50  ;;  %v4263_v22 = vmul.f32 %v4162_v50, %v4162_v50  ;;  %v5395_v52 = vpop.f32.mrb[16].mxu0 }
 0x26d   : > { %v4047_v6 = vpop.f32.mrb[17].mxu0 }
 0x26e   : > { %v5203_v24 = vpop.f32.mrb[16].mxu1  ;;  %v4226_v9 = vadd.f32 %v4225_v39, %v4163_v31  ;;  %v4294_v26 = vadd.f32 %v4293_v10, %v4263_v22  ;;  %v5396_v55 = vpop.f32.mrb[18].mxu0 }
 0x26f   : > { %v2957_v0 = vpop.f32.mrb[17].mxu1  ;;  %v5441_v29 = vadd.f32 %v5395_v52, %v5203_v24  ;;  %v4050_v3 = vpop.f32.mrb[19].mxu0 }
 0x270   : > { %v5204_v8 = vpop.f32.mrb[18].mxu1  ;;  %v5442_v45 = vadd.f32 %v4047_v6, %v2957_v0  ;;  %v4295_v4 = vadd.f32 %v4294_v26, %v4264_v40  ;;  %v4227_v34 = vadd.f32 %v4226_v9, %v4164_v23 }
 0x271   : > { %v4167_v11 = vadd.f32 %v5441_v29, %v7082_v62  ;;  %v2960_v43 = vpop.f32.mrb[19].mxu1  ;;  %v5443_v60 = vadd.f32 %v5396_v55, %v5204_v8 }
 0x272   : > { %v4165_v56 = vadd.f32 %v5442_v45, %v7082_v62  ;;  %v5444_v44 = vadd.f32 %v4050_v3, %v2960_v43  ;;  %v4296_v28 = vadd.f32 %v4295_v4, %v4265_v1 }
 0x273   : > { %4199 = vst [vmem:[%s7089_s28 + $0x90] sm:$0xff] %v4167_v11  ;;  %v4168_v5 = vadd.f32 %v5443_v60, %v7082_v62  ;;  %v4268_v51 = vmul.f32 %v4167_v11, %v4167_v11 }
 0x274   : > { %4197 = vst [vmem:[%s7089_s28 + $0x80] sm:$0xff] %v4165_v56  ;;  %v4228_v30 = vadd.f32 %v4227_v34, %v4165_v56  ;;  %v4266_v36 = vmul.f32 %v4165_v56, %v4165_v56  ;;  %v4166_v58 = vadd.f32 %v5444_v44, %v7082_v62  ;;  %v5399_v59 = vpop.f32.mrb[20].mxu0 }
 0x275   : > { %4200 = vst [vmem:[%s7089_s28 + $0x98] sm:$0xff] %v4168_v5  ;;  %v4063_v2 = vpop.f32.mrb[21].mxu0  ;;  %v4269_v54 = vmul.f32 %v4168_v5, %v4168_v5 }
 0x276   : > { %v4297_v47 = vadd.f32 %v4296_v28, %v4266_v36  ;;  %4198 = vst [vmem:[%s7089_s28 + $0x88] sm:$0xff] %v4166_v58  ;;  %v4229_v48 = vadd.f32 %v4228_v30, %v4166_v58  ;;  %v4267_v19 = vmul.f32 %v4166_v58, %v4166_v58  ;;  %v5207_v57 = vpop.f32.mrb[20].mxu1  ;;  %v5400_v37 = vpop.f32.mrb[22].mxu0 }
 0x277   : > { %v2973_v63 = vpop.f32.mrb[21].mxu1  ;;  %v5445_v42 = vadd.f32 %v5399_v59, %v5207_v57  ;;  %v4066_v38 = vpop.f32.mrb[23].mxu0 }
 0x278   : > { %v4230_v32 = vadd.f32 %v4229_v48, %v4167_v11  ;;  %v4298_v18 = vadd.f32 %v4297_v47, %v4267_v19  ;;  %v5208_v33 = vpop.f32.mrb[22].mxu1  ;;  %v5446_v17 = vadd.f32 %v4063_v2, %v2973_v63 }
 0x279   : > { %v4171_v35 = vadd.f32 %v5445_v42, %v7082_v62  ;;  %v2976_v7 = vpop.f32.mrb[23].mxu1  ;;  %v5447_v61 = vadd.f32 %v5400_v37, %v5208_v33 }
 0x27a   : > { %v4299_v27 = vadd.f32 %v4298_v18, %v4268_v51  ;;  %v4169_v20 = vadd.f32 %v5446_v17, %v7082_v62  ;;  %v4231_v14 = vadd.f32 %v4230_v32, %v4168_v5  ;;  %v5448_v13 = vadd.f32 %v4066_v38, %v2976_v7 }
 0x27b   : > { %4203 = vst [vmem:[%s7089_s28 + $0xb0] sm:$0xff] %v4171_v35  ;;  %v4172_v31 = vadd.f32 %v5447_v61, %v7082_v62  ;;  %v4272_v22 = vmul.f32 %v4171_v35, %v4171_v35 }
 0x27c   : > { %4201 = vst [vmem:[%s7089_s28 + $0xa0] sm:$0xff] %v4169_v20  ;;  %v4232_v49 = vadd.f32 %v4231_v14, %v4169_v20  ;;  %v4270_v53 = vmul.f32 %v4169_v20, %v4169_v20  ;;  %v4300_v25 = vadd.f32 %v4299_v27, %v4269_v54  ;;  %v4170_v15 = vadd.f32 %v5448_v13, %v7082_v62  ;;  %v5403_v41 = vpop.f32.mrb[24].mxu0 }
 0x27d   : > { %4204 = vst [vmem:[%s7089_s28 + $0xb8] sm:$0xff] %v4172_v31  ;;  %v4079_v21 = vpop.f32.mrb[25].mxu0  ;;  %v4273_v26 = vmul.f32 %v4172_v31, %v4172_v31 }
 0x27e   : > { %v4301_v16 = vadd.f32 %v4300_v25, %v4270_v53  ;;  %4202 = vst [vmem:[%s7089_s28 + $0xa8] sm:$0xff] %v4170_v15  ;;  %v4233_v23 = vadd.f32 %v4232_v49, %v4170_v15  ;;  %v4271_v12 = vmul.f32 %v4170_v15, %v4170_v15  ;;  %v5211_v46 = vpop.f32.mrb[24].mxu1  ;;  %v5404_v39 = vpop.f32.mrb[26].mxu0 }
 0x27f   : > { %v2989_v50 = vpop.f32.mrb[25].mxu1  ;;  %v5449_v10 = vadd.f32 %v5403_v41, %v5211_v46  ;;  %v4082_v9 = vpop.f32.mrb[27].mxu0 }
 0x280   : > { %v4234_v52 = vadd.f32 %v4233_v23, %v4171_v35  ;;  %v4302_v24 = vadd.f32 %v4301_v16, %v4271_v12  ;;  %v5212_v6 = vpop.f32.mrb[26].mxu1  ;;  %v5450_v40 = vadd.f32 %v4079_v21, %v2989_v50 }
 0x281   : > { %v4175_v0 = vadd.f32 %v5449_v10, %v7082_v62  ;;  %v2992_v29 = vpop.f32.mrb[27].mxu1  ;;  %v5451_v55 = vadd.f32 %v5404_v39, %v5212_v6 }
 0x282   : > { %v4303_v1 = vadd.f32 %v4302_v24, %v4272_v22  ;;  %v4173_v8 = vadd.f32 %v5450_v40, %v7082_v62  ;;  %v4235_v45 = vadd.f32 %v4234_v52, %v4172_v31  ;;  %v5452_v3 = vadd.f32 %v4082_v9, %v2992_v29 }
 0x283   : > { %4207 = vst [vmem:[%s7089_s28 + $0xd0] sm:$0xff] %v4175_v0  ;;  %v4176_v4 = vadd.f32 %v5451_v55, %v7082_v62  ;;  %v4276_v48 = vmul.f32 %v4175_v0, %v4175_v0 }
 0x284   : > { %4205 = vst [vmem:[%s7089_s28 + $0xc0] sm:$0xff] %v4173_v8  ;;  %v4236_v11 = vadd.f32 %v4235_v45, %v4173_v8  ;;  %v4274_v34 = vmul.f32 %v4173_v8, %v4173_v8  ;;  %v4304_v43 = vadd.f32 %v4303_v1, %v4273_v26  ;;  %v4174_v60 = vadd.f32 %v5452_v3, %v7082_v62  ;;  %v5407_v56 = vpop.f32.mrb[28].mxu0 }
 0x285   : > { %4208 = vst [vmem:[%s7089_s28 + $0xd8] sm:$0xff] %v4176_v4  ;;  %v4095_v36 = vpop.f32.mrb[29].mxu0  ;;  %v4277_v37 = vmul.f32 %v4176_v4, %v4176_v4 }
 0x286   : > { %v4305_v44 = vadd.f32 %v4304_v43, %v4274_v34  ;;  %4206 = vst [vmem:[%s7089_s28 + $0xc8] sm:$0xff] %v4174_v60  ;;  %v4237_v28 = vadd.f32 %v4236_v11, %v4174_v60  ;;  %v4275_v5 = vmul.f32 %v4174_v60, %v4174_v60  ;;  %v5215_v30 = vpop.f32.mrb[28].mxu1  ;;  %v5408_v47 = vpop.f32.mrb[30].mxu0 }
 0x287   : > { %v3005_v58 = vpop.f32.mrb[29].mxu1  ;;  %v5453_v59 = vadd.f32 %v5407_v56, %v5215_v30  ;;  %v4098_v42 = vpop.f32.mrb[31].mxu0 }
 0x288   : > { %v4238_v19 = vadd.f32 %v4237_v28, %v4175_v0  ;;  %v4306_v57 = vadd.f32 %v4305_v44, %v4275_v5  ;;  %v5216_v2 = vpop.f32.mrb[30].mxu1  ;;  %v5454_v63 = vadd.f32 %v4095_v36, %v3005_v58 }
 0x289   : > { %v4179_v51 = vadd.f32 %v5453_v59, %v7082_v62  ;;  %v3008_v32 = vpop.f32.mrb[31].mxu1  ;;  %v5455_v18 = vadd.f32 %v5408_v47, %v5216_v2 }
 0x28a   : > { %v4307_v33 = vadd.f32 %v4306_v57, %v4276_v48  ;;  %v4177_v17 = vadd.f32 %v5454_v63, %v7082_v62  ;;  %v4239_v38 = vadd.f32 %v4238_v19, %v4176_v4  ;;  %v5456_v54 = vadd.f32 %v4098_v42, %v3008_v32 }
 0x28b   : > { %4211 = vst [vmem:[%s7089_s28 + $0xf0] sm:$0xff] %v4179_v51  ;;  %v4180_v35 = vadd.f32 %v5455_v18, %v7082_v62  ;;  %v4280_v49 = vmul.f32 %v4179_v51, %v4179_v51 }
 0x28c   : > { %4209 = vst [vmem:[%s7089_s28 + $0xe0] sm:$0xff] %v4177_v17  ;;  %v4240_v7 = vadd.f32 %v4239_v38, %v4177_v17  ;;  %v4278_v61 = vmul.f32 %v4177_v17, %v4177_v17  ;;  %v4308_v27 = vadd.f32 %v4307_v33, %v4277_v37  ;;  %v4178_v20 = vadd.f32 %v5456_v54, %v7082_v62 }
 0x28d   : > { %4212 = vst [vmem:[%s7089_s28 + $0xf8] sm:$0xff] %v4180_v35  ;;  %v4281_v15 = vmul.f32 %v4180_v35, %v4180_v35 }
 0x28e   : > { %v4309_v14 = vadd.f32 %v4308_v27, %v4278_v61  ;;  %4210 = vst [vmem:[%s7089_s28 + $0xe8] sm:$0xff] %v4178_v20  ;;  %v4241_v13 = vadd.f32 %v4240_v7, %v4178_v20  ;;  %v4279_v31 = vmul.f32 %v4178_v20, %v4178_v20 }
 0x290   : > { %v4242_v53 = vadd.f32 %v4241_v13, %v4179_v51  ;;  %v4310_v25 = vadd.f32 %v4309_v14, %v4279_v31 }
 0x292   : > { %v4243_v41 = vadd.f32 %v4242_v53, %v4180_v35  ;;  %v4311_v16 = vadd.f32 %v4310_v25, %v4280_v49 }
 0x294   : > { %v4244_v23 = vrot.slane %v4243_v41, 4  ;;  %v4312_v12 = vadd.f32 %v4311_v16, %v4281_v15 }
 0x296   : > { %v4245_v46 = vadd.f32 %v4244_v23, %v4243_v41  ;;  %v4313_v21 = vrot.slane %v4312_v12, 4 }
 0x298   : > { %v4246_v50 = vrot.slane %v4245_v46, 2  ;;  %v4314_v10 = vadd.f32 %v4313_v21, %v4312_v12 }
 0x29a   : > { %v4247_v39 = vadd.f32 %v4246_v50, %v4245_v46  ;;  %v4315_v62 = vrot.slane %v4314_v10, 2 }
 0x29c   : > { %v4248_v22 = vrot.slane %v4247_v39, 1  ;;  %v4316_v52 = vadd.f32 %v4315_v62, %v4314_v10 }
 0x29e   : > { %v4317_v24 = vrot.slane %v4316_v52, 1  ;;  %v4249_v6 = vadd.f32 %v4248_v22, %v4247_v39 }
 0x2a0   : > { %v4318_v40 = vadd.f32 %v4317_v24, %v4316_v52 }
 0x2a2   : > { %v4320_v9 = vsel %vm887_vm4, %v4249_v6, %v4318_v40 }
 0x2a3   : > { %4321 = vst [vmem:[%s262_s15] sm:$0x3] %v4320_v9 }
 0x2a4 PF: > { %s17_s21 = sadd.s32 1, %s5819_s21  }
 0x2a5   : > { %p14_p4 = scmp.ge.s32.totalorder %s17_s21, 4  }
 0x2a7   :  { %16 = sbr.rel (!%p14_p4) target bundleno = 1 (0x1), region = 91 }

</bundles_post_ra>
